<compile_context>
chip_gen: v5e
topology: v5e:2x2
jax: 0.10.0
libtpu: 0.0.40
codegen_flags: <defaults>
</compile_context>

<pallas_src>
import functools

import numpy as np

import jax
import jax.numpy as jnp
from jax.experimental import pallas as pl
from jax.experimental.pallas import tpu as pltpu


def _round_up(x, m):
    return ((x + m - 1) // m) * m


# ----------------------------- Pallas kernel -------------------------------

def _conv_bn_relu_kernel(x_ref, w_ref, bias_ref, o_ref, *, taps, l_out, apply_relu):
    """Fused conv (+ folded BN bias + ReLU), one batch image per grid step.

    x_ref:    (1, Cin_pad, L_in)    bf16  zero-padded, spatially flattened image
    w_ref:    (K*K, Cout, Cin_pad)  bf16  BN scale pre-folded, tap-major
    bias_ref: (Cout, 1)             f32   folded BN bias (zeros when only_conv)
    o_ref:    (1, Cout, L_out)      f32 / bf16

    On the flattened padded domain every (ky,kx) tap is a constant shift
    `off = ky*dil*Wp + kx*dil`, so each tap is a static lane-offset slice of the
    VMEM-resident row — no im2col materialization anywhere.
    """
    xf = x_ref[0]                                     # (Cin_pad, L_in) bf16
    cout = w_ref.shape[1]
    acc = jnp.zeros((cout, l_out), jnp.float32)
    for t, off in enumerate(taps):                    # static unrolled, K*K taps
        tap = xf[:, off:off + l_out]                  # (Cin_pad, L_out) bf16
        acc = acc + jnp.dot(w_ref[t], tap, preferred_element_type=jnp.float32)
    y = acc + bias_ref[...]                           # f32 epilogue
    if apply_relu:
        y = jnp.maximum(y, 0.0)
    o_ref[0] = y.astype(o_ref.dtype)


# ------------------------------- wrapper ------------------------------------

def conv_mode_forward(x_nchw, params, *, mode, sel, stride=1, only_conv=False,
                      out_dtype=None):
    """Matches ConvMode.forward: relu(bn(conv(x))) (identity bn/relu if only_conv)."""
    w = params["w"]                                   # HWIO: (K, K, Cin, Cout)
    k = int(w.shape[0])
    cin, cout = int(w.shape[2]), int(w.shape[3])
    dil = sel if mode == 0 else 1                     # mode 0: 3x3 dilated; mode 1: (2*sel+1)^2
    pad = sel                                         # == dil*(k-1)//2 for both modes
    n, _, h, wdt = x_nchw.shape
    hp, wp = h + 2 * pad, wdt + 2 * pad

    # Flattened-domain geometry: kernel computes the full stride-1 output on the
    # padded row-major domain (lane-dense, multiple of 128); the wrapper slices
    # away the pad columns and applies the stride afterwards.
    l_out = _round_up(h * wp, 128)
    off_max = (k - 1) * dil * (wp + 1)
    l_in = _round_up(off_max + l_out, 128)
    cin_pad = _round_up(cin, 8)

    # bf16 BEFORE any padding/flattening (never materialize f32 expansions).
    xp = jnp.pad(x_nchw.astype(jnp.bfloat16),
                 ((0, 0), (0, cin_pad - cin), (pad, pad), (pad, pad)))
    xflat = jnp.pad(xp.reshape(n, cin_pad, hp * wp),
                    ((0, 0), (0, 0), (0, l_in - hp * wp)))

    # Per-tap lane offsets on the flattened padded domain (static Python ints).
    taps = tuple(i * dil * wp + j * dil for i in range(k) for j in range(k))

    # Fold the BN scale into the weights in f32, then cast to bf16.
    scale = params["scale"].astype(jnp.float32)       # (Cout,) -- ones when only_conv
    bias = params["bias"].astype(jnp.float32)         # (Cout,) -- zeros when only_conv
    w_t = jnp.transpose(w.astype(jnp.float32), (0, 1, 3, 2)).reshape(k * k, cout, cin)
    w_t = jnp.pad(w_t, ((0, 0), (0, 0), (0, cin_pad - cin)))
    w_folded = (w_t * scale[None, :, None]).astype(jnp.bfloat16)

    out_dtype = x_nchw.dtype if out_dtype is None else out_dtype
    kern = functools.partial(_conv_bn_relu_kernel, taps=taps, l_out=l_out,
                             apply_relu=not only_conv)
    yflat = pl.pallas_call(
        kern,
        out_shape=jax.ShapeDtypeStruct((n, cout, l_out), out_dtype),
        grid=(n,),
        in_specs=[
            pl.BlockSpec((1, cin_pad, l_in), lambda b: (b, 0, 0)),
            pl.BlockSpec((k * k, cout, cin_pad), lambda b: (0, 0, 0)),
            pl.BlockSpec((cout, 1), lambda b: (0, 0)),
        ],
        out_specs=pl.BlockSpec((1, cout, l_out), lambda b: (b, 0, 0)),
        compiler_params=pltpu.CompilerParams(
            dimension_semantics=("parallel",)),
    )(xflat, w_folded, bias.reshape(cout, 1))

    # Layout plumbing on the small output: drop pad columns, apply stride.
    y = yflat[:, :, : h * wp].reshape(n, cout, h, wp)
    return y[:, :, ::stride, :wdt:stride]             # (N, Cout, Ho, Wo), NCHW


# ------------------------ parameters & pure-JAX reference -------------------

def init_conv_mode_params(key, *, mode, sel, ipc, opc, only_conv):
    k = 3 if mode == 0 else 2 * sel + 1
    kw, kg, kb, km, kv = jax.random.split(key, 5)
    w = jax.random.normal(kw, (k, k, ipc, opc), jnp.float32) / float(ipc * k * k) ** 0.5
    if only_conv:
        scale = jnp.ones((opc,), jnp.float32)
        bias = jnp.zeros((opc,), jnp.float32)
    else:
        gamma = 1.0 + 0.1 * jax.random.normal(kg, (opc,), jnp.float32)
        beta = 0.1 * jax.random.normal(kb, (opc,), jnp.float32)
        mean = 0.1 * jax.random.normal(km, (opc,), jnp.float32)
        var = 1.0 + 0.1 * jax.random.uniform(kv, (opc,), jnp.float32)
        inv = gamma * jax.lax.rsqrt(var + 1e-5)
        scale, bias = inv, beta - mean * inv
    return dict(w=w, scale=scale, bias=bias)


def conv_mode_reference(x_nchw, params, *, mode, sel, stride=1, only_conv=False):
    w = params["w"]
    dil = sel if mode == 0 else 1
    pad = sel
    rhs = jnp.transpose(w, (3, 2, 0, 1))              # OIHW
    y = jax.lax.conv_general_dilated(
        x_nchw, rhs, window_strides=(stride, stride),
        padding=[(pad, pad), (pad, pad)], rhs_dilation=(dil, dil),
        dimension_numbers=("NCHW", "OIHW", "NCHW"))
    if not only_conv:
        y = y * params["scale"][None, :, None, None] + params["bias"][None, :, None, None]
        y = jnp.maximum(y, 0.0)
    return y


# --------------------------------- main -------------------------------------

if __name__ == "__main__":
    key = jax.random.PRNGKey(0)
    H = W = 32
    N = 2
    # (mode, sel, stride, ipc, opc, only_conv) — covers every ConvMode variant
    # used by the SPFCN_Light hourglass (3x3/5x5/7x7, dilation 1-3, stride 1-2).
    configs = [
        (1, 2, 1, 4, 8, False),   # 5x5, pad 2
        (1, 2, 2, 8, 8, False),   # 5x5, stride 2
        (0, 2, 1, 8, 8, False),   # 3x3, dilation 2
        (0, 1, 2, 8, 8, False),   # 3x3, stride 2
        (1, 3, 1, 8, 8, False),   # 7x7, pad 3
        (1, 1, 1, 8, 4, True),    # 3x3, only_conv (no BN / no ReLU)
    ]

    for (mode, sel, stride, ipc, opc, only_conv) in configs:
        key, pkey, xkey = jax.random.split(key, 3)
        params = init_conv_mode_params(pkey, mode=mode, sel=sel, ipc=ipc,
                                       opc=opc, only_conv=only_conv)
        x = jax.random.normal(xkey, (N, ipc, H, W), dtype=jnp.float32)

        fwd = jax.jit(functools.partial(conv_mode_forward, mode=mode, sel=sel,
                                        stride=stride, only_conv=only_conv))
        out = jax.block_until_ready(fwd(x, params))

        ref = conv_mode_reference(x, params, mode=mode, sel=sel,
                                  stride=stride, only_conv=only_conv)
        ho = (H - 1) // stride + 1
        wo = (W - 1) // stride + 1
        assert out.shape == (N, opc, ho, wo), (out.shape, (N, opc, ho, wo))
        assert bool(jnp.all(jnp.isfinite(out)))
        np.testing.assert_allclose(np.asarray(out), np.asarray(ref),
                                   atol=5e-2, rtol=5e-2)

    print("KERNEL_OK")
</pallas_src>

<mosaic_0001>
module attributes {stable_mosaic.version = 11 : i64} {
  func.func @_conv_bn_relu_kernel(%arg0: i32, %arg1: memref<1x8x1408xbf16, #tpu.memory_space<vmem>>, %arg2: memref<25x8x8xbf16, #tpu.memory_space<vmem>>, %arg3: memref<8x1xf32, #tpu.memory_space<vmem>>, %arg4: memref<1x8x1152xf32, #tpu.memory_space<vmem>>) attributes {dimension_semantics = [#tpu.dimension_semantics<parallel>], iteration_bounds = array<i64: 2>, scalar_prefetch = 0 : i64, scratch_operands = 0 : i64, tpu.core_type = #tpu.core_type<tc>, window_params = [{transform_indices = @transform_0, window_bounds = array<i64: 1, 8, 1408>}, {pipeline_mode = #tpu.pipeline_mode<synchronous>, transform_indices = @transform_1, window_bounds = array<i64: 25, 8, 8>}, {pipeline_mode = #tpu.pipeline_mode<synchronous>, transform_indices = @transform_2, window_bounds = array<i64: 8, 1>}, {transform_indices = @transform_3, window_bounds = array<i64: 1, 8, 1152>}]} {
    %c0 = arith.constant 0 : index
    %c0_0 = arith.constant 0 : index
    %c0_1 = arith.constant 0 : index
    %0 = vector.load %arg1[%c0, %c0_0, %c0_1] : memref<1x8x1408xbf16, #tpu.memory_space<vmem>>, vector<1x8x1408xbf16>
    %1 = vector.shape_cast %0 : vector<1x8x1408xbf16> to vector<8x1408xbf16>
    %cst = arith.constant 0.000000e+00 : f32
    %2 = vector.broadcast %cst : f32 to vector<8x1152xf32>
    %3 = vector.extract_strided_slice %1 {offsets = [0, 0], sizes = [8, 1152], strides = [1, 1]} : vector<8x1408xbf16> to vector<8x1152xbf16>
    %c0_2 = arith.constant 0 : index
    %c0_3 = arith.constant 0 : index
    %c0_4 = arith.constant 0 : index
    %4 = vector.load %arg2[%c0_2, %c0_3, %c0_4] : memref<25x8x8xbf16, #tpu.memory_space<vmem>>, vector<1x8x8xbf16>
    %5 = vector.shape_cast %4 : vector<1x8x8xbf16> to vector<8x8xbf16>
    %cst_5 = arith.constant dense<0.000000e+00> : vector<8x1152xf32>
    %6 = tpu.matmul %5, %3, %cst_5 {dimension_numbers = #tpu.dot_dimension_numbers<[1], [0], [0], [1], [0, 0, 1, 1], [], []>} : vector<8x8xbf16>, vector<8x1152xbf16>, vector<8x1152xf32> -> vector<8x1152xf32>
    %7 = arith.addf %2, %6 : vector<8x1152xf32>
    %8 = vector.extract_strided_slice %1 {offsets = [0, 1], sizes = [8, 1152], strides = [1, 1]} : vector<8x1408xbf16> to vector<8x1152xbf16>
    %c1 = arith.constant 1 : index
    %c0_6 = arith.constant 0 : index
    %c0_7 = arith.constant 0 : index
    %9 = vector.load %arg2[%c1, %c0_6, %c0_7] : memref<25x8x8xbf16, #tpu.memory_space<vmem>>, vector<1x8x8xbf16>
    %10 = vector.shape_cast %9 : vector<1x8x8xbf16> to vector<8x8xbf16>
    %cst_8 = arith.constant dense<0.000000e+00> : vector<8x1152xf32>
    %11 = tpu.matmul %10, %8, %cst_8 {dimension_numbers = #tpu.dot_dimension_numbers<[1], [0], [0], [1], [0, 0, 1, 1], [], []>} : vector<8x8xbf16>, vector<8x1152xbf16>, vector<8x1152xf32> -> vector<8x1152xf32>
    %12 = arith.addf %7, %11 : vector<8x1152xf32>
    %13 = vector.extract_strided_slice %1 {offsets = [0, 2], sizes = [8, 1152], strides = [1, 1]} : vector<8x1408xbf16> to vector<8x1152xbf16>
    %c2 = arith.constant 2 : index
    %c0_9 = arith.constant 0 : index
    %c0_10 = arith.constant 0 : index
    %14 = vector.load %arg2[%c2, %c0_9, %c0_10] : memref<25x8x8xbf16, #tpu.memory_space<vmem>>, vector<1x8x8xbf16>
    %15 = vector.shape_cast %14 : vector<1x8x8xbf16> to vector<8x8xbf16>
    %cst_11 = arith.constant dense<0.000000e+00> : vector<8x1152xf32>
    %16 = tpu.matmul %15, %13, %cst_11 {dimension_numbers = #tpu.dot_dimension_numbers<[1], [0], [0], [1], [0, 0, 1, 1], [], []>} : vector<8x8xbf16>, vector<8x1152xbf16>, vector<8x1152xf32> -> vector<8x1152xf32>
    %17 = arith.addf %12, %16 : vector<8x1152xf32>
    %18 = vector.extract_strided_slice %1 {offsets = [0, 3], sizes = [8, 1152], strides = [1, 1]} : vector<8x1408xbf16> to vector<8x1152xbf16>
    %c3 = arith.constant 3 : index
    %c0_12 = arith.constant 0 : index
    %c0_13 = arith.constant 0 : index
    %19 = vector.load %arg2[%c3, %c0_12, %c0_13] : memref<25x8x8xbf16, #tpu.memory_space<vmem>>, vector<1x8x8xbf16>
    %20 = vector.shape_cast %19 : vector<1x8x8xbf16> to vector<8x8xbf16>
    %cst_14 = arith.constant dense<0.000000e+00> : vector<8x1152xf32>
    %21 = tpu.matmul %20, %18, %cst_14 {dimension_numbers = #tpu.dot_dimension_numbers<[1], [0], [0], [1], [0, 0, 1, 1], [], []>} : vector<8x8xbf16>, vector<8x1152xbf16>, vector<8x1152xf32> -> vector<8x1152xf32>
    %22 = arith.addf %17, %21 : vector<8x1152xf32>
    %23 = vector.extract_strided_slice %1 {offsets = [0, 4], sizes = [8, 1152], strides = [1, 1]} : vector<8x1408xbf16> to vector<8x1152xbf16>
    %c4 = arith.constant 4 : index
    %c0_15 = arith.constant 0 : index
    %c0_16 = arith.constant 0 : index
    %24 = vector.load %arg2[%c4, %c0_15, %c0_16] : memref<25x8x8xbf16, #tpu.memory_space<vmem>>, vector<1x8x8xbf16>
    %25 = vector.shape_cast %24 : vector<1x8x8xbf16> to vector<8x8xbf16>
    %cst_17 = arith.constant dense<0.000000e+00> : vector<8x1152xf32>
    %26 = tpu.matmul %25, %23, %cst_17 {dimension_numbers = #tpu.dot_dimension_numbers<[1], [0], [0], [1], [0, 0, 1, 1], [], []>} : vector<8x8xbf16>, vector<8x1152xbf16>, vector<8x1152xf32> -> vector<8x1152xf32>
    %27 = arith.addf %22, %26 : vector<8x1152xf32>
    %28 = vector.extract_strided_slice %1 {offsets = [0, 36], sizes = [8, 1152], strides = [1, 1]} : vector<8x1408xbf16> to vector<8x1152xbf16>
    %c5 = arith.constant 5 : index
    %c0_18 = arith.constant 0 : index
    %c0_19 = arith.constant 0 : index
    %29 = vector.load %arg2[%c5, %c0_18, %c0_19] : memref<25x8x8xbf16, #tpu.memory_space<vmem>>, vector<1x8x8xbf16>
    %30 = vector.shape_cast %29 : vector<1x8x8xbf16> to vector<8x8xbf16>
    %cst_20 = arith.constant dense<0.000000e+00> : vector<8x1152xf32>
    %31 = tpu.matmul %30, %28, %cst_20 {dimension_numbers = #tpu.dot_dimension_numbers<[1], [0], [0], [1], [0, 0, 1, 1], [], []>} : vector<8x8xbf16>, vector<8x1152xbf16>, vector<8x1152xf32> -> vector<8x1152xf32>
    %32 = arith.addf %27, %31 : vector<8x1152xf32>
    %33 = vector.extract_strided_slice %1 {offsets = [0, 37], sizes = [8, 1152], strides = [1, 1]} : vector<8x1408xbf16> to vector<8x1152xbf16>
    %c6 = arith.constant 6 : index
    %c0_21 = arith.constant 0 : index
    %c0_22 = arith.constant 0 : index
    %34 = vector.load %arg2[%c6, %c0_21, %c0_22] : memref<25x8x8xbf16, #tpu.memory_space<vmem>>, vector<1x8x8xbf16>
    %35 = vector.shape_cast %34 : vector<1x8x8xbf16> to vector<8x8xbf16>
    %cst_23 = arith.constant dense<0.000000e+00> : vector<8x1152xf32>
    %36 = tpu.matmul %35, %33, %cst_23 {dimension_numbers = #tpu.dot_dimension_numbers<[1], [0], [0], [1], [0, 0, 1, 1], [], []>} : vector<8x8xbf16>, vector<8x1152xbf16>, vector<8x1152xf32> -> vector<8x1152xf32>
    %37 = arith.addf %32, %36 : vector<8x1152xf32>
    %38 = vector.extract_strided_slice %1 {offsets = [0, 38], sizes = [8, 1152], strides = [1, 1]} : vector<8x1408xbf16> to vector<8x1152xbf16>
    %c7 = arith.constant 7 : index
    %c0_24 = arith.constant 0 : index
    %c0_25 = arith.constant 0 : index
    %39 = vector.load %arg2[%c7, %c0_24, %c0_25] : memref<25x8x8xbf16, #tpu.memory_space<vmem>>, vector<1x8x8xbf16>
    %40 = vector.shape_cast %39 : vector<1x8x8xbf16> to vector<8x8xbf16>
    %cst_26 = arith.constant dense<0.000000e+00> : vector<8x1152xf32>
    %41 = tpu.matmul %40, %38, %cst_26 {dimension_numbers = #tpu.dot_dimension_numbers<[1], [0], [0], [1], [0, 0, 1, 1], [], []>} : vector<8x8xbf16>, vector<8x1152xbf16>, vector<8x1152xf32> -> vector<8x1152xf32>
    %42 = arith.addf %37, %41 : vector<8x1152xf32>
    %43 = vector.extract_strided_slice %1 {offsets = [0, 39], sizes = [8, 1152], strides = [1, 1]} : vector<8x1408xbf16> to vector<8x1152xbf16>
    %c8 = arith.constant 8 : index
    %c0_27 = arith.constant 0 : index
    %c0_28 = arith.constant 0 : index
    %44 = vector.load %arg2[%c8, %c0_27, %c0_28] : memref<25x8x8xbf16, #tpu.memory_space<vmem>>, vector<1x8x8xbf16>
    %45 = vector.shape_cast %44 : vector<1x8x8xbf16> to vector<8x8xbf16>
    %cst_29 = arith.constant dense<0.000000e+00> : vector<8x1152xf32>
    %46 = tpu.matmul %45, %43, %cst_29 {dimension_numbers = #tpu.dot_dimension_numbers<[1], [0], [0], [1], [0, 0, 1, 1], [], []>} : vector<8x8xbf16>, vector<8x1152xbf16>, vector<8x1152xf32> -> vector<8x1152xf32>
    %47 = arith.addf %42, %46 : vector<8x1152xf32>
    %48 = vector.extract_strided_slice %1 {offsets = [0, 40], sizes = [8, 1152], strides = [1, 1]} : vector<8x1408xbf16> to vector<8x1152xbf16>
    %c9 = arith.constant 9 : index
    %c0_30 = arith.constant 0 : index
    %c0_31 = arith.constant 0 : index
    %49 = vector.load %arg2[%c9, %c0_30, %c0_31] : memref<25x8x8xbf16, #tpu.memory_space<vmem>>, vector<1x8x8xbf16>
    %50 = vector.shape_cast %49 : vector<1x8x8xbf16> to vector<8x8xbf16>
    %cst_32 = arith.constant dense<0.000000e+00> : vector<8x1152xf32>
    %51 = tpu.matmul %50, %48, %cst_32 {dimension_numbers = #tpu.dot_dimension_numbers<[1], [0], [0], [1], [0, 0, 1, 1], [], []>} : vector<8x8xbf16>, vector<8x1152xbf16>, vector<8x1152xf32> -> vector<8x1152xf32>
    %52 = arith.addf %47, %51 : vector<8x1152xf32>
    %53 = vector.extract_strided_slice %1 {offsets = [0, 72], sizes = [8, 1152], strides = [1, 1]} : vector<8x1408xbf16> to vector<8x1152xbf16>
    %c10 = arith.constant 10 : index
    %c0_33 = arith.constant 0 : index
    %c0_34 = arith.constant 0 : index
    %54 = vector.load %arg2[%c10, %c0_33, %c0_34] : memref<25x8x8xbf16, #tpu.memory_space<vmem>>, vector<1x8x8xbf16>
    %55 = vector.shape_cast %54 : vector<1x8x8xbf16> to vector<8x8xbf16>
    %cst_35 = arith.constant dense<0.000000e+00> : vector<8x1152xf32>
    %56 = tpu.matmul %55, %53, %cst_35 {dimension_numbers = #tpu.dot_dimension_numbers<[1], [0], [0], [1], [0, 0, 1, 1], [], []>} : vector<8x8xbf16>, vector<8x1152xbf16>, vector<8x1152xf32> -> vector<8x1152xf32>
    %57 = arith.addf %52, %56 : vector<8x1152xf32>
    %58 = vector.extract_strided_slice %1 {offsets = [0, 73], sizes = [8, 1152], strides = [1, 1]} : vector<8x1408xbf16> to vector<8x1152xbf16>
    %c11 = arith.constant 11 : index
    %c0_36 = arith.constant 0 : index
    %c0_37 = arith.constant 0 : index
    %59 = vector.load %arg2[%c11, %c0_36, %c0_37] : memref<25x8x8xbf16, #tpu.memory_space<vmem>>, vector<1x8x8xbf16>
    %60 = vector.shape_cast %59 : vector<1x8x8xbf16> to vector<8x8xbf16>
    %cst_38 = arith.constant dense<0.000000e+00> : vector<8x1152xf32>
    %61 = tpu.matmul %60, %58, %cst_38 {dimension_numbers = #tpu.dot_dimension_numbers<[1], [0], [0], [1], [0, 0, 1, 1], [], []>} : vector<8x8xbf16>, vector<8x1152xbf16>, vector<8x1152xf32> -> vector<8x1152xf32>
    %62 = arith.addf %57, %61 : vector<8x1152xf32>
    %63 = vector.extract_strided_slice %1 {offsets = [0, 74], sizes = [8, 1152], strides = [1, 1]} : vector<8x1408xbf16> to vector<8x1152xbf16>
    %c12 = arith.constant 12 : index
    %c0_39 = arith.constant 0 : index
    %c0_40 = arith.constant 0 : index
    %64 = vector.load %arg2[%c12, %c0_39, %c0_40] : memref<25x8x8xbf16, #tpu.memory_space<vmem>>, vector<1x8x8xbf16>
    %65 = vector.shape_cast %64 : vector<1x8x8xbf16> to vector<8x8xbf16>
    %cst_41 = arith.constant dense<0.000000e+00> : vector<8x1152xf32>
    %66 = tpu.matmul %65, %63, %cst_41 {dimension_numbers = #tpu.dot_dimension_numbers<[1], [0], [0], [1], [0, 0, 1, 1], [], []>} : vector<8x8xbf16>, vector<8x1152xbf16>, vector<8x1152xf32> -> vector<8x1152xf32>
    %67 = arith.addf %62, %66 : vector<8x1152xf32>
    %68 = vector.extract_strided_slice %1 {offsets = [0, 75], sizes = [8, 1152], strides = [1, 1]} : vector<8x1408xbf16> to vector<8x1152xbf16>
    %c13 = arith.constant 13 : index
    %c0_42 = arith.constant 0 : index
    %c0_43 = arith.constant 0 : index
    %69 = vector.load %arg2[%c13, %c0_42, %c0_43] : memref<25x8x8xbf16, #tpu.memory_space<vmem>>, vector<1x8x8xbf16>
    %70 = vector.shape_cast %69 : vector<1x8x8xbf16> to vector<8x8xbf16>
    %cst_44 = arith.constant dense<0.000000e+00> : vector<8x1152xf32>
    %71 = tpu.matmul %70, %68, %cst_44 {dimension_numbers = #tpu.dot_dimension_numbers<[1], [0], [0], [1], [0, 0, 1, 1], [], []>} : vector<8x8xbf16>, vector<8x1152xbf16>, vector<8x1152xf32> -> vector<8x1152xf32>
    %72 = arith.addf %67, %71 : vector<8x1152xf32>
    %73 = vector.extract_strided_slice %1 {offsets = [0, 76], sizes = [8, 1152], strides = [1, 1]} : vector<8x1408xbf16> to vector<8x1152xbf16>
    %c14 = arith.constant 14 : index
    %c0_45 = arith.constant 0 : index
    %c0_46 = arith.constant 0 : index
    %74 = vector.load %arg2[%c14, %c0_45, %c0_46] : memref<25x8x8xbf16, #tpu.memory_space<vmem>>, vector<1x8x8xbf16>
    %75 = vector.shape_cast %74 : vector<1x8x8xbf16> to vector<8x8xbf16>
    %cst_47 = arith.constant dense<0.000000e+00> : vector<8x1152xf32>
    %76 = tpu.matmul %75, %73, %cst_47 {dimension_numbers = #tpu.dot_dimension_numbers<[1], [0], [0], [1], [0, 0, 1, 1], [], []>} : vector<8x8xbf16>, vector<8x1152xbf16>, vector<8x1152xf32> -> vector<8x1152xf32>
    %77 = arith.addf %72, %76 : vector<8x1152xf32>
    %78 = vector.extract_strided_slice %1 {offsets = [0, 108], sizes = [8, 1152], strides = [1, 1]} : vector<8x1408xbf16> to vector<8x1152xbf16>
    %c15 = arith.constant 15 : index
    %c0_48 = arith.constant 0 : index
    %c0_49 = arith.constant 0 : index
    %79 = vector.load %arg2[%c15, %c0_48, %c0_49] : memref<25x8x8xbf16, #tpu.memory_space<vmem>>, vector<1x8x8xbf16>
    %80 = vector.shape_cast %79 : vector<1x8x8xbf16> to vector<8x8xbf16>
    %cst_50 = arith.constant dense<0.000000e+00> : vector<8x1152xf32>
    %81 = tpu.matmul %80, %78, %cst_50 {dimension_numbers = #tpu.dot_dimension_numbers<[1], [0], [0], [1], [0, 0, 1, 1], [], []>} : vector<8x8xbf16>, vector<8x1152xbf16>, vector<8x1152xf32> -> vector<8x1152xf32>
    %82 = arith.addf %77, %81 : vector<8x1152xf32>
    %83 = vector.extract_strided_slice %1 {offsets = [0, 109], sizes = [8, 1152], strides = [1, 1]} : vector<8x1408xbf16> to vector<8x1152xbf16>
    %c16 = arith.constant 16 : index
    %c0_51 = arith.constant 0 : index
    %c0_52 = arith.constant 0 : index
    %84 = vector.load %arg2[%c16, %c0_51, %c0_52] : memref<25x8x8xbf16, #tpu.memory_space<vmem>>, vector<1x8x8xbf16>
    %85 = vector.shape_cast %84 : vector<1x8x8xbf16> to vector<8x8xbf16>
    %cst_53 = arith.constant dense<0.000000e+00> : vector<8x1152xf32>
    %86 = tpu.matmul %85, %83, %cst_53 {dimension_numbers = #tpu.dot_dimension_numbers<[1], [0], [0], [1], [0, 0, 1, 1], [], []>} : vector<8x8xbf16>, vector<8x1152xbf16>, vector<8x1152xf32> -> vector<8x1152xf32>
    %87 = arith.addf %82, %86 : vector<8x1152xf32>
    %88 = vector.extract_strided_slice %1 {offsets = [0, 110], sizes = [8, 1152], strides = [1, 1]} : vector<8x1408xbf16> to vector<8x1152xbf16>
    %c17 = arith.constant 17 : index
    %c0_54 = arith.constant 0 : index
    %c0_55 = arith.constant 0 : index
    %89 = vector.load %arg2[%c17, %c0_54, %c0_55] : memref<25x8x8xbf16, #tpu.memory_space<vmem>>, vector<1x8x8xbf16>
    %90 = vector.shape_cast %89 : vector<1x8x8xbf16> to vector<8x8xbf16>
    %cst_56 = arith.constant dense<0.000000e+00> : vector<8x1152xf32>
    %91 = tpu.matmul %90, %88, %cst_56 {dimension_numbers = #tpu.dot_dimension_numbers<[1], [0], [0], [1], [0, 0, 1, 1], [], []>} : vector<8x8xbf16>, vector<8x1152xbf16>, vector<8x1152xf32> -> vector<8x1152xf32>
    %92 = arith.addf %87, %91 : vector<8x1152xf32>
    %93 = vector.extract_strided_slice %1 {offsets = [0, 111], sizes = [8, 1152], strides = [1, 1]} : vector<8x1408xbf16> to vector<8x1152xbf16>
    %c18 = arith.constant 18 : index
    %c0_57 = arith.constant 0 : index
    %c0_58 = arith.constant 0 : index
    %94 = vector.load %arg2[%c18, %c0_57, %c0_58] : memref<25x8x8xbf16, #tpu.memory_space<vmem>>, vector<1x8x8xbf16>
    %95 = vector.shape_cast %94 : vector<1x8x8xbf16> to vector<8x8xbf16>
    %cst_59 = arith.constant dense<0.000000e+00> : vector<8x1152xf32>
    %96 = tpu.matmul %95, %93, %cst_59 {dimension_numbers = #tpu.dot_dimension_numbers<[1], [0], [0], [1], [0, 0, 1, 1], [], []>} : vector<8x8xbf16>, vector<8x1152xbf16>, vector<8x1152xf32> -> vector<8x1152xf32>
    %97 = arith.addf %92, %96 : vector<8x1152xf32>
    %98 = vector.extract_strided_slice %1 {offsets = [0, 112], sizes = [8, 1152], strides = [1, 1]} : vector<8x1408xbf16> to vector<8x1152xbf16>
    %c19 = arith.constant 19 : index
    %c0_60 = arith.constant 0 : index
    %c0_61 = arith.constant 0 : index
    %99 = vector.load %arg2[%c19, %c0_60, %c0_61] : memref<25x8x8xbf16, #tpu.memory_space<vmem>>, vector<1x8x8xbf16>
    %100 = vector.shape_cast %99 : vector<1x8x8xbf16> to vector<8x8xbf16>
    %cst_62 = arith.constant dense<0.000000e+00> : vector<8x1152xf32>
    %101 = tpu.matmul %100, %98, %cst_62 {dimension_numbers = #tpu.dot_dimension_numbers<[1], [0], [0], [1], [0, 0, 1, 1], [], []>} : vector<8x8xbf16>, vector<8x1152xbf16>, vector<8x1152xf32> -> vector<8x1152xf32>
    %102 = arith.addf %97, %101 : vector<8x1152xf32>
    %103 = vector.extract_strided_slice %1 {offsets = [0, 144], sizes = [8, 1152], strides = [1, 1]} : vector<8x1408xbf16> to vector<8x1152xbf16>
    %c20 = arith.constant 20 : index
    %c0_63 = arith.constant 0 : index
    %c0_64 = arith.constant 0 : index
    %104 = vector.load %arg2[%c20, %c0_63, %c0_64] : memref<25x8x8xbf16, #tpu.memory_space<vmem>>, vector<1x8x8xbf16>
    %105 = vector.shape_cast %104 : vector<1x8x8xbf16> to vector<8x8xbf16>
    %cst_65 = arith.constant dense<0.000000e+00> : vector<8x1152xf32>
    %106 = tpu.matmul %105, %103, %cst_65 {dimension_numbers = #tpu.dot_dimension_numbers<[1], [0], [0], [1], [0, 0, 1, 1], [], []>} : vector<8x8xbf16>, vector<8x1152xbf16>, vector<8x1152xf32> -> vector<8x1152xf32>
    %107 = arith.addf %102, %106 : vector<8x1152xf32>
    %108 = vector.extract_strided_slice %1 {offsets = [0, 145], sizes = [8, 1152], strides = [1, 1]} : vector<8x1408xbf16> to vector<8x1152xbf16>
    %c21 = arith.constant 21 : index
    %c0_66 = arith.constant 0 : index
    %c0_67 = arith.constant 0 : index
    %109 = vector.load %arg2[%c21, %c0_66, %c0_67] : memref<25x8x8xbf16, #tpu.memory_space<vmem>>, vector<1x8x8xbf16>
    %110 = vector.shape_cast %109 : vector<1x8x8xbf16> to vector<8x8xbf16>
    %cst_68 = arith.constant dense<0.000000e+00> : vector<8x1152xf32>
    %111 = tpu.matmul %110, %108, %cst_68 {dimension_numbers = #tpu.dot_dimension_numbers<[1], [0], [0], [1], [0, 0, 1, 1], [], []>} : vector<8x8xbf16>, vector<8x1152xbf16>, vector<8x1152xf32> -> vector<8x1152xf32>
    %112 = arith.addf %107, %111 : vector<8x1152xf32>
    %113 = vector.extract_strided_slice %1 {offsets = [0, 146], sizes = [8, 1152], strides = [1, 1]} : vector<8x1408xbf16> to vector<8x1152xbf16>
    %c22 = arith.constant 22 : index
    %c0_69 = arith.constant 0 : index
    %c0_70 = arith.constant 0 : index
    %114 = vector.load %arg2[%c22, %c0_69, %c0_70] : memref<25x8x8xbf16, #tpu.memory_space<vmem>>, vector<1x8x8xbf16>
    %115 = vector.shape_cast %114 : vector<1x8x8xbf16> to vector<8x8xbf16>
    %cst_71 = arith.constant dense<0.000000e+00> : vector<8x1152xf32>
    %116 = tpu.matmul %115, %113, %cst_71 {dimension_numbers = #tpu.dot_dimension_numbers<[1], [0], [0], [1], [0, 0, 1, 1], [], []>} : vector<8x8xbf16>, vector<8x1152xbf16>, vector<8x1152xf32> -> vector<8x1152xf32>
    %117 = arith.addf %112, %116 : vector<8x1152xf32>
    %118 = vector.extract_strided_slice %1 {offsets = [0, 147], sizes = [8, 1152], strides = [1, 1]} : vector<8x1408xbf16> to vector<8x1152xbf16>
    %c23 = arith.constant 23 : index
    %c0_72 = arith.constant 0 : index
    %c0_73 = arith.constant 0 : index
    %119 = vector.load %arg2[%c23, %c0_72, %c0_73] : memref<25x8x8xbf16, #tpu.memory_space<vmem>>, vector<1x8x8xbf16>
    %120 = vector.shape_cast %119 : vector<1x8x8xbf16> to vector<8x8xbf16>
    %cst_74 = arith.constant dense<0.000000e+00> : vector<8x1152xf32>
    %121 = tpu.matmul %120, %118, %cst_74 {dimension_numbers = #tpu.dot_dimension_numbers<[1], [0], [0], [1], [0, 0, 1, 1], [], []>} : vector<8x8xbf16>, vector<8x1152xbf16>, vector<8x1152xf32> -> vector<8x1152xf32>
    %122 = arith.addf %117, %121 : vector<8x1152xf32>
    %123 = vector.extract_strided_slice %1 {offsets = [0, 148], sizes = [8, 1152], strides = [1, 1]} : vector<8x1408xbf16> to vector<8x1152xbf16>
    %c24 = arith.constant 24 : index
    %c0_75 = arith.constant 0 : index
    %c0_76 = arith.constant 0 : index
    %124 = vector.load %arg2[%c24, %c0_75, %c0_76] : memref<25x8x8xbf16, #tpu.memory_space<vmem>>, vector<1x8x8xbf16>
    %125 = vector.shape_cast %124 : vector<1x8x8xbf16> to vector<8x8xbf16>
    %cst_77 = arith.constant dense<0.000000e+00> : vector<8x1152xf32>
    %126 = tpu.matmul %125, %123, %cst_77 {dimension_numbers = #tpu.dot_dimension_numbers<[1], [0], [0], [1], [0, 0, 1, 1], [], []>} : vector<8x8xbf16>, vector<8x1152xbf16>, vector<8x1152xf32> -> vector<8x1152xf32>
    %127 = arith.addf %122, %126 : vector<8x1152xf32>
    %c0_78 = arith.constant 0 : index
    %c0_79 = arith.constant 0 : index
    %128 = vector.load %arg3[%c0_78, %c0_79] : memref<8x1xf32, #tpu.memory_space<vmem>>, vector<8x1xf32>
    %129 = vector.broadcast %128 : vector<8x1xf32> to vector<8x1152xf32>
    %130 = arith.addf %127, %129 : vector<8x1152xf32>
    %cst_80 = arith.constant 0.000000e+00 : f32
    %131 = vector.broadcast %cst_80 : f32 to vector<8x1152xf32>
    %132 = arith.maximumf %130, %131 : vector<8x1152xf32>
    %c0_81 = arith.constant 0 : index
    %c0_82 = arith.constant 0 : index
    %c0_83 = arith.constant 0 : index
    %133 = vector.load %arg4[%c0_81, %c0_82, %c0_83] : memref<1x8x1152xf32, #tpu.memory_space<vmem>>, vector<1x8x1152xf32>
    %134 = vector.shape_cast %133 : vector<1x8x1152xf32> to vector<8x1152xf32>
    %135 = vector.shape_cast %132 : vector<8x1152xf32> to vector<1x8x1152xf32>
    tpu.vector_store %arg4[%c0_81, %c0_82, %c0_83], %135 {strides = array<i32>} : memref<1x8x1152xf32, #tpu.memory_space<vmem>>, vector<1x8x1152xf32>,
    return
  }
  func.func @transform_0(%arg0: i32) -> (i32, i32, i32) {
    %c0_i32 = arith.constant 0 : i32
    %c0_i32_0 = arith.constant 0 : i32
    %c0_i32_1 = arith.constant 0 : i32
    return %arg0, %c0_i32, %c0_i32_0 : i32, i32, i32
  }
  func.func @transform_1(%arg0: i32) -> (i32, i32, i32) {
    %c0_i32 = arith.constant 0 : i32
    %c0_i32_0 = arith.constant 0 : i32
    %c0_i32_1 = arith.constant 0 : i32
    %c0_i32_2 = arith.constant 0 : i32
    return %c0_i32, %c0_i32_0, %c0_i32_1 : i32, i32, i32
  }
  func.func @transform_2(%arg0: i32) -> (i32, i32) {
    %c0_i32 = arith.constant 0 : i32
    %c0_i32_0 = arith.constant 0 : i32
    %c0_i32_1 = arith.constant 0 : i32
    return %c0_i32, %c0_i32_0 : i32, i32
  }
  func.func @transform_3(%arg0: i32) -> (i32, i32, i32) {
    %c0_i32 = arith.constant 0 : i32
    %c0_i32_0 = arith.constant 0 : i32
    %c0_i32_1 = arith.constant 0 : i32
    return %arg0, %c0_i32, %c0_i32_0 : i32, i32, i32
  }
}

</mosaic_0001>

<bundles_post_ra>
// kernel: conv_mode_forward.1
= control target key start
LH: loop header
LB: loop body
LE: loop exit
PB: predicated region body
PF: predicated region fallthrough
CT: control target
= control target key end

     0   :  { %s5294_s12 = smov 0   ;;  %s7370_s0 = inlined_call_operand.vmem [shape: bf16[2,8,1408], index: 0, kind: input, shape index: {}]   ;;  %s7371_s1 = inlined_call_operand.vmem [shape: bf16[25,8,8], index: 1, kind: input, shape index: {}]   ;;  %s7372_s2 = inlined_call_operand.vmem [shape: f32[8,1], index: 2, kind: input, shape index: {}]   ;;  %s7373_s3 = inlined_call_operand.vmem [shape: f32[2,8,1152], index: 3, kind: output, shape index: {}]  }
   0x1 LB: > { %s4947_s13 = sadd.s32 4294967295, %s5247_s12   ;;  %p4951_p0 = scmp.ge.s32.totalorder %s5247_s12, 1  ;;  %s5247_s12 = sphi %s5294_s12, %s13_s12  }
   0x2   : > { %p137_p1 = scmp.lt.s32.totalorder %s5247_s12, 3 }
   0x4   : > { %p138_p2 = pnand %p4951_p0, %p137_p1 }
   0x5   : > { %p161_p3 = scmp.lt.s32.totalorder (!%p138_p2), %s4947_s13, 1  ;;  %s5249_s18 = smov (!%p138_p2), 127  }
   0x6   : > { %141 = sbr.rel (%p138_p2) target bundleno = 1178 (0x49a), region = 32  ;;  %s5250_s19 = smov (!%p138_p2), 126  }
   0x7   : > { %s5251_s20 = smov (!%p138_p2), 125   ;;  %s5252_s21 = smov (!%p138_p2), 124  }
   0x8   : > { %s5253_s22 = smov (!%p138_p2), 92   ;;  %s5254_s25 = smov (!%p138_p2), 91  }
   0x9   : > { %s5255_s28 = smov (!%p138_p2), 90   ;;  %s5256_s29 = smov (!%p138_p2), 89  }
   0xa   : > { %s5257_s5 = smov (!%p138_p2), 88   ;;  %s5258_s8 = smov (!%p138_p2), 56  }
   0xb   : > { %s7375_s13 = smov (!%p161_p3, %s4947_s13), 1  ;;  %vm226_vm0 = vcmask 1039360   ;;  %vm240_vm1 = vcmask 1043456   ;;  %v5404_v41 = vld [vmem:[%s7371_s1 + $0x4] sm:$0xf]  ;;  %vm236_vm2 = vcmask 64512  }
   0xc   : > { %s5205_s14 = smul.u32 44, %s7375_s13  ;;  %vm554_vm3 = vcmask 1031168   ;;  %vm742_vm4 = vcmask 1022976   ;;  %vm930_vm5 = vcmask 1014784   ;;  %vm1118_vm6 = vcmask 752640   ;;  %s5259_s9 = smov 55  }
   0xd   : > { %vm1306_vm7 = vcmask 744448   ;;  %vm1494_vm8 = vcmask 736256   ;;  %vm1682_vm9 = vcmask 728064   ;;  %s5263_s24 = smov 20   ;;  %vm1870_vm10 = vcmask 719872   ;;  %s5264_s27 = smov 19  }
   0xe   : > { %s5308_s17 = scalar_lea.vmem %s7370_s0, %s5205_s14  ;;  %s5260_s14 = smov 54   ;;  %vm2058_vm11 = vcmask 457728   ;;  %vm2246_vm12 = vcmask 449536   ;;  %vm2434_vm13 = vcmask 441344   ;;  %vm2622_vm14 = vcmask 433152  }
   0xf   : > { %v173_v0 = vld [vmem:[%s5308_s17 + $0x8] sm:$0xff]  ;;  %v172_v1 = vld [vmem:[%s5308_s17] sm:$0xff]  ;;  %v174_v4 = vld [vmem:[%s5308_s17 + $0x10] sm:$0xff]  ;;  %s5265_s30 = smov 18   ;;  %s5266_s6 = smov 17   ;;  %vm2810_vm15 = vcmask 424960  }
  0x10   : > { %v188_v2 = vunpack.c.l.b16 %v173_v0  ;;  %v186_v3 = vunpack.c.l.b16 %v172_v1  ;;  %v190_v5 = vunpack.c.l.b16 %v174_v4  ;;  %v187_v9 = vunpack.c.h.b16 %v172_v1  ;;  %v175_v14 = vld [vmem:[%s5308_s17 + $0x18] sm:$0xff]  ;;  %v176_v18 = vld [vmem:[%s5308_s17 + $0x20] sm:$0xff] }
  0x11   : > { %v189_v10 = vunpack.c.h.b16 %v173_v0  ;;  %v191_v11 = vunpack.c.h.b16 %v174_v4  ;;  %v192_v16 = vunpack.c.l.b16 %v175_v14  ;;  %v193_v17 = vunpack.c.h.b16 %v175_v14  ;;  %v5470_v1 = vld [vmem:[%s7371_s1] sm:$0xf] }
  0x12   : > { %v5313_v6 = vpack.c.b16 %v188_v2, %v188_v2  ;;  %v5315_v7 = vpack.c.b16 %v186_v3, %v186_v3  ;;  %v5317_v8 = vpack.c.b16 %v190_v5, %v190_v5  ;;  %v5322_v12 = vpack.c.b16 %v187_v9, %v187_v9 }
  0x13   : > { %v5324_v13 = vpack.c.b16 %v189_v10, %v189_v10  ;;  %v5327_v15 = vpack.c.b16 %v191_v11, %v191_v11  ;;  %v194_v19 = vunpack.c.l.b16 %v176_v18  ;;  %v5333_v20 = vpack.c.b16 %v192_v16, %v192_v16 }
  0x14   : > { %210 = vrot.lane.b32.xlu1 %v5313_v6, %s5249_s18  ;;  %206 = vrot.lane.b32.xlu0 %v5315_v7, %s5249_s18  ;;  %v5335_v21 = vpack.c.b16 %v193_v17, %v193_v17  ;;  %v195_v23 = vunpack.c.h.b16 %v176_v18  ;;  %v392_v45 = vsel %vm240_vm1, %v5322_v12, 0  ;;  %v395_v49 = vsel %vm240_vm1, %v5313_v6, 0 }
  0x15   : > { %214 = vrot.lane.b32.xlu2 %v5317_v8, %s5249_s18  ;;  %v5337_v22 = vpack.c.b16 %v194_v19, %v194_v19  ;;  %v389_v53 = vsel %vm240_vm1, %v5315_v7, 0  ;;  %v398_v57 = vsel %vm240_vm1, %v5324_v13, 0  ;;  %v404_v58 = vsel %vm240_vm1, %v5327_v15, 0 }
  0x16   : > { %v5342_v24 = vpack.c.b16 %v195_v23, %v195_v23  ;;  %v407_v59 = vsel %vm240_vm1, %v5333_v20, 0  ;;  %v401_v60 = vsel %vm240_vm1, %v5317_v8, 0  ;;  %v410_v3 = vsel %vm240_vm1, %v5335_v21, 0 }
  0x17   : > { %v413_v10 = vsel %vm240_vm1, %v5337_v22, 0 }
  0x1c   : > { %212 = vrot.lane.b32.xlu1 %v5324_v13, %s5249_s18  ;;  %208 = vrot.lane.b32.xlu0 %v5322_v12, %s5249_s18 }
  0x1d   : > { %216 = vrot.lane.b32.xlu2 %v5327_v15, %s5249_s18 }
  0x24   : > { %218 = vrot.lane.b32.xlu0 %v5333_v20, %s5249_s18  ;;  %220 = vrot.lane.b32.xlu1 %v5335_v21, %s5249_s18 }
  0x25   : > { %222 = vrot.lane.b32.xlu2 %v5337_v22, %s5249_s18 }
  0x2c   : > { %224 = vrot.lane.b32.xlu0 %v5342_v24, %s5249_s18  ;;  %534 = vrot.lane.b32.xlu1 %v5315_v7, %s5250_s19  ;;  %s5261_s18 = smov 53  }
  0x2d   : > { %536 = vrot.lane.b32.xlu2 %v5322_v12, %s5250_s19 }
  0x34   : > { %540 = vrot.lane.b32.xlu1 %v5324_v13, %s5250_s19  ;;  %538 = vrot.lane.b32.xlu0 %v5313_v6, %s5250_s19 }
  0x35   : > { %542 = vrot.lane.b32.xlu2 %v5317_v8, %s5250_s19 }
  0x3c   : > { %544 = vrot.lane.b32.xlu0 %v5327_v15, %s5250_s19  ;;  %546 = vrot.lane.b32.xlu1 %v5333_v20, %s5250_s19 }
  0x3d   : > { %548 = vrot.lane.b32.xlu2 %v5335_v21, %s5250_s19 }
  0x44   : > { %550 = vrot.lane.b32.xlu0 %v5337_v22, %s5250_s19  ;;  %552 = vrot.lane.b32.xlu1 %v5342_v24, %s5250_s19 }
  0x45   : > { %722 = vrot.lane.b32.xlu2 %v5315_v7, %s5251_s20 }
  0x4c   : > { %726 = vrot.lane.b32.xlu1 %v5313_v6, %s5251_s20  ;;  %724 = vrot.lane.b32.xlu0 %v5322_v12, %s5251_s20 }
  0x4d   : > { %728 = vrot.lane.b32.xlu2 %v5324_v13, %s5251_s20 }
  0x54   : > { %730 = vrot.lane.b32.xlu0 %v5317_v8, %s5251_s20  ;;  %732 = vrot.lane.b32.xlu1 %v5327_v15, %s5251_s20 }
  0x55   : > { %734 = vrot.lane.b32.xlu2 %v5333_v20, %s5251_s20 }
  0x5c   : > { %736 = vrot.lane.b32.xlu0 %v5335_v21, %s5251_s20  ;;  %738 = vrot.lane.b32.xlu1 %v5337_v22, %s5251_s20 }
  0x5d   : > { %740 = vrot.lane.b32.xlu2 %v5342_v24, %s5251_s20 }
  0x64   : > { %912 = vrot.lane.b32.xlu1 %v5322_v12, %s5252_s21  ;;  %910 = vrot.lane.b32.xlu0 %v5315_v7, %s5252_s21 }
  0x65   : > { %914 = vrot.lane.b32.xlu2 %v5313_v6, %s5252_s21 }
  0x6c   : > { %916 = vrot.lane.b32.xlu0 %v5324_v13, %s5252_s21  ;;  %918 = vrot.lane.b32.xlu1 %v5317_v8, %s5252_s21 }
  0x6d   : > { %920 = vrot.lane.b32.xlu2 %v5327_v15, %s5252_s21 }
  0x6f   : > { %v215_v25 = vpop.permute.xlu2 %214 }
  0x74   : > { %922 = vrot.lane.b32.xlu0 %v5333_v20, %s5252_s21  ;;  %924 = vrot.lane.b32.xlu1 %v5335_v21, %s5252_s21 }
  0x75   : > { %926 = vrot.lane.b32.xlu2 %v5337_v22, %s5252_s21 }
  0x77   : > { %v217_v28 = vpop.permute.xlu2 %216 }
  0x78   : > { %v231_v29 = vsel %vm226_vm0, %v215_v25, %v217_v28 }
  0x79   : > { %v254_v32 = vsel %vm240_vm1, %v231_v29, 0 }
  0x7c   : > { %928 = vrot.lane.b32.xlu0 %v5342_v24, %s5252_s21  ;;  %1100 = vrot.lane.b32.xlu1 %v5322_v12, %s5253_s22  ;;  %s5262_s21 = smov 52  }
  0x7d   : > { %1102 = vrot.lane.b32.xlu2 %v5313_v6, %s5253_s22 }
  0x7f   : > { %v223_v42 = vpop.permute.xlu2 %222 }
  0x84   : > { %1098 = vrot.lane.b32.xlu1 %v5315_v7, %s5253_s22  ;;  %1104 = vrot.lane.b32.xlu0 %v5324_v13, %s5253_s22 }
  0x85   : > { %1106 = vrot.lane.b32.xlu2 %v5317_v8, %s5253_s22 }
  0x86   : > { %v211_v26 = vpop.permute.xlu1 %210  ;;  %v207_v27 = vpop.permute.xlu0 %206 }
  0x87   : > { %v537_v62 = vpop.permute.xlu2 %536 }
  0x8c   : > { %1110 = vrot.lane.b32.xlu1 %v5333_v20, %s5253_s22  ;;  %1108 = vrot.lane.b32.xlu0 %v5327_v15, %s5253_s22 }
  0x8d   : > { %1112 = vrot.lane.b32.xlu2 %v5335_v21, %s5253_s22 }
  0x8e   : > { %v213_v30 = vpop.permute.xlu1 %212  ;;  %v209_v31 = vpop.permute.xlu0 %208 }
  0x8f   : > { %v227_v33 = vsel %vm226_vm0, %v207_v27, %v209_v31  ;;  %v228_v34 = vsel %vm226_vm0, %v209_v31, %v211_v26  ;;  %v229_v35 = vsel %vm226_vm0, %v211_v26, %v213_v30  ;;  %v230_v36 = vsel %vm226_vm0, %v213_v30, %v215_v25  ;;  %v543_v11 = vpop.permute.xlu2 %542 }
  0x90   : > { %v242_v37 = vsel %vm240_vm1, %v227_v33, 0  ;;  %v245_v38 = vsel %vm240_vm1, %v228_v34, 0  ;;  %v248_v39 = vsel %vm240_vm1, %v229_v35, 0  ;;  %v251_v40 = vsel %vm240_vm1, %v230_v36, 0 }
  0x91   : > { %275 = vmatpush.bf16.msra.mxu0 %v242_v37  ;;  %288 = vmatpush.bf16.msra.mxu1 %v245_v38  ;;  %v5536_v38 = vld [vmem:[%s7371_s1 + $0x8] sm:$0xf] }
  0x92   : > { %301 = vmatpush.bf16.msra.mxu2 %v248_v39  ;;  %314 = vmatpush.bf16.msra.mxu3 %v251_v40 }
  0x94   : > { %4955 = vmatmul.msk.bf16.vlgmr.msra.gmra.mxu0 %vm236_vm2, %v5404_v41  ;;  %4956 = vmatmul.msk.bf16.vlgmr.msra.gmra.mxu1 %vm236_vm2, %v5404_v41 }
  0x95   : > { %327 = vmatpush.bf16.msrb.mxu0 %v254_v32  ;;  %4957 = vmatmul.msk.bf16.vlgmr.msra.gmra.mxu2 %vm236_vm2, %v5404_v41 }
  0x96   : > { %4958 = vmatmul.msk.bf16.vlgmr.msra.gmra.mxu3 %vm236_vm2, %v5404_v41  ;;  %v219_v43 = vpop.permute.xlu0 %218  ;;  %v221_v44 = vpop.permute.xlu1 %220  ;;  %1286 = vrot.lane.b32.xlu1 %v5315_v7, %s5254_s25 }
  0x97   : > { %1114 = vrot.lane.b32.xlu0 %v5337_v22, %s5253_s22  ;;  %v232_v46 = vsel %vm226_vm0, %v217_v28, %v219_v43  ;;  %v233_v47 = vsel %vm226_vm0, %v219_v43, %v221_v44  ;;  %v234_v48 = vsel %vm226_vm0, %v221_v44, %v223_v42  ;;  %1288 = vrot.lane.b32.xlu2 %v5322_v12, %s5254_s25  ;;  %v549_v27 = vpop.permute.xlu2 %548 }
  0x98   : > { %v257_v50 = vsel %vm240_vm1, %v232_v46, 0  ;;  %v260_v51 = vsel %vm240_vm1, %v233_v47, 0  ;;  %v263_v52 = vsel %vm240_vm1, %v234_v48, 0 }
  0x99   : > { %340 = vmatpush.bf16.msrb.mxu1 %v257_v50  ;;  %353 = vmatpush.bf16.msrb.mxu2 %v260_v51 }
  0x9a   : > { %366 = vmatpush.bf16.msrb.mxu3 %v263_v52 }
  0x9d   : > { %435 = vmatpush.bf16.msra.mxu2 %v392_v45  ;;  %422 = vmatpush.bf16.msra.mxu1 %v389_v53 }
  0x9e   : > { %448 = vmatpush.bf16.msra.mxu3 %v395_v49  ;;  %v225_v54 = vpop.permute.xlu0 %224  ;;  %1116 = vrot.lane.b32.xlu1 %v5342_v24, %s5253_s22  ;;  %v535_v61 = vpop.permute.xlu1 %534 }
  0x9f   : > { %1290 = vrot.lane.b32.xlu0 %v5313_v6, %s5254_s25  ;;  %v235_v55 = vsel %vm226_vm0, %v223_v42, %v225_v54  ;;  %1292 = vrot.lane.b32.xlu2 %v5324_v13, %s5254_s25  ;;  %v555_v0 = vsel %vm554_vm3, %v535_v61, %v537_v62  ;;  %v723_v32 = vpop.permute.xlu2 %722  ;;  %vm2998_vm0 = vcmask 162816  }
  0xa0   : > { %v266_v56 = vsel %vm240_vm1, %v235_v55, 0  ;;  %v568_v4 = vsel %vm240_vm1, %v555_v0, 0 }
  0xa1   : > { %379 = vmatpush.bf16.msra.mxu0 %v266_v56 }
  0xa4   : > { %4959 = vmatmul.msk.bf16.vlgmr.msrb.gmra.mxu0 %vm236_vm2, %v5404_v41  ;;  %4960 = vmatmul.msk.bf16.vlgmr.msrb.gmra.mxu1 %vm236_vm2, %v5404_v41 }
  0xa5   : > { %4961 = vmatmul.msk.bf16.vlgmr.msrb.gmra.mxu2 %vm236_vm2, %v5404_v41  ;;  %461 = vmatpush.bf16.msrb.mxu0 %v398_v57 }
  0xa6   : > { %4962 = vmatmul.msk.bf16.vlgmr.msrb.gmra.mxu3 %vm236_vm2, %v5404_v41  ;;  %487 = vmatpush.bf16.msrb.mxu2 %v404_v58  ;;  %v539_v63 = vpop.permute.xlu0 %538  ;;  %v541_v5 = vpop.permute.xlu1 %540 }
  0xa7   : > { %500 = vmatpush.bf16.msrb.mxu3 %v407_v59  ;;  %474 = vmatpush.bf16.msrb.mxu1 %v401_v60  ;;  %v556_v2 = vsel %vm554_vm3, %v537_v62, %v539_v63  ;;  %v557_v17 = vsel %vm554_vm3, %v539_v63, %v541_v5  ;;  %v558_v18 = vsel %vm554_vm3, %v541_v5, %v543_v11  ;;  %v729_v44 = vpop.permute.xlu2 %728  ;;  %v5597_v63 = vld [vmem:[%s7371_s1 + $0xc] sm:$0xf] }
  0xa8   : > { %1294 = vrot.lane.b32.xlu0 %v5317_v8, %s5254_s25  ;;  %1296 = vrot.lane.b32.xlu1 %v5327_v15, %s5254_s25  ;;  %v571_v9 = vsel %vm240_vm1, %v556_v2, 0  ;;  %v574_v25 = vsel %vm240_vm1, %v557_v17, 0  ;;  %v577_v26 = vsel %vm240_vm1, %v558_v18, 0 }
  0xa9   : > { %1298 = vrot.lane.b32.xlu2 %v5333_v20, %s5254_s25 }
  0xae   : > { %v545_v14 = vpop.permute.xlu0 %544  ;;  %v547_v16 = vpop.permute.xlu1 %546 }
  0xaf   : > { %v559_v19 = vsel %vm554_vm3, %v543_v11, %v545_v14  ;;  %v560_v23 = vsel %vm554_vm3, %v545_v14, %v547_v16  ;;  %v561_v34 = vsel %vm554_vm3, %v547_v16, %v549_v27  ;;  %v735_v53 = vpop.permute.xlu2 %734 }
  0xb0   : > { %1300 = vrot.lane.b32.xlu0 %v5335_v21, %s5254_s25  ;;  %1302 = vrot.lane.b32.xlu1 %v5337_v22, %s5254_s25  ;;  %v580_v28 = vsel %vm240_vm1, %v559_v19, 0  ;;  %v583_v29 = vsel %vm240_vm1, %v560_v23, 0  ;;  %v586_v39 = vsel %vm240_vm1, %v561_v34, 0 }
  0xb1   : > { %1304 = vrot.lane.b32.xlu2 %v5342_v24, %s5254_s25 }
  0xb4   : > { %4963 = vmatmul.msk.bf16.vlgmr.msra.gmra.mxu0 %vm236_vm2, %v5404_v41  ;;  %4964 = vmatmul.msk.bf16.vlgmr.msra.gmra.mxu1 %vm236_vm2, %v5470_v1 }
  0xb5   : > { %4965 = vmatmul.msk.bf16.vlgmr.msra.gmra.mxu2 %vm236_vm2, %v5470_v1  ;;  %513 = vmatpush.bf16.msra.mxu0 %v410_v3 }
  0xb6   : > { %4966 = vmatmul.msk.bf16.vlgmr.msra.gmra.mxu3 %vm236_vm2, %v5470_v1  ;;  %601 = vmatpush.bf16.msra.mxu2 %v568_v4  ;;  %v551_v30 = vpop.permute.xlu0 %550  ;;  %v553_v31 = vpop.permute.xlu1 %552 }
  0xb7   : > { %614 = vmatpush.bf16.msra.mxu3 %v571_v9  ;;  %526 = vmatpush.bf16.msra.mxu1 %v413_v10  ;;  %v562_v35 = vsel %vm554_vm3, %v549_v27, %v551_v30  ;;  %v563_v36 = vsel %vm554_vm3, %v551_v30, %v553_v31  ;;  %v741_v58 = vpop.permute.xlu2 %740  ;;  %vm3186_vm3 = vcmask 154624  }
  0xb8   : > { %1474 = vrot.lane.b32.xlu0 %v5315_v7, %s5255_s28  ;;  %1476 = vrot.lane.b32.xlu1 %v5322_v12, %s5255_s28  ;;  %v589_v40 = vsel %vm240_vm1, %v562_v35, 0  ;;  %v592_v41 = vsel %vm240_vm1, %v563_v36, 0 }
  0xb9   : > { %1478 = vrot.lane.b32.xlu2 %v5313_v6, %s5255_s28 }
  0xbe   : > { %v725_v33 = vpop.permute.xlu0 %724  ;;  %v727_v42 = vpop.permute.xlu1 %726 }
  0xbf   : > { %v743_v37 = vsel %vm742_vm4, %v723_v32, %v725_v33  ;;  %v744_v47 = vsel %vm742_vm4, %v725_v33, %v727_v42  ;;  %v745_v48 = vsel %vm742_vm4, %v727_v42, %v729_v44  ;;  %v915_v9 = vpop.permute.xlu2 %914 }
  0xc0   : > { %1480 = vrot.lane.b32.xlu0 %v5324_v13, %s5255_s28  ;;  %1482 = vrot.lane.b32.xlu1 %v5317_v8, %s5255_s28  ;;  %v756_v43 = vsel %vm240_vm1, %v743_v37, 0  ;;  %v759_v51 = vsel %vm240_vm1, %v744_v47, 0  ;;  %v762_v52 = vsel %vm240_vm1, %v745_v48, 0 }
  0xc1   : > { %1484 = vrot.lane.b32.xlu2 %v5327_v15, %s5255_s28 }
  0xc4   : > { %4967 = vmatmul.msk.bf16.vlgmr.msrb.gmra.mxu0 %vm236_vm2, %v5470_v1  ;;  %4968 = vmatmul.msk.bf16.vlgmr.msrb.gmra.mxu1 %vm236_vm2, %v5470_v1 }
  0xc5   : > { %4969 = vmatmul.msk.bf16.vlgmr.msrb.gmra.mxu2 %vm236_vm2, %v5470_v1  ;;  %627 = vmatpush.bf16.msrb.mxu0 %v574_v25 }
  0xc6   : > { %4970 = vmatmul.msk.bf16.vlgmr.msrb.gmra.mxu3 %vm236_vm2, %v5470_v1  ;;  %640 = vmatpush.bf16.msrb.mxu1 %v577_v26  ;;  %v731_v45 = vpop.permute.xlu0 %730  ;;  %v733_v46 = vpop.permute.xlu1 %732 }
  0xc7   : > { %653 = vmatpush.bf16.msrb.mxu2 %v580_v28  ;;  %666 = vmatpush.bf16.msrb.mxu3 %v583_v29  ;;  %v746_v49 = vsel %vm742_vm4, %v729_v44, %v731_v45  ;;  %v747_v50 = vsel %vm742_vm4, %v731_v45, %v733_v46  ;;  %v748_v59 = vsel %vm742_vm4, %v733_v46, %v735_v53  ;;  %v921_v25 = vpop.permute.xlu2 %920 }
  0xc8   : > { %1486 = vrot.lane.b32.xlu0 %v5333_v20, %s5255_s28  ;;  %1488 = vrot.lane.b32.xlu1 %v5335_v21, %s5255_s28  ;;  %v765_v54 = vsel %vm240_vm1, %v746_v49, 0  ;;  %v768_v55 = vsel %vm240_vm1, %v747_v50, 0  ;;  %v771_v0 = vsel %vm240_vm1, %v748_v59, 0 }
  0xc9   : > { %1490 = vrot.lane.b32.xlu2 %v5337_v22, %s5255_s28 }
  0xce   : > { %v737_v56 = vpop.permute.xlu0 %736  ;;  %v739_v57 = vpop.permute.xlu1 %738 }
  0xcf   : > { %v749_v60 = vsel %vm742_vm4, %v735_v53, %v737_v56  ;;  %v750_v61 = vsel %vm742_vm4, %v737_v56, %v739_v57  ;;  %v751_v62 = vsel %vm742_vm4, %v739_v57, %v741_v58  ;;  %v927_v30 = vpop.permute.xlu2 %926  ;;  %v5694_v56 = vld [vmem:[%s7371_s1 + $0x10] sm:$0xf]  ;;  %vm3374_vm4 = vcmask 146432  }
  0xd0   : > { %1492 = vrot.lane.b32.xlu0 %v5342_v24, %s5255_s28  ;;  %1662 = vrot.lane.b32.xlu1 %v5315_v7, %s5256_s29  ;;  %v777_v2 = vsel %vm240_vm1, %v750_v61, 0  ;;  %v780_v3 = vsel %vm240_vm1, %v751_v62, 0  ;;  %s5272_s28 = smov 108  }
  0xd1   : > { %1664 = vrot.lane.b32.xlu2 %v5322_v12, %s5256_s29 }
  0xd4   : > { %4971 = vmatmul.msk.bf16.vlgmr.msra.gmra.mxu0 %vm236_vm2, %v5470_v1  ;;  %4972 = vmatmul.msk.bf16.vlgmr.msra.gmra.mxu1 %vm236_vm2, %v5470_v1  ;;  %v774_v1 = vsel %vm240_vm1, %v749_v60, 0 }
  0xd5   : > { %4974 = vmatmul.msk.bf16.vlgmr.msra.gmra.mxu2 %vm236_vm2, %v5536_v38  ;;  %679 = vmatpush.bf16.msra.mxu0 %v586_v39 }
  0xd6   : > { %4975 = vmatmul.msk.bf16.vlgmr.msra.gmra.mxu3 %vm236_vm2, %v5536_v38  ;;  %692 = vmatpush.bf16.msra.mxu1 %v589_v40  ;;  %v913_v4 = vpop.permute.xlu1 %912  ;;  %v911_v5 = vpop.permute.xlu0 %910 }
  0xd7   : > { %705 = vmatpush.bf16.msra.mxu2 %v592_v41  ;;  %789 = vmatpush.bf16.msra.mxu3 %v756_v43  ;;  %v932_v14 = vsel %vm930_vm5, %v913_v4, %v915_v9  ;;  %v931_v16 = vsel %vm930_vm5, %v911_v5, %v913_v4  ;;  %v1103_v47 = vpop.permute.xlu2 %1102 }
  0xd8   : > { %1666 = vrot.lane.b32.xlu0 %v5313_v6, %s5256_s29  ;;  %1668 = vrot.lane.b32.xlu1 %v5324_v13, %s5256_s29  ;;  %v944_v19 = vsel %vm240_vm1, %v931_v16, 0  ;;  %v947_v23 = vsel %vm240_vm1, %v932_v14, 0 }
  0xd9   : > { %1670 = vrot.lane.b32.xlu2 %v5317_v8, %s5256_s29 }
  0xde   : > { %v917_v10 = vpop.permute.xlu0 %916  ;;  %v919_v11 = vpop.permute.xlu1 %918 }
  0xdf   : > { %v933_v17 = vsel %vm930_vm5, %v915_v9, %v917_v10  ;;  %v934_v18 = vsel %vm930_vm5, %v917_v10, %v919_v11  ;;  %v935_v31 = vsel %vm930_vm5, %v919_v11, %v921_v25  ;;  %v1107_v61 = vpop.permute.xlu2 %1106 }
  0xe0   : > { %1672 = vrot.lane.b32.xlu0 %v5327_v15, %s5256_s29  ;;  %1674 = vrot.lane.b32.xlu1 %v5333_v20, %s5256_s29  ;;  %v950_v26 = vsel %vm240_vm1, %v933_v17, 0  ;;  %v953_v27 = vsel %vm240_vm1, %v934_v18, 0  ;;  %v956_v37 = vsel %vm240_vm1, %v935_v31, 0 }
  0xe1   : > { %1676 = vrot.lane.b32.xlu2 %v5335_v21, %s5256_s29 }
  0xe4   : > { %4976 = vmatmul.msk.bf16.vlgmr.msrb.gmra.mxu0 %vm236_vm2, %v5536_v38  ;;  %4977 = vmatmul.msk.bf16.vlgmr.msrb.gmra.mxu1 %vm236_vm2, %v5536_v38 }
  0xe5   : > { %4978 = vmatmul.msk.bf16.vlgmr.msrb.gmra.mxu2 %vm236_vm2, %v5536_v38  ;;  %802 = vmatpush.bf16.msrb.mxu0 %v759_v51 }
  0xe6   : > { %4979 = vmatmul.msk.bf16.vlgmr.msrb.gmra.mxu3 %vm236_vm2, %v5536_v38  ;;  %815 = vmatpush.bf16.msrb.mxu1 %v762_v52  ;;  %v925_v28 = vpop.permute.xlu1 %924  ;;  %v923_v29 = vpop.permute.xlu0 %922 }
  0xe7   : > { %828 = vmatpush.bf16.msrb.mxu2 %v765_v54  ;;  %841 = vmatpush.bf16.msrb.mxu3 %v768_v55  ;;  %v936_v32 = vsel %vm930_vm5, %v921_v25, %v923_v29  ;;  %v937_v35 = vsel %vm930_vm5, %v923_v29, %v925_v28  ;;  %v938_v36 = vsel %vm930_vm5, %v925_v28, %v927_v30  ;;  %v1113_v9 = vpop.permute.xlu2 %1112 }
  0xe8   : > { %1680 = vrot.lane.b32.xlu1 %v5342_v24, %s5256_s29  ;;  %1678 = vrot.lane.b32.xlu0 %v5337_v22, %s5256_s29  ;;  %v962_v41 = vsel %vm240_vm1, %v937_v35, 0  ;;  %v965_v42 = vsel %vm240_vm1, %v938_v36, 0 }
  0xe9   : > { %1852 = vrot.lane.b32.xlu2 %v5322_v12, %s5257_s5 }
  0xee   : > { %v1101_v39 = vpop.permute.xlu1 %1100  ;;  %v929_v40 = vpop.permute.xlu0 %928 }
  0xef   : > { %v939_v52 = vsel %vm930_vm5, %v927_v30, %v929_v40  ;;  %v1120_v57 = vsel %vm1118_vm6, %v1101_v39, %v1103_v47  ;;  %vm3562_vm5 = vcmask 138240  }
  0xf0   : > { %1854 = vrot.lane.b32.xlu0 %v5313_v6, %s5257_s5  ;;  %1856 = vrot.lane.b32.xlu1 %v5324_v13, %s5257_s5  ;;  %v968_v59 = vsel %vm240_vm1, %v939_v52, 0  ;;  %v1135_v62 = vsel %vm240_vm1, %v1120_v57, 0 }
  0xf1   : > { %1850 = vrot.lane.b32.xlu2 %v5315_v7, %s5257_s5 }
  0xf4   : > { %4980 = vmatmul.msk.bf16.vlgmr.msra.gmra.mxu0 %vm236_vm2, %v5536_v38  ;;  %4981 = vmatmul.msk.bf16.vlgmr.msra.gmra.mxu1 %vm236_vm2, %v5536_v38 }
  0xf5   : > { %4982 = vmatmul.msk.bf16.vlgmr.msra.gmra.mxu2 %vm236_vm2, %v5536_v38  ;;  %854 = vmatpush.bf16.msra.mxu0 %v771_v0  ;;  %v959_v38 = vsel %vm240_vm1, %v936_v32, 0 }
  0xf6   : > { %4984 = vmatmul.msk.bf16.vlgmr.msra.gmra.mxu3 %vm236_vm2, %v5597_v63  ;;  %867 = vmatpush.bf16.msra.mxu1 %v774_v1  ;;  %v1099_v48 = vpop.permute.xlu1 %1098  ;;  %v1105_v49 = vpop.permute.xlu0 %1104 }
  0xf7   : > { %880 = vmatpush.bf16.msra.mxu2 %v777_v2  ;;  %893 = vmatpush.bf16.msra.mxu3 %v780_v3  ;;  %v1119_v53 = vsel %vm1118_vm6, %v1099_v48, %v1101_v39  ;;  %v1121_v58 = vsel %vm1118_vm6, %v1103_v47, %v1105_v49  ;;  %v1122_v14 = vsel %vm1118_vm6, %v1105_v49, %v1107_v61  ;;  %v1289_v39 = vpop.permute.xlu2 %1288  ;;  %v5770_v48 = vld [vmem:[%s7371_s1 + $0x14] sm:$0xf] }
  0xf8   : > { %1858 = vrot.lane.b32.xlu0 %v5317_v8, %s5257_s5  ;;  %1860 = vrot.lane.b32.xlu1 %v5327_v15, %s5257_s5  ;;  %v1132_v60 = vsel %vm240_vm1, %v1119_v53, 0 }
  0xf9   : > { %1862 = vrot.lane.b32.xlu2 %v5333_v20, %s5257_s5 }
  0xfe   : > { %v1111_v0 = vpop.permute.xlu1 %1110  ;;  %v1109_v5 = vpop.permute.xlu0 %1108 }
  0xff   : > { %v1123_v16 = vsel %vm1118_vm6, %v1107_v61, %v1109_v5 }
 0x100   : > { %1866 = vrot.lane.b32.xlu1 %v5337_v22, %s5257_s5  ;;  %1864 = vrot.lane.b32.xlu0 %v5335_v21, %s5257_s5 }
 0x101   : > { %2038 = vrot.lane.b32.xlu2 %v5315_v7, %s5258_s8 }
 0x104   : > { %4985 = vmatmul.msk.bf16.vlgmr.msrb.gmra.mxu0 %vm236_vm2, %v5597_v63  ;;  %4986 = vmatmul.msk.bf16.vlgmr.msrb.gmra.mxu1 %vm236_vm2, %v5597_v63 }
 0x105   : > { %4987 = vmatmul.msk.bf16.vlgmr.msrb.gmra.mxu2 %vm236_vm2, %v5597_v63  ;;  %977 = vmatpush.bf16.msrb.mxu0 %v944_v19  ;;  %v1124_v19 = vsel %vm1118_vm6, %v1109_v5, %v1111_v0 }
 0x106   : > { %4988 = vmatmul.msk.bf16.vlgmr.msrb.gmra.mxu3 %vm236_vm2, %v5597_v63  ;;  %990 = vmatpush.bf16.msrb.mxu1 %v947_v23  ;;  %v1125_v23 = vsel %vm1118_vm6, %v1111_v0, %v1113_v9  ;;  %v1147_v30 = vsel %vm240_vm1, %v1124_v19, 0 }
 0x107   : > { %1003 = vmatpush.bf16.msrb.mxu2 %v950_v26  ;;  %1016 = vmatpush.bf16.msrb.mxu3 %v953_v27  ;;  %v1141_v26 = vsel %vm240_vm1, %v1122_v14, 0  ;;  %v1144_v27 = vsel %vm240_vm1, %v1123_v16, 0  ;;  %v1150_v31 = vsel %vm240_vm1, %v1125_v23, 0 }
 0x108   : > { %2040 = vrot.lane.b32.xlu0 %v5322_v12, %s5258_s8  ;;  %2042 = vrot.lane.b32.xlu1 %v5313_v6, %s5258_s8  ;;  %v1287_v28 = vpop.permute.xlu1 %1286 }
 0x109   : > { %1868 = vrot.lane.b32.xlu2 %v5342_v24, %s5257_s5  ;;  %v1115_v29 = vpop.permute.xlu0 %1114  ;;  %v1307_v49 = vsel %vm1306_vm7, %v1287_v28, %v1289_v39 }
 0x110   : > { %2044 = vrot.lane.b32.xlu0 %v5324_v13, %s5258_s8  ;;  %2046 = vrot.lane.b32.xlu1 %v5317_v8, %s5258_s8  ;;  %v1117_v40 = vpop.permute.xlu1 %1116 }
 0x111   : > { %v5651_v33 = vpop.f32.mrf.mxu0  ;;  %v5653_v34 = vpop.f32.mrf.mxu1  ;;  %2048 = vrot.lane.b32.xlu2 %v5327_v15, %s5258_s8 }
 0x114   : > { %4989 = vmatmul.msk.bf16.vlgmr.msra.gmra.mxu0 %vm236_vm2, %v5597_v63  ;;  %4990 = vmatmul.msk.bf16.vlgmr.msra.gmra.mxu1 %vm236_vm2, %v5597_v63 }
 0x115   : > { %4991 = vmatmul.msk.bf16.vlgmr.msra.gmra.mxu2 %vm236_vm2, %v5597_v63  ;;  %1029 = vmatpush.bf16.msra.mxu0 %v956_v37 }
 0x116   : > { %4992 = vmatmul.msk.bf16.vlgmr.msra.gmra.mxu3 %vm236_vm2, %v5597_v63  ;;  %1042 = vmatpush.bf16.msra.mxu1 %v959_v38  ;;  %v1138_v63 = vsel %vm240_vm1, %v1121_v58, 0  ;;  %v1293_v58 = vpop.permute.xlu2 %1292 }
 0x117   : > { %1055 = vmatpush.bf16.msra.mxu2 %v962_v41  ;;  %1068 = vmatpush.bf16.msra.mxu3 %v965_v42  ;;  %v1291_v41 = vpop.permute.xlu0 %1290 }
 0x118   : > { %v5671_v43 = vpop.f32.mrf.mxu2  ;;  %2052 = vrot.lane.b32.xlu1 %v5335_v21, %s5258_s8  ;;  %2050 = vrot.lane.b32.xlu0 %v5333_v20, %s5258_s8 }
 0x119   : > { %v5673_v44 = vpop.f32.mrf.mxu3  ;;  %v279_v45 = vpop.f32.mrf.mxu0  ;;  %2054 = vrot.lane.b32.xlu2 %v5337_v22, %s5258_s8 }
 0x11a   : > { %v292_v46 = vpop.f32.mrf.mxu1 }
 0x11b   : > { %v1126_v46 = vsel %vm1118_vm6, %v1113_v9, %v1115_v29 }
 0x11c   : > { %v1153_v53 = vsel %vm240_vm1, %v1126_v46, 0 }
 0x11f   : > { %v1295_v0 = vpop.permute.xlu0 %1294 }
 0x120   : > { %v305_v50 = vpop.f32.mrf.mxu2  ;;  %2056 = vrot.lane.b32.xlu0 %v5342_v24, %s5258_s8  ;;  %2226 = vrot.lane.b32.xlu1 %v5315_v7, %s5259_s9 }
 0x121   : > { %v318_v51 = vpop.f32.mrf.mxu3  ;;  %v5687_v54 = vpop.f32.mrf.mxu0  ;;  %2228 = vrot.lane.b32.xlu2 %v5322_v12, %s5259_s9  ;;  %v1308_v50 = vsel %vm1306_vm7, %v1289_v39, %v1291_v41 }
 0x122   : > { %v5689_v55 = vpop.f32.mrf.mxu1 }
 0x124   : > { %4994 = vmatmul.msk.bf16.vlgmr.msrb.gmra.mxu0 %vm236_vm2, %v5694_v56  ;;  %4995 = vmatmul.msk.bf16.vlgmr.msrb.gmra.mxu1 %vm236_vm2, %v5694_v56 }
 0x125   : > { %4996 = vmatmul.msk.bf16.vlgmr.msrb.gmra.mxu2 %vm236_vm2, %v5694_v56  ;;  %1081 = vmatpush.bf16.msrb.mxu0 %v968_v59  ;;  %v1323_v59 = vsel %vm240_vm1, %v1308_v50, 0  ;;  %v5859_v50 = vld [vmem:[%s7371_s1 + $0x18] sm:$0xf] }
 0x126   : > { %4997 = vmatmul.msk.bf16.vlgmr.msrb.gmra.mxu3 %vm236_vm2, %v5694_v56  ;;  %1165 = vmatpush.bf16.msrb.mxu1 %v1132_v60 }
 0x127   : > { %1178 = vmatpush.bf16.msrb.mxu2 %v1135_v62  ;;  %1191 = vmatpush.bf16.msrb.mxu3 %v1138_v63 }
 0x128   : > { %v5714_v2 = vpop.f32.mrf.mxu2  ;;  %2230 = vrot.lane.b32.xlu0 %v5313_v6, %s5259_s9  ;;  %2232 = vrot.lane.b32.xlu1 %v5324_v13, %s5259_s9 }
 0x129   : > { %v5712_v1 = vpop.f32.mrf.mxu3  ;;  %v331_v3 = vpop.f32.mrf.mxu0  ;;  %2234 = vrot.lane.b32.xlu2 %v5317_v8, %s5259_s9 }
 0x12a   : > { %v344_v4 = vpop.f32.mrf.mxu1  ;;  %v1297_v3 = vpop.permute.xlu1 %1296 }
 0x12b   : > { %v1299_v4 = vpop.permute.xlu2 %1298  ;;  %v1311_v14 = vsel %vm1306_vm7, %v1295_v0, %v1297_v3 }
 0x12c   : > { %v1312_v16 = vsel %vm1306_vm7, %v1297_v3, %v1299_v4 }
 0x12d   : > { %v1335_v28 = vsel %vm240_vm1, %v1312_v16, 0 }
 0x130   : > { %v357_v11 = vpop.f32.mrf.mxu2  ;;  %2238 = vrot.lane.b32.xlu1 %v5333_v20, %s5259_s9  ;;  %2236 = vrot.lane.b32.xlu0 %v5327_v15, %s5259_s9 }
 0x131   : > { %v370_v10 = vpop.f32.mrf.mxu3  ;;  %v5728_v17 = vpop.f32.mrf.mxu0  ;;  %2240 = vrot.lane.b32.xlu2 %v5335_v21, %s5259_s9  ;;  %v1310_v11 = vsel %vm1306_vm7, %v1293_v58, %v1295_v0 }
 0x132   : > { %v424_v18 = vpop.f32.mrf.mxu1  ;;  %v1309_v10 = vsel %vm1306_vm7, %v1291_v41, %v1293_v58 }
 0x133   : > { %v5735_v25 = vadd.f32 %v424_v18, %v5651_v33  ;;  %v1326_v23 = vsel %vm240_vm1, %v1309_v10, 0 }
 0x134   : > { %4998 = vmatmul.msk.bf16.vlgmr.msra.gmra.mxu0 %vm236_vm2, %v5694_v56  ;;  %4999 = vmatmul.msk.bf16.vlgmr.msra.gmra.mxu1 %vm236_vm2, %v5694_v56 }
 0x135   : > { %5000 = vmatmul.msk.bf16.vlgmr.msra.gmra.mxu2 %vm236_vm2, %v5694_v56  ;;  %1204 = vmatpush.bf16.msra.mxu0 %v1141_v26  ;;  %v1329_v26 = vsel %vm240_vm1, %v1310_v11, 0 }
 0x136   : > { %5001 = vmatmul.msk.bf16.vlgmr.msra.gmra.mxu3 %vm236_vm2, %v5694_v56  ;;  %1217 = vmatpush.bf16.msra.mxu1 %v1144_v27  ;;  %v1301_v27 = vpop.permute.xlu0 %1300 }
 0x137   : > { %1230 = vmatpush.bf16.msra.mxu2 %v1147_v30  ;;  %1243 = vmatpush.bf16.msra.mxu3 %v1150_v31 }
 0x138   : > { %v437_v33 = vpop.f32.mrf.mxu2  ;;  %2244 = vrot.lane.b32.xlu1 %v5342_v24, %s5259_s9  ;;  %2242 = vrot.lane.b32.xlu0 %v5337_v22, %s5259_s9  ;;  %s5267_s9 = smov 16  }
 0x139   : > { %v450_v32 = vpop.f32.mrf.mxu3  ;;  %v5757_v36 = vadd.f32 %v437_v33, %v5653_v34  ;;  %v383_v37 = vpop.f32.mrf.mxu0  ;;  %2414 = vrot.lane.b32.xlu2 %v5315_v7, %s5260_s14 }
 0x13a   : > { %v5754_v35 = vadd.f32 %v450_v32, %v5671_v43  ;;  %v426_v38 = vpop.f32.mrf.mxu1  ;;  %v1127_v43 = vsel %vm1118_vm6, %v1115_v29, %v1117_v40  ;;  %vm3750_vm6 = vcmask 130048  }
 0x13b   : > { %v1156_v57 = vsel %vm240_vm1, %v1127_v43, 0  ;;  %v1305_v38 = vpop.permute.xlu2 %1304 }
 0x13e   : > { %v1475_v39 = vpop.permute.xlu0 %1474 }
 0x140   : > { %v439_v45 = vpop.f32.mrf.mxu2  ;;  %2418 = vrot.lane.b32.xlu1 %v5313_v6, %s5260_s14  ;;  %2416 = vrot.lane.b32.xlu0 %v5322_v12, %s5260_s14 }
 0x141   : > { %v452_v42 = vpop.f32.mrf.mxu3  ;;  %v463_v34 = vpop.f32.mrf.mxu0  ;;  %2420 = vrot.lane.b32.xlu2 %v5324_v13, %s5260_s14 }
 0x142   : > { %v476_v47 = vpop.f32.mrf.mxu1  ;;  %v5775_v51 = vadd.f32 %v463_v34, %v5673_v44  ;;  %v1320_v44 = vsel %vm240_vm1, %v1307_v49, 0 }
 0x143   : > { %v5778_v52 = vadd.f32 %v476_v47, %v5687_v54 }
 0x144   : > { %5002 = vmatmul.msk.bf16.vlgmr.msrb.gmra.mxu0 %vm236_vm2, %v5694_v56  ;;  %5004 = vmatmul.msk.bf16.vlgmr.msrb.gmra.mxu1 %vm236_vm2, %v5770_v48 }
 0x145   : > { %5005 = vmatmul.msk.bf16.vlgmr.msrb.gmra.mxu2 %vm236_vm2, %v5770_v48  ;;  %1256 = vmatpush.bf16.msrb.mxu0 %v1153_v53 }
 0x146   : > { %5006 = vmatmul.msk.bf16.vlgmr.msrb.gmra.mxu3 %vm236_vm2, %v5770_v48  ;;  %1269 = vmatpush.bf16.msrb.mxu1 %v1156_v57 }
 0x147   : > { %1353 = vmatpush.bf16.msrb.mxu2 %v1320_v44  ;;  %1366 = vmatpush.bf16.msrb.mxu3 %v1323_v59 }
 0x148   : > { %v489_v56 = vpop.f32.mrf.mxu2  ;;  %2424 = vrot.lane.b32.xlu1 %v5327_v15, %s5260_s14  ;;  %2422 = vrot.lane.b32.xlu0 %v5317_v8, %s5260_s14 }
 0x149   : > { %v502_v54 = vpop.f32.mrf.mxu3  ;;  %v5802_v61 = vadd.f32 %v489_v56, %v5689_v55  ;;  %v465_v62 = vpop.f32.mrf.mxu0  ;;  %2426 = vrot.lane.b32.xlu2 %v5333_v20, %s5260_s14 }
 0x14a   : > { %v5799_v60 = vadd.f32 %v502_v54, %v5714_v2  ;;  %v478_v63 = vpop.f32.mrf.mxu1 }
 0x14b   : > { %v1481_v63 = vpop.permute.xlu0 %1480 }
 0x150   : > { %v491_v5 = vpop.f32.mrf.mxu2  ;;  %2428 = vrot.lane.b32.xlu0 %v5335_v21, %s5260_s14  ;;  %2430 = vrot.lane.b32.xlu1 %v5337_v22, %s5260_s14 }
 0x151   : > { %v504_v9 = vpop.f32.mrf.mxu3  ;;  %v515_v55 = vpop.f32.mrf.mxu0  ;;  %2432 = vrot.lane.b32.xlu2 %v5342_v24, %s5260_s14  ;;  %s5268_s14 = smov 112  }
 0x152   : > { %v528_v2 = vpop.f32.mrf.mxu1  ;;  %v5815_v18 = vadd.f32 %v515_v55, %v5712_v1  ;;  %v1332_v1 = vsel %vm240_vm1, %v1311_v14, 0 }
 0x153   : > { %v5818_v19 = vadd.f32 %v528_v2, %v5728_v17  ;;  %v1303_v17 = vpop.permute.xlu1 %1302 }
 0x154   : > { %5007 = vmatmul.msk.bf16.vlgmr.msra.gmra.mxu0 %vm236_vm2, %v5770_v48  ;;  %5008 = vmatmul.msk.bf16.vlgmr.msra.gmra.mxu1 %vm236_vm2, %v5770_v48  ;;  %v1314_v42 = vsel %vm1306_vm7, %v1301_v27, %v1303_v17  ;;  %v1315_v43 = vsel %vm1306_vm7, %v1303_v17, %v1305_v38 }
 0x155   : > { %5009 = vmatmul.msk.bf16.vlgmr.msra.gmra.mxu2 %vm236_vm2, %v5770_v48  ;;  %1379 = vmatpush.bf16.msra.mxu0 %v1326_v23  ;;  %v1341_v57 = vsel %vm240_vm1, %v1314_v42, 0 }
 0x156   : > { %5010 = vmatmul.msk.bf16.vlgmr.msra.gmra.mxu3 %vm236_vm2, %v5770_v48  ;;  %1392 = vmatpush.bf16.msra.mxu1 %v1329_v26  ;;  %v1487_v26 = vpop.permute.xlu0 %1486 }
 0x157   : > { %1405 = vmatpush.bf16.msra.mxu2 %v1332_v1  ;;  %1418 = vmatpush.bf16.msra.mxu3 %v1335_v28 }
 0x158   : > { %v603_v29 = vpop.f32.mrf.mxu2  ;;  %2604 = vrot.lane.b32.xlu0 %v5322_v12, %s5261_s18  ;;  %2606 = vrot.lane.b32.xlu1 %v5313_v6, %s5261_s18 }
 0x159   : > { %v616_v30 = vpop.f32.mrf.mxu3  ;;  %v5835_v31 = vadd.f32 %v603_v29, %v5735_v25  ;;  %v517_v33 = vpop.f32.mrf.mxu0  ;;  %2608 = vrot.lane.b32.xlu2 %v5324_v13, %s5261_s18 }
 0x15a   : > { %v5838_v32 = vadd.f32 %v616_v30, %v5757_v36  ;;  %v530_v37 = vpop.f32.mrf.mxu1  ;;  %v1313_v36 = vsel %vm1306_vm7, %v1299_v4, %v1301_v27  ;;  %vm3941_vm7 = vcmask 916480  }
 0x15b   : > { %v1477_v25 = vpop.permute.xlu1 %1476  ;;  %v1338_v53 = vsel %vm240_vm1, %v1313_v36, 0 }
 0x15c   : > { %v1495_v34 = vsel %vm1494_vm8, %v1475_v39, %v1477_v25 }
 0x15d   : > { %v1508_v58 = vsel %vm240_vm1, %v1495_v34, 0 }
 0x15e   : > { %v1493_v38 = vpop.permute.xlu0 %1492 }
 0x160   : > { %v605_v40 = vpop.f32.mrf.mxu2  ;;  %2602 = vrot.lane.b32.xlu0 %v5315_v7, %s5261_s18  ;;  %2610 = vrot.lane.b32.xlu1 %v5317_v8, %s5261_s18 }
 0x161   : > { %v618_v41 = vpop.f32.mrf.mxu3  ;;  %v629_v45 = vpop.f32.mrf.mxu0  ;;  %2612 = vrot.lane.b32.xlu2 %v5327_v15, %s5261_s18 }
 0x162   : > { %v642_v46 = vpop.f32.mrf.mxu1  ;;  %v5851_v47 = vadd.f32 %v629_v45, %v5754_v35  ;;  %v1344_v35 = vsel %vm240_vm1, %v1315_v43, 0  ;;  %v5944_v43 = vld [vmem:[%s7371_s1 + $0x1c] sm:$0xf] }
 0x163   : > { %v5854_v49 = vadd.f32 %v642_v46, %v5775_v51  ;;  %v1479_v51 = vpop.permute.xlu2 %1478  ;;  %v1483_v0 = vpop.permute.xlu1 %1482 }
 0x164   : > { %5011 = vmatmul.msk.bf16.vlgmr.msrb.gmra.mxu0 %vm236_vm2, %v5770_v48  ;;  %5012 = vmatmul.msk.bf16.vlgmr.msrb.gmra.mxu1 %vm236_vm2, %v5770_v48  ;;  %v1496_v5 = vsel %vm1494_vm8, %v1477_v25, %v1479_v51  ;;  %v1498_v11 = vsel %vm1494_vm8, %v1481_v63, %v1483_v0 }
 0x165   : > { %5014 = vmatmul.msk.bf16.vlgmr.msrb.gmra.mxu2 %vm236_vm2, %v5859_v50  ;;  %1431 = vmatpush.bf16.msrb.mxu0 %v1338_v53  ;;  %v1511_v16 = vsel %vm240_vm1, %v1496_v5, 0  ;;  %v1517_v27 = vsel %vm240_vm1, %v1498_v11, 0 }
 0x166   : > { %5015 = vmatmul.msk.bf16.vlgmr.msrb.gmra.mxu3 %vm236_vm2, %v5859_v50  ;;  %1444 = vmatpush.bf16.msrb.mxu1 %v1341_v57 }
 0x167   : > { %1457 = vmatpush.bf16.msrb.mxu2 %v1344_v35  ;;  %1541 = vmatpush.bf16.msrb.mxu3 %v1508_v58 }
 0x168   : > { %v655_v44 = vpop.f32.mrf.mxu2  ;;  %2614 = vrot.lane.b32.xlu0 %v5333_v20, %s5261_s18  ;;  %2616 = vrot.lane.b32.xlu1 %v5335_v21, %s5261_s18 }
 0x169   : > { %v668_v59 = vpop.f32.mrf.mxu3  ;;  %v5880_v54 = vadd.f32 %v655_v44, %v5778_v52  ;;  %v631_v56 = vpop.f32.mrf.mxu0  ;;  %2618 = vrot.lane.b32.xlu2 %v5337_v22, %s5261_s18 }
 0x16a   : > { %v5883_v48 = vadd.f32 %v668_v59, %v5802_v61  ;;  %v644_v62 = vpop.f32.mrf.mxu1  ;;  %v1497_v61 = vsel %vm1494_vm8, %v1479_v51, %v1481_v63 }
 0x16b   : > { %v1485_v3 = vpop.permute.xlu2 %1484  ;;  %v1514_v23 = vsel %vm240_vm1, %v1497_v61, 0  ;;  %v1489_v33 = vpop.permute.xlu1 %1488 }
 0x16c   : > { %v1499_v55 = vsel %vm1494_vm8, %v1483_v0, %v1485_v3  ;;  %v1500_v40 = vsel %vm1494_vm8, %v1485_v3, %v1487_v26  ;;  %v1501_v41 = vsel %vm1494_vm8, %v1487_v26, %v1489_v33  ;;  %v1667_v62 = vpop.permute.xlu0 %1666 }
 0x16d   : > { %v1520_v1 = vsel %vm240_vm1, %v1499_v55, 0  ;;  %v1523_v34 = vsel %vm240_vm1, %v1500_v40, 0  ;;  %v1526_v53 = vsel %vm240_vm1, %v1501_v41, 0 }
 0x170   : > { %v657_v4 = vpop.f32.mrf.mxu2  ;;  %2790 = vrot.lane.b32.xlu0 %v5315_v7, %s5262_s21  ;;  %2792 = vrot.lane.b32.xlu1 %v5322_v12, %s5262_s21 }
 0x171   : > { %v670_v52 = vpop.f32.mrf.mxu3  ;;  %v681_v9 = vpop.f32.mrf.mxu0  ;;  %2794 = vrot.lane.b32.xlu2 %v5313_v6, %s5262_s21 }
 0x172   : > { %v694_v10 = vpop.f32.mrf.mxu1  ;;  %v5896_v2 = vadd.f32 %v681_v9, %v5799_v60 }
 0x173   : > { %v5899_v14 = vadd.f32 %v694_v10, %v5815_v18  ;;  %v1491_v37 = vpop.permute.xlu2 %1490  ;;  %v1663_v35 = vpop.permute.xlu1 %1662 }
 0x174   : > { %5016 = vmatmul.msk.bf16.vlgmr.msra.gmra.mxu0 %vm236_vm2, %v5859_v50  ;;  %5017 = vmatmul.msk.bf16.vlgmr.msra.gmra.mxu1 %vm236_vm2, %v5859_v50  ;;  %v1502_v36 = vsel %vm1494_vm8, %v1489_v33, %v1491_v37  ;;  %v1503_v42 = vsel %vm1494_vm8, %v1491_v37, %v1493_v38  ;;  %vm4129_vm8 = vcmask 908288  }
 0x175   : > { %5018 = vmatmul.msk.bf16.vlgmr.msra.gmra.mxu2 %vm236_vm2, %v5859_v50  ;;  %1554 = vmatpush.bf16.msra.mxu0 %v1511_v16 }
 0x176   : > { %5019 = vmatmul.msk.bf16.vlgmr.msra.gmra.mxu3 %vm236_vm2, %v5859_v50  ;;  %1567 = vmatpush.bf16.msra.mxu1 %v1514_v23  ;;  %v1673_v23 = vpop.permute.xlu0 %1672 }
 0x177   : > { %1580 = vmatpush.bf16.msra.mxu2 %v1517_v27  ;;  %1593 = vmatpush.bf16.msra.mxu3 %v1520_v1 }
 0x178   : > { %v707_v60 = vpop.f32.mrf.mxu2  ;;  %2620 = vrot.lane.b32.xlu0 %v5342_v24, %s5261_s18  ;;  %2796 = vrot.lane.b32.xlu1 %v5324_v13, %s5262_s21  ;;  %s5269_s18 = smov 111  }
 0x179   : > { %v791_v18 = vpop.f32.mrf.mxu3  ;;  %v5918_v28 = vadd.f32 %v707_v60, %v5818_v19  ;;  %v683_v29 = vpop.f32.mrf.mxu0  ;;  %2798 = vrot.lane.b32.xlu2 %v5317_v8, %s5262_s21 }
 0x17a   : > { %v5921_v17 = vadd.f32 %v791_v18, %v5835_v31  ;;  %v696_v30 = vpop.f32.mrf.mxu1 }
 0x17b   : > { %v1665_v57 = vpop.permute.xlu2 %1664  ;;  %v1669_v63 = vpop.permute.xlu1 %1668 }
 0x17c   : > { %v1683_v52 = vsel %vm1682_vm9, %v1663_v35, %v1665_v57  ;;  %v1684_v5 = vsel %vm1682_vm9, %v1665_v57, %v1667_v62  ;;  %v1685_v61 = vsel %vm1682_vm9, %v1667_v62, %v1669_v63 }
 0x17d   : > { %v1696_v55 = vsel %vm240_vm1, %v1683_v52, 0  ;;  %v1699_v16 = vsel %vm240_vm1, %v1684_v5, 0  ;;  %v1702_v26 = vsel %vm240_vm1, %v1685_v61, 0  ;;  %v6041_v52 = vld [vmem:[%s7371_s1 + $0x20] sm:$0xf] }
 0x17e   : > { %v1679_v37 = vpop.permute.xlu0 %1678 }
 0x180   : > { %v709_v39 = vpop.f32.mrf.mxu2  ;;  %2800 = vrot.lane.b32.xlu0 %v5327_v15, %s5262_s21  ;;  %2802 = vrot.lane.b32.xlu1 %v5333_v20, %s5262_s21 }
 0x181   : > { %v793_v25 = vpop.f32.mrf.mxu3  ;;  %v804_v19 = vpop.f32.mrf.mxu0  ;;  %2804 = vrot.lane.b32.xlu2 %v5335_v21, %s5262_s21 }
 0x182   : > { %v817_v31 = vpop.f32.mrf.mxu1  ;;  %v5936_v45 = vadd.f32 %v804_v19, %v5838_v32  ;;  %v1532_v32 = vsel %vm240_vm1, %v1503_v42, 0 }
 0x183   : > { %v5939_v46 = vadd.f32 %v817_v31, %v5851_v47  ;;  %v1529_v47 = vsel %vm240_vm1, %v1502_v36, 0  ;;  %v1671_v0 = vpop.permute.xlu2 %1670  ;;  %v1675_v30 = vpop.permute.xlu1 %1674 }
 0x184   : > { %5020 = vmatmul.msk.bf16.vlgmr.msrb.gmra.mxu0 %vm236_vm2, %v5859_v50  ;;  %5021 = vmatmul.msk.bf16.vlgmr.msrb.gmra.mxu1 %vm236_vm2, %v5859_v50  ;;  %v1686_v9 = vsel %vm1682_vm9, %v1669_v63, %v1671_v0  ;;  %v1687_v25 = vsel %vm1682_vm9, %v1671_v0, %v1673_v23  ;;  %v1688_v40 = vsel %vm1682_vm9, %v1673_v23, %v1675_v30 }
 0x185   : > { %5022 = vmatmul.msk.bf16.vlgmr.msrb.gmra.mxu2 %vm236_vm2, %v5859_v50  ;;  %1606 = vmatpush.bf16.msrb.mxu0 %v1523_v34  ;;  %v1705_v27 = vsel %vm240_vm1, %v1686_v9, 0  ;;  %v1708_v42 = vsel %vm240_vm1, %v1687_v25, 0  ;;  %v1711_v34 = vsel %vm240_vm1, %v1688_v40, 0 }
 0x186   : > { %5024 = vmatmul.msk.bf16.vlgmr.msrb.gmra.mxu3 %vm236_vm2, %v5944_v43  ;;  %1619 = vmatpush.bf16.msrb.mxu1 %v1526_v53 }
 0x187   : > { %1632 = vmatpush.bf16.msrb.mxu2 %v1529_v47  ;;  %1645 = vmatpush.bf16.msrb.mxu3 %v1532_v32 }
 0x188   : > { %v830_v51 = vpop.f32.mrf.mxu2  ;;  %2806 = vrot.lane.b32.xlu0 %v5337_v22, %s5262_s21  ;;  %2808 = vrot.lane.b32.xlu1 %v5342_v24, %s5262_s21  ;;  %s5270_s21 = smov 110  }
 0x189   : > { %v843_v58 = vpop.f32.mrf.mxu3  ;;  %v5963_v44 = vadd.f32 %v830_v51, %v5854_v49  ;;  %v806_v59 = vpop.f32.mrf.mxu0  ;;  %2978 = vrot.lane.b32.xlu2 %v5315_v7, %s5263_s24 }
 0x18a   : > { %v5966_v50 = vadd.f32 %v843_v58, %v5880_v54  ;;  %v819_v56 = vpop.f32.mrf.mxu1 }
 0x18b   : > { %v1677_v33 = vpop.permute.xlu2 %1676  ;;  %v1681_v32 = vpop.permute.xlu1 %1680 }
 0x18c   : > { %v1689_v31 = vsel %vm1682_vm9, %v1675_v30, %v1677_v33  ;;  %v1855_v56 = vpop.permute.xlu0 %1854 }
 0x18d   : > { %v1714_v47 = vsel %vm240_vm1, %v1689_v31, 0 }
 0x190   : > { %v832_v3 = vpop.f32.mrf.mxu2  ;;  %2982 = vrot.lane.b32.xlu1 %v5313_v6, %s5263_s24  ;;  %2980 = vrot.lane.b32.xlu0 %v5322_v12, %s5263_s24 }
 0x191   : > { %v845_v4 = vpop.f32.mrf.mxu3  ;;  %v856_v49 = vpop.f32.mrf.mxu0  ;;  %2984 = vrot.lane.b32.xlu2 %v5324_v13, %s5263_s24 }
 0x192   : > { %v869_v54 = vpop.f32.mrf.mxu1  ;;  %v5979_v10 = vadd.f32 %v856_v49, %v5883_v48 }
 0x193   : > { %v5982_v11 = vadd.f32 %v869_v54, %v5896_v2  ;;  %v1853_v53 = vpop.permute.xlu2 %1852 }
 0x194   : > { %5025 = vmatmul.msk.bf16.vlgmr.msra.gmra.mxu0 %vm236_vm2, %v5944_v43  ;;  %5026 = vmatmul.msk.bf16.vlgmr.msra.gmra.mxu1 %vm236_vm2, %v5944_v43  ;;  %v1872_v5 = vsel %vm1870_vm10, %v1853_v53, %v1855_v56 }
 0x195   : > { %5027 = vmatmul.msk.bf16.vlgmr.msra.gmra.mxu2 %vm236_vm2, %v5944_v43  ;;  %1729 = vmatpush.bf16.msra.mxu0 %v1696_v55 }
 0x196   : > { %5028 = vmatmul.msk.bf16.vlgmr.msra.gmra.mxu3 %vm236_vm2, %v5944_v43  ;;  %1742 = vmatpush.bf16.msra.mxu1 %v1699_v16 }
 0x197   : > { %1755 = vmatpush.bf16.msra.mxu2 %v1702_v26  ;;  %1768 = vmatpush.bf16.msra.mxu3 %v1705_v27 }
 0x198   : > { %v882_v48 = vpop.f32.mrf.mxu2  ;;  %2986 = vrot.lane.b32.xlu0 %v5317_v8, %s5263_s24  ;;  %2988 = vrot.lane.b32.xlu1 %v5327_v15, %s5263_s24 }
 0x199   : > { %v895_v2 = vpop.f32.mrf.mxu3  ;;  %v5997_v1 = vadd.f32 %v882_v48, %v5899_v14  ;;  %v858_v18 = vpop.f32.mrf.mxu0  ;;  %v1690_v14 = vsel %vm1682_vm9, %v1677_v33, %v1679_v37  ;;  %2990 = vrot.lane.b32.xlu2 %v5333_v20, %s5263_s24 }
 0x19a   : > { %v6000_v60 = vadd.f32 %v895_v2, %v5918_v28  ;;  %v871_v29 = vpop.f32.mrf.mxu1 }
 0x1a0   : > { %v884_v38 = vpop.f32.mrf.mxu2  ;;  %2992 = vrot.lane.b32.xlu0 %v5335_v21, %s5263_s24  ;;  %2994 = vrot.lane.b32.xlu1 %v5337_v22, %s5263_s24 }
 0x1a1   : > { %v897_v39 = vpop.f32.mrf.mxu3  ;;  %v979_v41 = vpop.f32.mrf.mxu0  ;;  %2996 = vrot.lane.b32.xlu2 %v5342_v24, %s5263_s24 }
 0x1a2   : > { %v992_v19 = vpop.f32.mrf.mxu1  ;;  %v6007_v28 = vadd.f32 %v979_v41, %v5921_v17  ;;  %v1717_v17 = vsel %vm240_vm1, %v1690_v14, 0 }
 0x1a3   : > { %v6010_v36 = vadd.f32 %v992_v19, %v5936_v45 }
 0x1a4   : > { %5029 = vmatmul.msk.bf16.vlgmr.msrb.gmra.mxu0 %vm236_vm2, %v5944_v43  ;;  %5030 = vmatmul.msk.bf16.vlgmr.msrb.gmra.mxu1 %vm236_vm2, %v5944_v43 }
 0x1a5   : > { %5031 = vmatmul.msk.bf16.vlgmr.msrb.gmra.mxu2 %vm236_vm2, %v5944_v43  ;;  %1781 = vmatpush.bf16.msrb.mxu0 %v1708_v42 }
 0x1a6   : > { %5032 = vmatmul.msk.bf16.vlgmr.msrb.gmra.mxu3 %vm236_vm2, %v5944_v43  ;;  %1794 = vmatpush.bf16.msrb.mxu1 %v1711_v34  ;;  %v1851_v43 = vpop.permute.xlu2 %1850 }
 0x1a7   : > { %1807 = vmatpush.bf16.msrb.mxu2 %v1714_v47  ;;  %1820 = vmatpush.bf16.msrb.mxu3 %v1717_v17  ;;  %v1871_v0 = vsel %vm1870_vm10, %v1851_v43, %v1853_v53 }
 0x1a8   : > { %v1005_v45 = vpop.f32.mrf.mxu2  ;;  %v1884_v55 = vsel %vm240_vm1, %v1871_v0, 0  ;;  %3168 = vrot.lane.b32.xlu1 %v5322_v12, %s5264_s27  ;;  %3166 = vrot.lane.b32.xlu0 %v5315_v7, %s5264_s27  ;;  %v6122_v0 = vld [vmem:[%s7371_s1 + $0x24] sm:$0xf] }
 0x1a9   : > { %v1018_v57 = vpop.f32.mrf.mxu3  ;;  %v6025_v35 = vadd.f32 %v1005_v45, %v5939_v46  ;;  %v981_v58 = vpop.f32.mrf.mxu0  ;;  %3170 = vrot.lane.b32.xlu2 %v5313_v6, %s5264_s27 }
 0x1aa   : > { %v6028_v51 = vadd.f32 %v1018_v57, %v5963_v44  ;;  %v994_v59 = vpop.f32.mrf.mxu1  ;;  %v1857_v46 = vpop.permute.xlu1 %1856  ;;  %v1691_v44 = vsel %vm1682_vm9, %v1679_v37, %v1681_v32  ;;  %vm4317_vm9 = vcmask 900096  }
 0x1ab   : > { %v1873_v49 = vsel %vm1870_vm10, %v1855_v56, %v1857_v46  ;;  %v1720_v9 = vsel %vm240_vm1, %v1691_v44, 0 }
 0x1ac   : > { %v1890_v16 = vsel %vm240_vm1, %v1873_v49, 0 }
 0x1ae   : > { %v1863_v23 = vpop.permute.xlu2 %1862 }
 0x1b0   : > { %v1007_v62 = vpop.f32.mrf.mxu2  ;;  %3172 = vrot.lane.b32.xlu0 %v5324_v13, %s5264_s27  ;;  %3174 = vrot.lane.b32.xlu1 %v5317_v8, %s5264_s27 }
 0x1b1   : > { %v1020_v63 = vpop.f32.mrf.mxu3  ;;  %v1031_v3 = vpop.f32.mrf.mxu0  ;;  %3176 = vrot.lane.b32.xlu2 %v5327_v15, %s5264_s27 }
 0x1b2   : > { %v1044_v4 = vpop.f32.mrf.mxu1  ;;  %v6046_v54 = vadd.f32 %v1031_v3, %v5966_v50  ;;  %v1859_v50 = vpop.permute.xlu0 %1858 }
 0x1b3   : > { %v6049_v61 = vadd.f32 %v1044_v4, %v5979_v10  ;;  %v1887_v10 = vsel %vm240_vm1, %v1872_v5, 0  ;;  %v1861_v30 = vpop.permute.xlu1 %1860 }
 0x1b4   : > { %5034 = vmatmul.msk.bf16.vlgmr.msra.gmra.mxu0 %vm236_vm2, %v6041_v52  ;;  %5035 = vmatmul.msk.bf16.vlgmr.msra.gmra.mxu1 %vm236_vm2, %v6041_v52  ;;  %v1876_v40 = vsel %vm1870_vm10, %v1861_v30, %v1863_v23 }
 0x1b5   : > { %5036 = vmatmul.msk.bf16.vlgmr.msra.gmra.mxu2 %vm236_vm2, %v6041_v52  ;;  %1833 = vmatpush.bf16.msra.mxu0 %v1720_v9 }
 0x1b6   : > { %5037 = vmatmul.msk.bf16.vlgmr.msra.gmra.mxu3 %vm236_vm2, %v6041_v52  ;;  %1917 = vmatpush.bf16.msra.mxu1 %v1884_v55  ;;  %v2039_v34 = vpop.permute.xlu2 %2038 }
 0x1b7   : > { %1930 = vmatpush.bf16.msra.mxu2 %v1887_v10  ;;  %1943 = vmatpush.bf16.msra.mxu3 %v1890_v16 }
 0x1b8   : > { %v1057_v26 = vpop.f32.mrf.mxu2  ;;  %3178 = vrot.lane.b32.xlu0 %v5333_v20, %s5264_s27  ;;  %3180 = vrot.lane.b32.xlu1 %v5335_v21, %s5264_s27 }
 0x1b9   : > { %v1070_v27 = vpop.f32.mrf.mxu3  ;;  %v6070_v48 = vadd.f32 %v1057_v26, %v5982_v11  ;;  %v1033_v18 = vpop.f32.mrf.mxu0  ;;  %v1874_v11 = vsel %vm1870_vm10, %v1857_v46, %v1859_v50  ;;  %3182 = vrot.lane.b32.xlu2 %v5337_v22, %s5264_s27 }
 0x1ba   : > { %v6073_v2 = vadd.f32 %v1070_v27, %v5997_v1  ;;  %v1046_v29 = vpop.f32.mrf.mxu1  ;;  %v1865_v33 = vpop.permute.xlu0 %1864  ;;  %v1875_v1 = vsel %vm1870_vm10, %v1859_v50, %v1861_v30  ;;  %v1893_v14 = vsel %vm240_vm1, %v1874_v11, 0 }
 0x1bb   : > { %v1877_v41 = vsel %vm1870_vm10, %v1863_v23, %v1865_v33  ;;  %v1896_v42 = vsel %vm240_vm1, %v1875_v1, 0  ;;  %v1867_v53 = vpop.permute.xlu1 %1866 }
 0x1be   : > { %v1869_v56 = vpop.permute.xlu2 %1868 }
 0x1bf   : > { %v1879_v62 = vsel %vm1870_vm10, %v1867_v53, %v1869_v56 }
 0x1c0   : > { %v1059_v37 = vpop.f32.mrf.mxu2  ;;  %v1908_v55 = vsel %vm240_vm1, %v1879_v62, 0  ;;  %3184 = vrot.lane.b32.xlu0 %v5342_v24, %s5264_s27  ;;  %3356 = vrot.lane.b32.xlu1 %v5322_v12, %s5265_s30 }
 0x1c1   : > { %v1072_v38 = vpop.f32.mrf.mxu3  ;;  %v1083_v39 = vpop.f32.mrf.mxu0  ;;  %3358 = vrot.lane.b32.xlu2 %v5313_v6, %s5265_s30 }
 0x1c2   : > { %v1167_v25 = vpop.f32.mrf.mxu1  ;;  %v6086_v19 = vadd.f32 %v1083_v39, %v6000_v60  ;;  %v1899_v60 = vsel %vm240_vm1, %v1876_v40, 0  ;;  %v2041_v59 = vpop.permute.xlu0 %2040 }
 0x1c3   : > { %v6089_v31 = vadd.f32 %v1167_v25, %v6007_v28  ;;  %v1902_v28 = vsel %vm240_vm1, %v1877_v41, 0  ;;  %v2059_v3 = vsel %vm2058_vm11, %v2039_v34, %v2041_v59 }
 0x1c4   : > { %5038 = vmatmul.msk.bf16.vlgmr.msrb.gmra.mxu0 %vm236_vm2, %v6041_v52  ;;  %5039 = vmatmul.msk.bf16.vlgmr.msrb.gmra.mxu1 %vm236_vm2, %v6041_v52 }
 0x1c5   : > { %5040 = vmatmul.msk.bf16.vlgmr.msrb.gmra.mxu2 %vm236_vm2, %v6041_v52  ;;  %1956 = vmatpush.bf16.msrb.mxu0 %v1893_v14 }
 0x1c6   : > { %5041 = vmatmul.msk.bf16.vlgmr.msrb.gmra.mxu3 %vm236_vm2, %v6041_v52  ;;  %1969 = vmatpush.bf16.msrb.mxu1 %v1896_v42  ;;  %v2049_v29 = vpop.permute.xlu2 %2048 }
 0x1c7   : > { %1982 = vmatpush.bf16.msrb.mxu2 %v1899_v60  ;;  %1995 = vmatpush.bf16.msrb.mxu3 %v1902_v28 }
 0x1c8   : > { %v1180_v32 = vpop.f32.mrf.mxu2  ;;  %3360 = vrot.lane.b32.xlu0 %v5324_v13, %s5265_s30  ;;  %3354 = vrot.lane.b32.xlu1 %v5315_v7, %s5265_s30 }
 0x1c9   : > { %v1193_v47 = vpop.f32.mrf.mxu3  ;;  %v6106_v17 = vadd.f32 %v1180_v32, %v6010_v36  ;;  %v1085_v57 = vpop.f32.mrf.mxu0  ;;  %3362 = vrot.lane.b32.xlu2 %v5317_v8, %s5265_s30 }
 0x1ca   : > { %v6109_v45 = vadd.f32 %v1193_v47, %v6025_v35  ;;  %v1169_v58 = vpop.f32.mrf.mxu1  ;;  %v2043_v36 = vpop.permute.xlu1 %2042  ;;  %v1878_v35 = vsel %vm1870_vm10, %v1865_v33, %v1867_v53  ;;  %vm4505_vm10 = vcmask 891904  }
 0x1cb   : > { %v2060_v4 = vsel %vm2058_vm11, %v2041_v59, %v2043_v36  ;;  %v1905_v9 = vsel %vm240_vm1, %v1878_v35, 0 }
 0x1cc   : > { %v2075_v50 = vsel %vm240_vm1, %v2060_v4, 0  ;;  %v6211_v4 = vld [vmem:[%s7371_s1 + $0x28] sm:$0xf] }
 0x1d0   : > { %v1182_v43 = vpop.f32.mrf.mxu2  ;;  %3364 = vrot.lane.b32.xlu0 %v5327_v15, %s5265_s30  ;;  %3366 = vrot.lane.b32.xlu1 %v5333_v20, %s5265_s30 }
 0x1d1   : > { %v1195_v46 = vpop.f32.mrf.mxu3  ;;  %v1206_v63 = vpop.f32.mrf.mxu0  ;;  %3368 = vrot.lane.b32.xlu2 %v5335_v21, %s5265_s30 }
 0x1d2   : > { %v1219_v44 = vpop.f32.mrf.mxu1  ;;  %v6127_v5 = vadd.f32 %v1206_v63, %v6028_v51  ;;  %v2045_v51 = vpop.permute.xlu0 %2044 }
 0x1d3   : > { %v6130_v49 = vadd.f32 %v1219_v44, %v6046_v54  ;;  %v2072_v54 = vsel %vm240_vm1, %v2059_v3, 0  ;;  %v2047_v18 = vpop.permute.xlu1 %2046  ;;  %v2061_v37 = vsel %vm2058_vm11, %v2043_v36, %v2045_v51 }
 0x1d4   : > { %5042 = vmatmul.msk.bf16.vlgmr.msra.gmra.mxu0 %vm236_vm2, %v6041_v52  ;;  %5044 = vmatmul.msk.bf16.vlgmr.msra.gmra.mxu1 %vm236_vm2, %v6122_v0  ;;  %v2063_v1 = vsel %vm2058_vm11, %v2047_v18, %v2049_v29  ;;  %v2078_v41 = vsel %vm240_vm1, %v2061_v37, 0 }
 0x1d5   : > { %5045 = vmatmul.msk.bf16.vlgmr.msra.gmra.mxu2 %vm236_vm2, %v6122_v0  ;;  %2008 = vmatpush.bf16.msra.mxu0 %v1905_v9  ;;  %v2084_v42 = vsel %vm240_vm1, %v2063_v1, 0 }
 0x1d6   : > { %5046 = vmatmul.msk.bf16.vlgmr.msra.gmra.mxu3 %vm236_vm2, %v6122_v0  ;;  %2021 = vmatpush.bf16.msra.mxu1 %v1908_v55 }
 0x1d7   : > { %2105 = vmatpush.bf16.msra.mxu2 %v2072_v54  ;;  %2118 = vmatpush.bf16.msra.mxu3 %v2075_v50 }
 0x1d8   : > { %v1232_v10 = vpop.f32.mrf.mxu2  ;;  %3370 = vrot.lane.b32.xlu0 %v5337_v22, %s5265_s30  ;;  %3542 = vrot.lane.b32.xlu1 %v5315_v7, %s5266_s6 }
 0x1d9   : > { %v1245_v52 = vpop.f32.mrf.mxu3  ;;  %v6151_v16 = vadd.f32 %v1232_v10, %v6049_v61  ;;  %v1208_v26 = vpop.f32.mrf.mxu0  ;;  %3544 = vrot.lane.b32.xlu2 %v5322_v12, %s5266_s6 }
 0x1da   : > { %v6154_v23 = vadd.f32 %v1245_v52, %v6070_v48  ;;  %v1221_v27 = vpop.f32.mrf.mxu1  ;;  %v2051_v30 = vpop.permute.xlu0 %2050  ;;  %v2062_v48 = vsel %vm2058_vm11, %v2045_v51, %v2047_v18 }
 0x1db   : > { %v2064_v39 = vsel %vm2058_vm11, %v2049_v29, %v2051_v30  ;;  %v2081_v14 = vsel %vm240_vm1, %v2062_v48, 0 }
 0x1dc   : > { %v2087_v34 = vsel %vm240_vm1, %v2064_v39, 0 }
 0x1e0   : > { %v1234_v33 = vpop.f32.mrf.mxu2  ;;  %3546 = vrot.lane.b32.xlu0 %v5313_v6, %s5266_s6  ;;  %3372 = vrot.lane.b32.xlu1 %v5342_v24, %s5265_s30 }
 0x1e1   : > { %v1247_v61 = vpop.f32.mrf.mxu3  ;;  %v1258_v38 = vpop.f32.mrf.mxu0  ;;  %3548 = vrot.lane.b32.xlu2 %v5324_v13, %s5266_s6 }
 0x1e2   : > { %v1271_v11 = vpop.f32.mrf.mxu1  ;;  %v6167_v25 = vadd.f32 %v1258_v38, %v6073_v2  ;;  %v2053_v2 = vpop.permute.xlu1 %2052 }
 0x1e3   : > { %v6170_v40 = vadd.f32 %v1271_v11, %v6086_v19  ;;  %v2055_v19 = vpop.permute.xlu2 %2054  ;;  %v2057_v58 = vpop.permute.xlu0 %2056 }
 0x1e4   : > { %5047 = vmatmul.msk.bf16.vlgmr.msrb.gmra.mxu0 %vm236_vm2, %v6122_v0  ;;  %5048 = vmatmul.msk.bf16.vlgmr.msrb.gmra.mxu1 %vm236_vm2, %v6122_v0  ;;  %v2066_v43 = vsel %vm2058_vm11, %v2053_v2, %v2055_v19  ;;  %v2067_v62 = vsel %vm2058_vm11, %v2055_v19, %v2057_v58 }
 0x1e5   : > { %5049 = vmatmul.msk.bf16.vlgmr.msrb.gmra.mxu2 %vm236_vm2, %v6122_v0  ;;  %2131 = vmatpush.bf16.msrb.mxu0 %v2078_v41  ;;  %v2093_v55 = vsel %vm240_vm1, %v2066_v43, 0 }
 0x1e6   : > { %5050 = vmatmul.msk.bf16.vlgmr.msrb.gmra.mxu3 %vm236_vm2, %v6122_v0  ;;  %2144 = vmatpush.bf16.msrb.mxu1 %v2081_v14 }
 0x1e7   : > { %2157 = vmatpush.bf16.msrb.mxu2 %v2084_v42  ;;  %2170 = vmatpush.bf16.msrb.mxu3 %v2087_v34 }
 0x1e8   : > { %v1355_v53 = vpop.f32.mrf.mxu2  ;;  %3550 = vrot.lane.b32.xlu0 %v5317_v8, %s5266_s6  ;;  %3552 = vrot.lane.b32.xlu1 %v5327_v15, %s5266_s6 }
 0x1e9   : > { %v1368_v60 = vpop.f32.mrf.mxu3  ;;  %v6187_v28 = vadd.f32 %v1355_v53, %v6089_v31  ;;  %v1260_v47 = vpop.f32.mrf.mxu0  ;;  %3554 = vrot.lane.b32.xlu2 %v5333_v20, %s5266_s6 }
 0x1ea   : > { %v6190_v32 = vadd.f32 %v1368_v60, %v6106_v17  ;;  %v1273_v57 = vpop.f32.mrf.mxu1  ;;  %v2227_v59 = vpop.permute.xlu1 %2226  ;;  %v2065_v17 = vsel %vm2058_vm11, %v2051_v30, %v2053_v2  ;;  %vm4693_vm11 = vcmask 883712  }
 0x1eb   : > { %v2229_v31 = vpop.permute.xlu2 %2228  ;;  %v2090_v9 = vsel %vm240_vm1, %v2065_v17, 0  ;;  %v2231_v51 = vpop.permute.xlu0 %2230 }
 0x1ec   : > { %v2247_v63 = vsel %vm2246_vm12, %v2227_v59, %v2229_v31  ;;  %v2248_v33 = vsel %vm2246_vm12, %v2229_v31, %v2231_v51 }
 0x1ed   : > { %v2263_v39 = vsel %vm240_vm1, %v2248_v33, 0 }
 0x1f0   : > { %v1357_v56 = vpop.f32.mrf.mxu2  ;;  %3556 = vrot.lane.b32.xlu0 %v5335_v21, %s5266_s6  ;;  %3558 = vrot.lane.b32.xlu1 %v5337_v22, %s5266_s6 }
 0x1f1   : > { %v1370_v36 = vpop.f32.mrf.mxu3  ;;  %v1381_v46 = vpop.f32.mrf.mxu0  ;;  %3560 = vrot.lane.b32.xlu2 %v5342_v24, %s5266_s6 }
 0x1f2   : > { %v1394_v35 = vpop.f32.mrf.mxu1  ;;  %v6203_v44 = vadd.f32 %v1381_v46, %v6109_v45  ;;  %v2096_v45 = vsel %vm240_vm1, %v2067_v62, 0  ;;  %v2233_v27 = vpop.permute.xlu1 %2232  ;;  %v6296_v62 = vld [vmem:[%s7371_s1 + $0x2c] sm:$0xf] }
 0x1f3   : > { %v6206_v3 = vadd.f32 %v1394_v35, %v6127_v5  ;;  %v2260_v5 = vsel %vm240_vm1, %v2247_v63, 0  ;;  %v2235_v18 = vpop.permute.xlu2 %2234  ;;  %v2237_v29 = vpop.permute.xlu0 %2236 }
 0x1f4   : > { %5051 = vmatmul.msk.bf16.vlgmr.msra.gmra.mxu0 %vm236_vm2, %v6122_v0  ;;  %5052 = vmatmul.msk.bf16.vlgmr.msra.gmra.mxu1 %vm236_vm2, %v6122_v0  ;;  %v2250_v48 = vsel %vm2246_vm12, %v2233_v27, %v2235_v18  ;;  %v2251_v38 = vsel %vm2246_vm12, %v2235_v18, %v2237_v29 }
 0x1f5   : > { %5054 = vmatmul.msk.bf16.vlgmr.msra.gmra.mxu2 %vm236_vm2, %v6211_v4  ;;  %2183 = vmatpush.bf16.msra.mxu0 %v2090_v9  ;;  %v2269_v14 = vsel %vm240_vm1, %v2250_v48, 0  ;;  %v2272_v2 = vsel %vm240_vm1, %v2251_v38, 0 }
 0x1f6   : > { %5055 = vmatmul.msk.bf16.vlgmr.msra.gmra.mxu3 %vm236_vm2, %v6211_v4  ;;  %2196 = vmatpush.bf16.msra.mxu1 %v2093_v55 }
 0x1f7   : > { %2209 = vmatpush.bf16.msra.mxu2 %v2096_v45  ;;  %2293 = vmatpush.bf16.msra.mxu3 %v2260_v5 }
 0x1f8   : > { %v1407_v54 = vpop.f32.mrf.mxu2  ;;  %3730 = vrot.lane.b32.xlu0 %v5315_v7, %s5267_s9  ;;  %3732 = vrot.lane.b32.xlu1 %v5322_v12, %s5267_s9 }
 0x1f9   : > { %v1420_v50 = vpop.f32.mrf.mxu3  ;;  %v6232_v10 = vadd.f32 %v1407_v54, %v6130_v49  ;;  %v1383_v52 = vpop.f32.mrf.mxu0  ;;  %3734 = vrot.lane.b32.xlu2 %v5313_v6, %s5267_s9 }
 0x1fa   : > { %v6235_v0 = vadd.f32 %v1420_v50, %v6151_v16  ;;  %v1396_v26 = vpop.f32.mrf.mxu1  ;;  %v2249_v16 = vsel %vm2246_vm12, %v2231_v51, %v2233_v27  ;;  %v2239_v42 = vpop.permute.xlu1 %2238 }
 0x1fb   : > { %v2266_v41 = vsel %vm240_vm1, %v2249_v16, 0  ;;  %v2241_v47 = vpop.permute.xlu2 %2240  ;;  %v2243_v57 = vpop.permute.xlu0 %2242  ;;  %v2252_v56 = vsel %vm2246_vm12, %v2237_v29, %v2239_v42 }
 0x1fc   : > { %v2253_v36 = vsel %vm2246_vm12, %v2239_v42, %v2241_v47  ;;  %v2254_v17 = vsel %vm2246_vm12, %v2241_v47, %v2243_v57  ;;  %v2275_v63 = vsel %vm240_vm1, %v2252_v56, 0 }
 0x1fd   : > { %v2278_v9 = vsel %vm240_vm1, %v2253_v36, 0 }
 0x200   : > { %v1409_v30 = vpop.f32.mrf.mxu2  ;;  %3736 = vrot.lane.b32.xlu0 %v5324_v13, %s5267_s9  ;;  %3738 = vrot.lane.b32.xlu1 %v5317_v8, %s5267_s9 }
 0x201   : > { %v1422_v49 = vpop.f32.mrf.mxu3  ;;  %v1433_v61 = vpop.f32.mrf.mxu0  ;;  %3740 = vrot.lane.b32.xlu2 %v5327_v15, %s5267_s9 }
 0x202   : > { %v1446_v37 = vpop.f32.mrf.mxu1  ;;  %v6248_v11 = vadd.f32 %v1433_v61, %v6154_v23  ;;  %v2245_v58 = vpop.permute.xlu1 %2244 }
 0x203   : > { %v6251_v1 = vadd.f32 %v1446_v37, %v6167_v25  ;;  %v2255_v43 = vsel %vm2246_vm12, %v2243_v57, %v2245_v58  ;;  %v2415_v55 = vpop.permute.xlu2 %2414  ;;  %v2417_v45 = vpop.permute.xlu0 %2416 }
 0x204   : > { %5056 = vmatmul.msk.bf16.vlgmr.msrb.gmra.mxu0 %vm236_vm2, %v6211_v4  ;;  %5057 = vmatmul.msk.bf16.vlgmr.msrb.gmra.mxu1 %vm236_vm2, %v6211_v4  ;;  %v2435_v49 = vsel %vm2434_vm13, %v2415_v55, %v2417_v45 }
 0x205   : > { %5058 = vmatmul.msk.bf16.vlgmr.msrb.gmra.mxu2 %vm236_vm2, %v6211_v4  ;;  %2306 = vmatpush.bf16.msrb.mxu0 %v2263_v39  ;;  %v2448_v38 = vsel %vm240_vm1, %v2435_v49, 0 }
 0x206   : > { %5059 = vmatmul.msk.bf16.vlgmr.msrb.gmra.mxu3 %vm236_vm2, %v6211_v4  ;;  %2319 = vmatpush.bf16.msrb.mxu1 %v2266_v41 }
 0x207   : > { %2332 = vmatpush.bf16.msrb.mxu2 %v2269_v14  ;;  %2345 = vmatpush.bf16.msrb.mxu3 %v2272_v2 }
 0x208   : > { %v1459_v23 = vpop.f32.mrf.mxu2  ;;  %3742 = vrot.lane.b32.xlu0 %v5333_v20, %s5267_s9  ;;  %3744 = vrot.lane.b32.xlu1 %v5335_v21, %s5267_s9 }
 0x209   : > { %v1543_v25 = vpop.f32.mrf.mxu3  ;;  %v6270_v34 = vadd.f32 %v1459_v23, %v6170_v40  ;;  %v1435_v53 = vpop.f32.mrf.mxu0  ;;  %3746 = vrot.lane.b32.xlu2 %v5337_v22, %s5267_s9 }
 0x20a   : > { %v6273_v19 = vadd.f32 %v1543_v25, %v6187_v28  ;;  %v1448_v60 = vpop.f32.mrf.mxu1  ;;  %v2419_v26 = vpop.permute.xlu1 %2418 }
 0x20b   : > { %v2421_v27 = vpop.permute.xlu2 %2420  ;;  %v2423_v18 = vpop.permute.xlu0 %2422  ;;  %v2436_v33 = vsel %vm2434_vm13, %v2417_v45, %v2419_v26 }
 0x20c   : > { %v2437_v16 = vsel %vm2434_vm13, %v2419_v26, %v2421_v27  ;;  %v2438_v61 = vsel %vm2434_vm13, %v2421_v27, %v2423_v18  ;;  %v2451_v39 = vsel %vm240_vm1, %v2436_v33, 0 }
 0x20d   : > { %v2454_v41 = vsel %vm240_vm1, %v2437_v16, 0  ;;  %v2457_v42 = vsel %vm240_vm1, %v2438_v61, 0 }
 0x210   : > { %v1461_v59 = vpop.f32.mrf.mxu2  ;;  %3748 = vrot.lane.b32.xlu0 %v5342_v24, %s5267_s9  ;;  %3921 = vrot.lane.b32.xlu1 %v5322_v12, %s5268_s14 }
 0x211   : > { %v1545_v31 = vpop.f32.mrf.mxu3  ;;  %v1556_v40 = vpop.f32.mrf.mxu0  ;;  %3923 = vrot.lane.b32.xlu2 %v5313_v6, %s5268_s14 }
 0x212   : > { %v1569_v28 = vpop.f32.mrf.mxu1  ;;  %v6288_v46 = vadd.f32 %v1556_v40, %v6190_v32  ;;  %v2281_v32 = vsel %vm240_vm1, %v2254_v17, 0  ;;  %v2425_v14 = vpop.permute.xlu1 %2424 }
 0x213   : > { %v6291_v35 = vadd.f32 %v1569_v28, %v6203_v44  ;;  %v2284_v44 = vsel %vm240_vm1, %v2255_v43, 0  ;;  %v2427_v60 = vpop.permute.xlu2 %2426  ;;  %v2429_v47 = vpop.permute.xlu0 %2428  ;;  %v2439_v31 = vsel %vm2434_vm13, %v2423_v18, %v2425_v14 }
 0x214   : > { %5060 = vmatmul.msk.bf16.vlgmr.msra.gmra.mxu0 %vm236_vm2, %v6211_v4  ;;  %5061 = vmatmul.msk.bf16.vlgmr.msra.gmra.mxu1 %vm236_vm2, %v6211_v4  ;;  %v2440_v56 = vsel %vm2434_vm13, %v2425_v14, %v2427_v60  ;;  %v2441_v28 = vsel %vm2434_vm13, %v2427_v60, %v2429_v47  ;;  %v2460_v43 = vsel %vm240_vm1, %v2439_v31, 0 }
 0x215   : > { %5062 = vmatmul.msk.bf16.vlgmr.msra.gmra.mxu2 %vm236_vm2, %v6211_v4  ;;  %2358 = vmatpush.bf16.msra.mxu0 %v2275_v63  ;;  %v2463_v63 = vsel %vm240_vm1, %v2440_v56, 0 }
 0x216   : > { %5064 = vmatmul.msk.bf16.vlgmr.msra.gmra.mxu3 %vm236_vm2, %v6296_v62  ;;  %2371 = vmatpush.bf16.msra.mxu1 %v2278_v9 }
 0x217   : > { %2384 = vmatpush.bf16.msra.mxu2 %v2281_v32  ;;  %2397 = vmatpush.bf16.msra.mxu3 %v2284_v44  ;;  %v2466_v32 = vsel %vm240_vm1, %v2441_v28, 0 }
 0x218   : > { %v1582_v5 = vpop.f32.mrf.mxu2  ;;  %3925 = vrot.lane.b32.xlu0 %v5324_v13, %s5268_s14  ;;  %3927 = vrot.lane.b32.xlu1 %v5317_v8, %s5268_s14 }
 0x219   : > { %v1595_v51 = vpop.f32.mrf.mxu3  ;;  %v6315_v54 = vadd.f32 %v1582_v5, %v6206_v3  ;;  %v1558_v50 = vpop.f32.mrf.mxu0  ;;  %3929 = vrot.lane.b32.xlu2 %v5327_v15, %s5268_s14 }
 0x21a   : > { %v6318_v4 = vadd.f32 %v1595_v51, %v6232_v10  ;;  %v1571_v52 = vpop.f32.mrf.mxu1  ;;  %v2431_v57 = vpop.permute.xlu1 %2430 }
 0x21b   : > { %v2605_v9 = vpop.permute.xlu0 %2604  ;;  %v2433_v44 = vpop.permute.xlu2 %2432 }
 0x21c   : > { %v2443_v18 = vsel %vm2434_vm13, %v2431_v57, %v2433_v44 }
 0x21d   : > { %v2472_v16 = vsel %vm240_vm1, %v2443_v18, 0  ;;  %v6474_v18 = vld [vmem:[%s7371_s1 + $0x34] sm:$0xf] }
 0x220   : > { %v1584_v29 = vpop.f32.mrf.mxu2  ;;  %3931 = vrot.lane.b32.xlu0 %v5333_v20, %s5268_s14  ;;  %3933 = vrot.lane.b32.xlu1 %v5335_v21, %s5268_s14 }
 0x221   : > { %v1597_v30 = vpop.f32.mrf.mxu3  ;;  %v1608_v3 = vpop.f32.mrf.mxu0  ;;  %3935 = vrot.lane.b32.xlu2 %v5337_v22, %s5268_s14 }
 0x222   : > { %v1621_v10 = vpop.f32.mrf.mxu1  ;;  %v6331_v37 = vadd.f32 %v1608_v3, %v6235_v0  ;;  %v2607_v50 = vpop.permute.xlu1 %2606  ;;  %v6397_v30 = vld [vmem:[%s7371_s1 + $0x30] sm:$0xf] }
 0x223   : > { %v6334_v48 = vadd.f32 %v1621_v10, %v6248_v11  ;;  %v2603_v52 = vpop.permute.xlu0 %2602  ;;  %v2609_v26 = vpop.permute.xlu2 %2608  ;;  %v2624_v49 = vsel %vm2622_vm14, %v2605_v9, %v2607_v50 }
 0x224   : > { %5065 = vmatmul.msk.bf16.vlgmr.msrb.gmra.mxu0 %vm236_vm2, %v6296_v62  ;;  %5066 = vmatmul.msk.bf16.vlgmr.msrb.gmra.mxu1 %vm236_vm2, %v6296_v62  ;;  %v2623_v29 = vsel %vm2622_vm14, %v2603_v52, %v2605_v9  ;;  %v2625_v33 = vsel %vm2622_vm14, %v2607_v50, %v2609_v26 }
 0x225   : > { %5067 = vmatmul.msk.bf16.vlgmr.msrb.gmra.mxu2 %vm236_vm2, %v6296_v62  ;;  %2481 = vmatpush.bf16.msrb.mxu0 %v2448_v38  ;;  %v2636_v61 = vsel %vm240_vm1, %v2623_v29, 0  ;;  %v2639_v38 = vsel %vm240_vm1, %v2624_v49, 0 }
 0x226   : > { %5068 = vmatmul.msk.bf16.vlgmr.msrb.gmra.mxu3 %vm236_vm2, %v6296_v62  ;;  %2494 = vmatpush.bf16.msrb.mxu1 %v2451_v39  ;;  %v2642_v39 = vsel %vm240_vm1, %v2625_v33, 0 }
 0x227   : > { %2507 = vmatpush.bf16.msrb.mxu2 %v2454_v41  ;;  %2520 = vmatpush.bf16.msrb.mxu3 %v2457_v42 }
 0x228   : > { %v1634_v0 = vpop.f32.mrf.mxu2  ;;  %3937 = vrot.lane.b32.xlu0 %v5342_v24, %s5268_s14 }
 0x229   : > { %v1647_v11 = vpop.f32.mrf.mxu3  ;;  %v6349_v2 = vadd.f32 %v1634_v0, %v6251_v1  ;;  %v1610_v25 = vpop.f32.mrf.mxu0  ;;  %v2442_v1 = vsel %vm2434_vm13, %v2429_v47, %v2431_v57  ;;  %4111 = vrot.lane.b32.xlu2 %v5313_v6, %s5269_s18 }
 0x22a   : > { %v6352_v23 = vadd.f32 %v1647_v11, %v6270_v34  ;;  %v1623_v53 = vpop.f32.mrf.mxu1  ;;  %v2611_v41 = vpop.permute.xlu1 %2610 }
 0x22b   : > { %v2613_v53 = vpop.permute.xlu2 %2612 }
 0x230   : > { %v1636_v58 = vpop.f32.mrf.mxu2  ;;  %4113 = vrot.lane.b32.xlu0 %v5324_v13, %s5269_s18 }
 0x231   : > { %v1649_v59 = vpop.f32.mrf.mxu3  ;;  %v1731_v36 = vpop.f32.mrf.mxu0  ;;  %v2626_v58 = vsel %vm2622_vm14, %v2609_v26, %v2611_v41  ;;  %4109 = vrot.lane.b32.xlu2 %v5322_v12, %s5269_s18 }
 0x232   : > { %v1744_v40 = vpop.f32.mrf.mxu1  ;;  %v6359_v34 = vadd.f32 %v1731_v36, %v6273_v19  ;;  %v2469_v19 = vsel %vm240_vm1, %v2442_v1, 0  ;;  %v2617_v60 = vpop.permute.xlu1 %2616  ;;  %v2627_v59 = vsel %vm2622_vm14, %v2611_v41, %v2613_v53  ;;  %v2645_v28 = vsel %vm240_vm1, %v2626_v58, 0 }
 0x233   : > { %v6362_v17 = vadd.f32 %v1744_v40, %v6288_v46  ;;  %v2648_v1 = vsel %vm240_vm1, %v2627_v59, 0  ;;  %v2619_v9 = vpop.permute.xlu2 %2618 }
 0x234   : > { %5069 = vmatmul.msk.bf16.vlgmr.msra.gmra.mxu0 %vm236_vm2, %v6296_v62  ;;  %5070 = vmatmul.msk.bf16.vlgmr.msra.gmra.mxu1 %vm236_vm2, %v6296_v62 }
 0x235   : > { %5071 = vmatmul.msk.bf16.vlgmr.msra.gmra.mxu2 %vm236_vm2, %v6296_v62  ;;  %2533 = vmatpush.bf16.msra.mxu0 %v2460_v43 }
 0x236   : > { %5072 = vmatmul.msk.bf16.vlgmr.msra.gmra.mxu3 %vm236_vm2, %v6296_v62  ;;  %2546 = vmatpush.bf16.msra.mxu1 %v2463_v63 }
 0x237   : > { %2559 = vmatpush.bf16.msra.mxu2 %v2466_v32  ;;  %2572 = vmatpush.bf16.msra.mxu3 %v2469_v19 }
 0x238   : > { %v1757_v46 = vpop.f32.mrf.mxu2  ;;  %4117 = vrot.lane.b32.xlu0 %v5327_v15, %s5269_s18 }
 0x239   : > { %v1770_v55 = vpop.f32.mrf.mxu3  ;;  %v6381_v45 = vadd.f32 %v1757_v46, %v6291_v35  ;;  %v1733_v62 = vpop.f32.mrf.mxu0  ;;  %4121 = vrot.lane.b32.xlu2 %v5335_v21, %s5269_s18 }
 0x23a   : > { %v6384_v5 = vadd.f32 %v1770_v55, %v6315_v54  ;;  %v1746_v51 = vpop.f32.mrf.mxu1  ;;  %v2793_v62 = vpop.permute.xlu1 %2792 }
 0x240   : > { %v1759_v27 = vpop.f32.mrf.mxu2  ;;  %4123 = vrot.lane.b32.xlu0 %v5337_v22, %s5269_s18 }
 0x241   : > { %v1772_v7 = vpop.f32.mrf.mxu3  ;;  %v1783_v35 = vpop.f32.mrf.mxu0  ;;  %4297 = vrot.lane.b32.xlu2 %v5322_v12, %s5270_s21 }
 0x242   : > { %v1796_v54 = vpop.f32.mrf.mxu1  ;;  %v6404_v3 = vadd.f32 %v1783_v35, %v6318_v4  ;;  %v2615_v4 = vpop.permute.xlu0 %2614 }
 0x243   : > { %v6407_v10 = vadd.f32 %v1796_v54, %v6331_v37  ;;  %v2629_v56 = vsel %vm2622_vm14, %v2615_v4, %v2617_v60 }
 0x244   : > { %5074 = vmatmul.msk.bf16.vlgmr.msrb.gmra.mxu0 %vm236_vm2, %v6397_v30  ;;  %5075 = vmatmul.msk.bf16.vlgmr.msrb.gmra.mxu1 %vm236_vm2, %v6397_v30 }
 0x245   : > { %5076 = vmatmul.msk.bf16.vlgmr.msrb.gmra.mxu2 %vm236_vm2, %v6397_v30  ;;  %2585 = vmatpush.bf16.msrb.mxu0 %v2472_v16 }
 0x246   : > { %5077 = vmatmul.msk.bf16.vlgmr.msrb.gmra.mxu3 %vm236_vm2, %v6397_v30  ;;  %2669 = vmatpush.bf16.msrb.mxu1 %v2636_v61  ;;  %v2797_v61 = vpop.permute.xlu1 %2796 }
 0x247   : > { %2682 = vmatpush.bf16.msrb.mxu2 %v2639_v38  ;;  %2695 = vmatpush.bf16.msrb.mxu3 %v2642_v39 }
 0x248   : > { %v1809_v37 = vpop.f32.mrf.mxu2  ;;  %4299 = vrot.lane.b32.xlu0 %v5313_v6, %s5270_s21 }
 0x249   : > { %v1822_v14 = vpop.f32.mrf.mxu3  ;;  %v6426_v42 = vadd.f32 %v1809_v37, %v6334_v48  ;;  %v1785_v11 = vpop.f32.mrf.mxu0 }
 0x24a   : > { %v6429_v0 = vadd.f32 %v1822_v14, %v6349_v2  ;;  %v1798_v25 = vpop.f32.mrf.mxu1  ;;  %v2628_v2 = vsel %vm2622_vm14, %v2613_v53, %v2615_v4  ;;  %v2791_v43 = vpop.permute.xlu0 %2790 }
 0x24b   : > { %v2651_v63 = vsel %vm240_vm1, %v2628_v2, 0  ;;  %v2811_v29 = vsel %vm2810_vm15, %v2791_v43, %v2793_v62 }
 0x24e   : > { %v2803_v25 = vpop.permute.xlu1 %2802 }
 0x250   : > { %v1811_v47 = vpop.f32.mrf.mxu2  ;;  %4303 = vrot.lane.b32.xlu0 %v5317_v8, %s5270_s21 }
 0x251   : > { %v1824_v57 = vpop.f32.mrf.mxu3  ;;  %v1835_v48 = vpop.f32.mrf.mxu0 }
 0x252   : > { %v1919_v31 = vpop.f32.mrf.mxu1  ;;  %v6440_v36 = vadd.f32 %v1835_v48, %v6352_v23  ;;  %v2654_v23 = vsel %vm240_vm1, %v2629_v56, 0  ;;  %v2621_v51 = vpop.permute.xlu0 %2620 }
 0x253   : > { %v6443_v40 = vadd.f32 %v1919_v31, %v6359_v34  ;;  %v2631_v26 = vsel %vm2622_vm14, %v2619_v9, %v2621_v51 }
 0x254   : > { %5078 = vmatmul.msk.bf16.vlgmr.msra.gmra.mxu0 %vm236_vm2, %v6397_v30  ;;  %5079 = vmatmul.msk.bf16.vlgmr.msra.gmra.mxu1 %vm236_vm2, %v6397_v30  ;;  %v2660_v16 = vsel %vm240_vm1, %v2631_v26, 0 }
 0x255   : > { %5080 = vmatmul.msk.bf16.vlgmr.msra.gmra.mxu2 %vm236_vm2, %v6397_v30  ;;  %2708 = vmatpush.bf16.msra.mxu0 %v2645_v28 }
 0x256   : > { %5081 = vmatmul.msk.bf16.vlgmr.msra.gmra.mxu3 %vm236_vm2, %v6397_v30  ;;  %2721 = vmatpush.bf16.msra.mxu1 %v2648_v1 }
 0x257   : > { %2734 = vmatpush.bf16.msra.mxu2 %v2651_v63  ;;  %2747 = vmatpush.bf16.msra.mxu3 %v2654_v23 }
 0x258   : > { %v1932_v34 = vpop.f32.mrf.mxu2  ;;  %4309 = vrot.lane.b32.xlu0 %v5335_v21, %s5270_s21 }
 0x259   : > { %v1945_v32 = vpop.f32.mrf.mxu3  ;;  %v6458_v44 = vadd.f32 %v1932_v34, %v6362_v17  ;;  %v1837_v46 = vpop.f32.mrf.mxu0 }
 0x25a   : > { %v6461_v19 = vadd.f32 %v1945_v32, %v6381_v45  ;;  %v1921_v55 = vpop.f32.mrf.mxu1  ;;  %v2795_v17 = vpop.permute.xlu2 %2794  ;;  %v2630_v45 = vsel %vm2622_vm14, %v2617_v60, %v2619_v9 }
 0x25b   : > { %v2812_v35 = vsel %vm2810_vm15, %v2793_v62, %v2795_v17  ;;  %v2657_v33 = vsel %vm240_vm1, %v2630_v45, 0  ;;  %v2801_v11 = vpop.permute.xlu0 %2800  ;;  %v2813_v60 = vsel %vm2810_vm15, %v2795_v17, %v2797_v61  ;;  %v2809_v46 = vpop.permute.xlu1 %2808 }
 0x25c   : > { %v2816_v59 = vsel %vm2810_vm15, %v2801_v11, %v2803_v25  ;;  %v2830_v2 = vsel %vm240_vm1, %v2813_v60, 0 }
 0x25d   : > { %v2839_v43 = vsel %vm240_vm1, %v2816_v59, 0 }
 0x260   : > { %v1934_v50 = vpop.f32.mrf.mxu2 }
 0x261   : > { %v1947_v52 = vpop.f32.mrf.mxu3  ;;  %v1958_v27 = vpop.f32.mrf.mxu0 }
 0x262   : > { %v1971_v7 = vpop.f32.mrf.mxu1  ;;  %v6479_v54 = vadd.f32 %v1958_v27, %v6384_v5  ;;  %v2824_v5 = vsel %vm240_vm1, %v2811_v29, 0  ;;  %v2799_v14 = vpop.permute.xlu2 %2798  ;;  %v6559_v29 = vld [vmem:[%s7371_s1 + $0x38] sm:$0xf] }
 0x263   : > { %v6482_v49 = vadd.f32 %v1971_v7, %v6404_v3  ;;  %v2827_v3 = vsel %vm240_vm1, %v2812_v35, 0  ;;  %v2815_v58 = vsel %vm2810_vm15, %v2799_v14, %v2801_v11 }
 0x264   : > { %5082 = vmatmul.msk.bf16.vlgmr.msrb.gmra.mxu0 %vm236_vm2, %v6397_v30  ;;  %5084 = vmatmul.msk.bf16.vlgmr.msrb.gmra.mxu1 %vm236_vm2, %v6474_v18  ;;  %v2836_v28 = vsel %vm240_vm1, %v2815_v58, 0 }
 0x265   : > { %5085 = vmatmul.msk.bf16.vlgmr.msrb.gmra.mxu2 %vm236_vm2, %v6474_v18  ;;  %2760 = vmatpush.bf16.msrb.mxu0 %v2657_v33 }
 0x266   : > { %5086 = vmatmul.msk.bf16.vlgmr.msrb.gmra.mxu3 %vm236_vm2, %v6474_v18  ;;  %2773 = vmatpush.bf16.msrb.mxu1 %v2660_v16  ;;  %v2983_v16 = vpop.permute.xlu1 %2982 }
 0x267   : > { %2857 = vmatpush.bf16.msrb.mxu2 %v2824_v5  ;;  %2870 = vmatpush.bf16.msrb.mxu3 %v2827_v3 }
 0x268   : > { %v1984_v38 = vpop.f32.mrf.mxu2 }
 0x269   : > { %v1997_v30 = vpop.f32.mrf.mxu3  ;;  %v6503_v39 = vadd.f32 %v1984_v38, %v6407_v10  ;;  %v1960_v4 = vpop.f32.mrf.mxu0 }
 0x26a   : > { %v6506_v41 = vadd.f32 %v1997_v30, %v6426_v42  ;;  %v1973_v37 = vpop.f32.mrf.mxu1  ;;  %v2814_v42 = vsel %vm2810_vm15, %v2797_v61, %v2799_v14  ;;  %v2805_v1 = vpop.permute.xlu2 %2804 }
 0x26b   : > { %v2833_v56 = vsel %vm240_vm1, %v2814_v42, 0  ;;  %v2817_v50 = vsel %vm2810_vm15, %v2803_v25, %v2805_v1 }
 0x26c   : > { %v2842_v35 = vsel %vm240_vm1, %v2817_v50, 0 }
 0x26e   : > { %v2989_v14 = vpop.permute.xlu1 %2988 }
 0x270   : > { %v1986_v53 = vpop.f32.mrf.mxu2 }
 0x271   : > { %v1999_v10 = vpop.f32.mrf.mxu3  ;;  %v2010_v47 = vpop.f32.mrf.mxu0 }
 0x272   : > { %v2023_v57 = vpop.f32.mrf.mxu1  ;;  %v6519_v48 = vadd.f32 %v2010_v47, %v6429_v0  ;;  %v2807_v0 = vpop.permute.xlu0 %2806 }
 0x273   : > { %v6522_v31 = vadd.f32 %v2023_v57, %v6440_v36  ;;  %v2979_v55 = vpop.permute.xlu2 %2978  ;;  %v2818_v52 = vsel %vm2810_vm15, %v2805_v1, %v2807_v0 }
 0x274   : > { %5087 = vmatmul.msk.bf16.vlgmr.msra.gmra.mxu0 %vm236_vm2, %v6474_v18  ;;  %5088 = vmatmul.msk.bf16.vlgmr.msra.gmra.mxu1 %vm236_vm2, %v6474_v18  ;;  %v2845_v33 = vsel %vm240_vm1, %v2818_v52, 0 }
 0x275   : > { %5089 = vmatmul.msk.bf16.vlgmr.msra.gmra.mxu2 %vm236_vm2, %v6474_v18  ;;  %2883 = vmatpush.bf16.msra.mxu0 %v2830_v2 }
 0x276   : > { %5090 = vmatmul.msk.bf16.vlgmr.msra.gmra.mxu3 %vm236_vm2, %v6474_v18  ;;  %2896 = vmatpush.bf16.msra.mxu1 %v2833_v56 }
 0x277   : > { %2909 = vmatpush.bf16.msra.mxu2 %v2836_v28  ;;  %2922 = vmatpush.bf16.msra.mxu3 %v2839_v43 }
 0x278   : > { %v2107_v36 = vpop.f32.mrf.mxu2 }
 0x279   : > { %v2120_v63 = vpop.f32.mrf.mxu3  ;;  %v6537_v9 = vadd.f32 %v2107_v36, %v6443_v40  ;;  %v2012_v34 = vpop.f32.mrf.mxu0  ;;  %v2819_v40 = vsel %vm2810_vm15, %v2807_v0, %v2809_v46 }
 0x27a   : > { %v6540_v23 = vadd.f32 %v2120_v63, %v6458_v44  ;;  %v2025_v32 = vpop.f32.mrf.mxu1  ;;  %v2981_v62 = vpop.permute.xlu0 %2980 }
 0x27b   : > { %v2999_v27 = vsel %vm2998_vm0, %v2979_v55, %v2981_v62  ;;  %v2985_v4 = vpop.permute.xlu2 %2984  ;;  %v3000_v53 = vsel %vm2998_vm0, %v2981_v62, %v2983_v16  ;;  %v2995_v34 = vpop.permute.xlu1 %2994 }
 0x27c   : > { %v3015_v58 = vsel %vm240_vm1, %v3000_v53, 0 }
 0x280   : > { %v2109_v51 = vpop.f32.mrf.mxu2 }
 0x281   : > { %v2122_v17 = vpop.f32.mrf.mxu3  ;;  %v2133_v45 = vpop.f32.mrf.mxu0 }
 0x282   : > { %v2146_v26 = vpop.f32.mrf.mxu1  ;;  %v6551_v44 = vadd.f32 %v2133_v45, %v6461_v19  ;;  %v2848_v19 = vsel %vm240_vm1, %v2819_v40, 0  ;;  %v2987_v37 = vpop.permute.xlu0 %2986 }
 0x283   : > { %v6554_v7 = vadd.f32 %v2146_v26, %v6479_v54  ;;  %v3012_v54 = vsel %vm240_vm1, %v2999_v27, 0  ;;  %v3002_v60 = vsel %vm2998_vm0, %v2985_v4, %v2987_v37  ;;  %v3003_v42 = vsel %vm2998_vm0, %v2987_v37, %v2989_v14  ;;  %v2991_v56 = vpop.permute.xlu2 %2990  ;;  %v6632_v26 = vld [vmem:[%s7371_s1 + $0x3c] sm:$0xf] }
 0x284   : > { %5091 = vmatmul.msk.bf16.vlgmr.msrb.gmra.mxu0 %vm236_vm2, %v6474_v18  ;;  %5092 = vmatmul.msk.bf16.vlgmr.msrb.gmra.mxu1 %vm236_vm2, %v6474_v18  ;;  %v3021_v2 = vsel %vm240_vm1, %v3002_v60, 0  ;;  %v3024_v28 = vsel %vm240_vm1, %v3003_v42, 0  ;;  %v3004_v62 = vsel %vm2998_vm0, %v2989_v14, %v2991_v56 }
 0x285   : > { %5094 = vmatmul.msk.bf16.vlgmr.msrb.gmra.mxu2 %vm236_vm2, %v6559_v29  ;;  %2935 = vmatpush.bf16.msrb.mxu0 %v2842_v35  ;;  %v3027_v40 = vsel %vm240_vm1, %v3004_v62, 0  ;;  %v3169_v35 = vpop.permute.xlu1 %3168 }
 0x286   : > { %5095 = vmatmul.msk.bf16.vlgmr.msrb.gmra.mxu3 %vm236_vm2, %v6559_v29  ;;  %2948 = vmatpush.bf16.msrb.mxu1 %v2845_v33 }
 0x287   : > { %2961 = vmatpush.bf16.msrb.mxu2 %v2848_v19  ;;  %3045 = vmatpush.bf16.msrb.mxu3 %v3012_v54 }
 0x288   : > { %v2159_v5 = vpop.f32.mrf.mxu2 }
 0x289   : > { %v2172_v3 = vpop.f32.mrf.mxu3  ;;  %v6574_v61 = vadd.f32 %v2159_v5, %v6482_v49  ;;  %v2135_v38 = vpop.f32.mrf.mxu0  ;;  %v3001_v49 = vsel %vm2998_vm0, %v2983_v16, %v2985_v4 }
 0x28a   : > { %v6577_v18 = vadd.f32 %v2172_v3, %v6503_v39  ;;  %v2148_v30 = vpop.f32.mrf.mxu1  ;;  %v3018_v59 = vsel %vm240_vm1, %v3001_v49, 0  ;;  %v2993_v63 = vpop.permute.xlu0 %2992 }
 0x28b   : > { %v2997_v32 = vpop.permute.xlu2 %2996  ;;  %v3005_v51 = vsel %vm2998_vm0, %v2991_v56, %v2993_v63  ;;  %v3006_v52 = vsel %vm2998_vm0, %v2993_v63, %v2995_v34 }
 0x28c   : > { %v3030_v27 = vsel %vm240_vm1, %v3005_v51, 0 }
 0x28d   : > { %v3175_v4 = vpop.permute.xlu1 %3174 }
 0x290   : > { %v2161_v11 = vpop.f32.mrf.mxu2 }
 0x291   : > { %v2174_v25 = vpop.f32.mrf.mxu3  ;;  %v2185_v10 = vpop.f32.mrf.mxu0 }
 0x292   : > { %v2198_v39 = vpop.f32.mrf.mxu1  ;;  %v6592_v47 = vadd.f32 %v2185_v10, %v6506_v41  ;;  %v3167_v33 = vpop.permute.xlu0 %3166 }
 0x293   : > { %v6595_v57 = vadd.f32 %v2198_v39, %v6519_v48  ;;  %v3187_v25 = vsel %vm3186_vm3, %v3167_v33, %v3169_v35 }
 0x294   : > { %5096 = vmatmul.msk.bf16.vlgmr.msra.gmra.mxu0 %vm236_vm2, %v6559_v29  ;;  %5097 = vmatmul.msk.bf16.vlgmr.msra.gmra.mxu1 %vm236_vm2, %v6559_v29  ;;  %v3200_v42 = vsel %vm240_vm1, %v3187_v25, 0 }
 0x295   : > { %5098 = vmatmul.msk.bf16.vlgmr.msra.gmra.mxu2 %vm236_vm2, %v6559_v29  ;;  %3058 = vmatpush.bf16.msra.mxu0 %v3015_v58 }
 0x296   : > { %5099 = vmatmul.msk.bf16.vlgmr.msra.gmra.mxu3 %vm236_vm2, %v6559_v29  ;;  %3071 = vmatpush.bf16.msra.mxu1 %v3018_v59 }
 0x297   : > { %3084 = vmatpush.bf16.msra.mxu2 %v3021_v2  ;;  %3097 = vmatpush.bf16.msra.mxu3 %v3024_v28 }
 0x298   : > { %v2211_v41 = vpop.f32.mrf.mxu2 }
 0x299   : > { %v2295_v48 = vpop.f32.mrf.mxu3  ;;  %v6610_v1 = vadd.f32 %v2211_v41, %v6522_v31  ;;  %v2187_v0 = vpop.f32.mrf.mxu0  ;;  %v3007_v31 = vsel %vm2998_vm0, %v2995_v34, %v2997_v32 }
 0x29a   : > { %v6613_v43 = vadd.f32 %v2295_v48, %v6537_v9  ;;  %v2200_v36 = vpop.f32.mrf.mxu1  ;;  %v3173_v30 = vpop.permute.xlu0 %3172 }
 0x29b   : > { %v3190_v49 = vsel %vm3186_vm3, %v3173_v30, %v3175_v4  ;;  %v3181_v36 = vpop.permute.xlu1 %3180 }
 0x29c   : > { %v3209_v2 = vsel %vm240_vm1, %v3190_v49, 0 }
 0x2a0   : > { %v2213_v46 = vpop.f32.mrf.mxu2 }
 0x2a1   : > { %v2297_v55 = vpop.f32.mrf.mxu3  ;;  %v2308_v17 = vpop.f32.mrf.mxu0 }
 0x2a2   : > { %v2321_v50 = vpop.f32.mrf.mxu1  ;;  %v6624_v9 = vadd.f32 %v2308_v17, %v6540_v23  ;;  %v3033_v23 = vsel %vm240_vm1, %v3006_v52, 0  ;;  %v3179_v0 = vpop.permute.xlu0 %3178 }
 0x2a3   : > { %v6627_v45 = vadd.f32 %v2321_v50, %v6551_v44  ;;  %v3036_v44 = vsel %vm240_vm1, %v3007_v31, 0  ;;  %v3193_v17 = vsel %vm3186_vm3, %v3179_v0, %v3181_v36 }
 0x2a4   : > { %5100 = vmatmul.msk.bf16.vlgmr.msrb.gmra.mxu0 %vm236_vm2, %v6559_v29  ;;  %5101 = vmatmul.msk.bf16.vlgmr.msrb.gmra.mxu1 %vm236_vm2, %v6559_v29 }
 0x2a5   : > { %5102 = vmatmul.msk.bf16.vlgmr.msrb.gmra.mxu2 %vm236_vm2, %v6559_v29  ;;  %3110 = vmatpush.bf16.msrb.mxu0 %v3027_v40  ;;  %v3171_v29 = vpop.permute.xlu2 %3170  ;;  %v3357_v40 = vpop.permute.xlu1 %3356 }
 0x2a6   : > { %5104 = vmatmul.msk.bf16.vlgmr.msrb.gmra.mxu3 %vm236_vm2, %v6632_v26  ;;  %3123 = vmatpush.bf16.msrb.mxu1 %v3030_v27  ;;  %v3188_v11 = vsel %vm3186_vm3, %v3169_v35, %v3171_v29  ;;  %v3218_v27 = vsel %vm240_vm1, %v3193_v17, 0 }
 0x2a7   : > { %3136 = vmatpush.bf16.msrb.mxu2 %v3033_v23  ;;  %3149 = vmatpush.bf16.msrb.mxu3 %v3036_v44  ;;  %v3203_v60 = vsel %vm240_vm1, %v3188_v11, 0 }
 0x2a8   : > { %v2334_v19 = vpop.f32.mrf.mxu2 }
 0x2a9   : > { %v2347_v16 = vpop.f32.mrf.mxu3  ;;  %v6647_v54 = vadd.f32 %v2334_v19, %v6554_v7  ;;  %v2310_v3 = vpop.f32.mrf.mxu0 }
 0x2aa   : > { %v6650_v5 = vadd.f32 %v2347_v16, %v6574_v61  ;;  %v2323_v38 = vpop.f32.mrf.mxu1  ;;  %v3189_v61 = vsel %vm3186_vm3, %v3171_v29, %v3173_v30 }
 0x2ab   : > { %v3206_v58 = vsel %vm240_vm1, %v3189_v61, 0 }
 0x2ad   : > { %v3177_v59 = vpop.permute.xlu2 %3176  ;;  %v3355_v38 = vpop.permute.xlu1 %3354 }
 0x2ae   : > { %v3191_v46 = vsel %vm3186_vm3, %v3175_v4, %v3177_v59  ;;  %v3192_v55 = vsel %vm3186_vm3, %v3177_v59, %v3179_v0 }
 0x2af   : > { %v3212_v52 = vsel %vm240_vm1, %v3191_v46, 0  ;;  %v3215_v31 = vsel %vm240_vm1, %v3192_v55, 0 }
 0x2b0   : > { %v2336_v37 = vpop.f32.mrf.mxu2 }
 0x2b1   : > { %v2349_v14 = vpop.f32.mrf.mxu3  ;;  %v2360_v7 = vpop.f32.mrf.mxu0  ;;  %v3375_v37 = vsel %vm3374_vm4, %v3355_v38, %v3357_v40 }
 0x2b2   : > { %v2373_v53 = vpop.f32.mrf.mxu1  ;;  %v6661_v10 = vadd.f32 %v2360_v7, %v6577_v18  ;;  %v3388_v49 = vsel %vm240_vm1, %v3375_v37, 0 }
 0x2b3   : > { %v6664_v39 = vadd.f32 %v2373_v53, %v6592_v47 }
 0x2b4   : > { %5105 = vmatmul.msk.bf16.vlgmr.msra.gmra.mxu0 %vm236_vm2, %v6632_v26  ;;  %5106 = vmatmul.msk.bf16.vlgmr.msra.gmra.mxu1 %vm236_vm2, %v6632_v26 }
 0x2b5   : > { %5107 = vmatmul.msk.bf16.vlgmr.msra.gmra.mxu2 %vm236_vm2, %v6632_v26  ;;  %3233 = vmatpush.bf16.msra.mxu0 %v3200_v42  ;;  %v3183_v63 = vpop.permute.xlu2 %3182 }
 0x2b6   : > { %5108 = vmatmul.msk.bf16.vlgmr.msra.gmra.mxu3 %vm236_vm2, %v6632_v26  ;;  %3246 = vmatpush.bf16.msra.mxu1 %v3203_v60 }
 0x2b7   : > { %3259 = vmatpush.bf16.msra.mxu2 %v3206_v58  ;;  %3272 = vmatpush.bf16.msra.mxu3 %v3209_v2 }
 0x2b8   : > { %v2386_v18 = vpop.f32.mrf.mxu2 }
 0x2b9   : > { %v2399_v47 = vpop.f32.mrf.mxu3  ;;  %v6679_v56 = vadd.f32 %v2386_v18, %v6595_v57  ;;  %v2362_v41 = vpop.f32.mrf.mxu0  ;;  %v3194_v57 = vsel %vm3186_vm3, %v3181_v36, %v3183_v63 }
 0x2ba   : > { %v6682_v28 = vadd.f32 %v2399_v47, %v6610_v1  ;;  %v2375_v48 = vpop.f32.mrf.mxu1  ;;  %v3221_v23 = vsel %vm240_vm1, %v3194_v57, 0 }
 0x2bb   : > { %v177_v48 = vld [vmem:[%s5308_s17 + $0x28] sm:$0xf]  ;;  %s5271_s17 = smov 109  }
 0x2bc   : > { %v3919_v36 = vunpack.c.l.b16 %v177_v48 }
 0x2bd   : > { %v3359_v3 = vpop.permute.xlu2 %3358 }
 0x2c0   : > { %v2388_v34 = vpop.f32.mrf.mxu2 }
 0x2c1   : > { %v2401_v32 = vpop.f32.mrf.mxu3  ;;  %v2483_v62 = vpop.f32.mrf.mxu0 }
 0x2c2   : > { %v2496_v51 = vpop.f32.mrf.mxu1  ;;  %v6689_v1 = vadd.f32 %v2483_v62, %v6613_v43  ;;  %v3185_v43 = vpop.permute.xlu0 %3184 }
 0x2c3   : > { %v6692_v50 = vadd.f32 %v2496_v51, %v6624_v9  ;;  %v3195_v4 = vsel %vm3186_vm3, %v3183_v63, %v3185_v43  ;;  %v6746_v63 = vpack.c.b16 %v3919_v36, %v3919_v36 }
 0x2c4   : > { %5109 = vmatmul.msk.bf16.vlgmr.msrb.gmra.mxu0 %vm236_vm2, %v6632_v26  ;;  %5110 = vmatmul.msk.bf16.vlgmr.msrb.gmra.mxu1 %vm236_vm2, %v6632_v26  ;;  %v3224_v61 = vsel %vm240_vm1, %v3195_v4, 0 }
 0x2c5   : > { %5111 = vmatmul.msk.bf16.vlgmr.msrb.gmra.mxu2 %vm236_vm2, %v6632_v26  ;;  %3285 = vmatpush.bf16.msrb.mxu0 %v3212_v52 }
 0x2c6   : > { %5112 = vmatmul.msk.bf16.vlgmr.msrb.gmra.mxu3 %vm236_vm2, %v6632_v26  ;;  %3298 = vmatpush.bf16.msrb.mxu1 %v3215_v31 }
 0x2c7   : > { %3311 = vmatpush.bf16.msrb.mxu2 %v3218_v27  ;;  %3324 = vmatpush.bf16.msrb.mxu3 %v3221_v23 }
 0x2c8   : > { %v2509_v9 = vpop.f32.mrf.mxu2  ;;  %3939 = vrot.lane.b32.xlu1 %v6746_v63, %s5268_s14  ;;  %4127 = vrot.lane.b32.xlu2 %v6746_v63, %s5269_s18 }
 0x2c9   : > { %v2522_v44 = vpop.f32.mrf.mxu3  ;;  %v6707_v35 = vadd.f32 %v2509_v9, %v6627_v45  ;;  %v2485_v19 = vpop.f32.mrf.mxu0  ;;  %v6717_v45 = vld [vmem:[%s7371_s1 + $0x40] sm:$0xf]  ;;  %4315 = vrot.lane.b32.xlu0 %v6746_v63, %s5270_s21 }
 0x2ca   : > { %v6710_v33 = vadd.f32 %v2522_v44, %v6647_v54  ;;  %v2498_v16 = vpop.f32.mrf.mxu1  ;;  %v3361_v29 = vpop.permute.xlu0 %3360  ;;  %v3376_v54 = vsel %vm3374_vm4, %v3357_v40, %v3359_v3 }
 0x2cb   : > { %v3377_v25 = vsel %vm3374_vm4, %v3359_v3, %v3361_v29  ;;  %v3391_v60 = vsel %vm240_vm1, %v3376_v54, 0 }
 0x2cc   : > { %v3394_v42 = vsel %vm240_vm1, %v3377_v25, 0 }
 0x2d0   : > { %v2511_v30 = vpop.f32.mrf.mxu2  ;;  %4115 = vrot.lane.b32.xlu1 %v5317_v8, %s5269_s18  ;;  %4307 = vrot.lane.b32.xlu2 %v5333_v20, %s5270_s21 }
 0x2d1   : > { %v2524_v26 = vpop.f32.mrf.mxu3  ;;  %v2535_v14 = vpop.f32.mrf.mxu0  ;;  %4489 = vrot.lane.b32.xlu0 %v5324_v13, %s5271_s17 }
 0x2d2   : > { %v2548_v11 = vpop.f32.mrf.mxu1  ;;  %v6722_v7 = vadd.f32 %v2535_v14, %v6650_v5  ;;  %v3363_v5 = vpop.permute.xlu2 %3362 }
 0x2d3   : > { %v6725_v53 = vadd.f32 %v2548_v11, %v6661_v10  ;;  %v3367_v10 = vpop.permute.xlu1 %3366  ;;  %v3365_v0 = vpop.permute.xlu0 %3364  ;;  %v3378_v32 = vsel %vm3374_vm4, %v3361_v29, %v3363_v5  ;;  %v6797_v11 = vld [vmem:[%s7371_s1 + $0x44] sm:$0xf] }
 0x2d4   : > { %5114 = vmatmul.msk.bf16.vlgmr.msra.gmra.mxu0 %vm236_vm2, %v6717_v45  ;;  %5115 = vmatmul.msk.bf16.vlgmr.msra.gmra.mxu1 %vm236_vm2, %v6717_v45  ;;  %v3379_v46 = vsel %vm3374_vm4, %v3363_v5, %v3365_v0  ;;  %v3380_v51 = vsel %vm3374_vm4, %v3365_v0, %v3367_v10  ;;  %v3397_v31 = vsel %vm240_vm1, %v3378_v32, 0 }
 0x2d5   : > { %5116 = vmatmul.msk.bf16.vlgmr.msra.gmra.mxu2 %vm236_vm2, %v6717_v45  ;;  %3337 = vmatpush.bf16.msra.mxu0 %v3224_v61  ;;  %v3400_v40 = vsel %vm240_vm1, %v3379_v46, 0  ;;  %v3403_v23 = vsel %vm240_vm1, %v3380_v51, 0 }
 0x2d6   : > { %5117 = vmatmul.msk.bf16.vlgmr.msra.gmra.mxu3 %vm236_vm2, %v6717_v45  ;;  %3421 = vmatpush.bf16.msra.mxu1 %v3388_v49 }
 0x2d7   : > { %3434 = vmatpush.bf16.msra.mxu2 %v3391_v60  ;;  %3447 = vmatpush.bf16.msra.mxu3 %v3394_v42 }
 0x2d8   : > { %v2561_v58 = vpop.f32.mrf.mxu2  ;;  %4119 = vrot.lane.b32.xlu1 %v5333_v20, %s5269_s18  ;;  %4313 = vrot.lane.b32.xlu2 %v5342_v24, %s5270_s21 }
 0x2d9   : > { %v2574_v59 = vpop.f32.mrf.mxu3  ;;  %v6740_v2 = vadd.f32 %v2561_v58, %v6664_v39  ;;  %v2537_v47 = vpop.f32.mrf.mxu0  ;;  %4495 = vrot.lane.b32.xlu0 %v5333_v20, %s5271_s17 }
 0x2da   : > { %v6743_v18 = vadd.f32 %v2574_v59, %v6679_v56  ;;  %v2550_v41 = vpop.f32.mrf.mxu1  ;;  %v3369_v34 = vpop.permute.xlu2 %3368 }
 0x2db   : > { %v3381_v17 = vsel %vm3374_vm4, %v3367_v10, %v3369_v34  ;;  %v3543_v27 = vpop.permute.xlu1 %3542 }
 0x2dc   : > { %v3406_v43 = vsel %vm240_vm1, %v3381_v17, 0 }
 0x2e0   : > { %v2563_v39 = vpop.f32.mrf.mxu2  ;;  %4125 = vrot.lane.b32.xlu1 %v5342_v24, %s5269_s18  ;;  %4487 = vrot.lane.b32.xlu2 %v5313_v6, %s5271_s17 }
 0x2e1   : > { %v2576_v56 = vpop.f32.mrf.mxu3  ;;  %v2587_v55 = vpop.f32.mrf.mxu0  ;;  %4501 = vrot.lane.b32.xlu0 %v5342_v24, %s5271_s17 }
 0x2e2   : > { %v2671_v62 = vpop.f32.mrf.mxu1  ;;  %v6759_v57 = vadd.f32 %v2587_v55, %v6682_v28  ;;  %v3371_v28 = vpop.permute.xlu0 %3370 }
 0x2e3   : > { %v6762_v52 = vadd.f32 %v2671_v62, %v6689_v1  ;;  %v3545_v38 = vpop.permute.xlu2 %3544  ;;  %v3373_v29 = vpop.permute.xlu1 %3372  ;;  %v3382_v37 = vsel %vm3374_vm4, %v3369_v34, %v3371_v28 }
 0x2e4   : > { %5118 = vmatmul.msk.bf16.vlgmr.msrb.gmra.mxu0 %vm236_vm2, %v6717_v45  ;;  %5119 = vmatmul.msk.bf16.vlgmr.msrb.gmra.mxu1 %vm236_vm2, %v6717_v45  ;;  %v3383_v14 = vsel %vm3374_vm4, %v3371_v28, %v3373_v29  ;;  %v3563_v54 = vsel %vm3562_vm5, %v3543_v27, %v3545_v38  ;;  %v3409_v60 = vsel %vm240_vm1, %v3382_v37, 0 }
 0x2e5   : > { %5120 = vmatmul.msk.bf16.vlgmr.msrb.gmra.mxu2 %vm236_vm2, %v6717_v45  ;;  %3460 = vmatpush.bf16.msrb.mxu0 %v3397_v31  ;;  %v3412_v42 = vsel %vm240_vm1, %v3383_v14, 0  ;;  %v3576_v5 = vsel %vm240_vm1, %v3563_v54, 0 }
 0x2e6   : > { %5121 = vmatmul.msk.bf16.vlgmr.msrb.gmra.mxu3 %vm236_vm2, %v6717_v45  ;;  %3473 = vmatpush.bf16.msrb.mxu1 %v3400_v40 }
 0x2e7   : > { %3486 = vmatpush.bf16.msrb.mxu2 %v3403_v23  ;;  %3499 = vmatpush.bf16.msrb.mxu3 %v3406_v43 }
 0x2e8   : > { %v2684_v1 = vpop.f32.mrf.mxu2  ;;  %4301 = vrot.lane.b32.xlu1 %v5324_v13, %s5270_s21  ;;  %4493 = vrot.lane.b32.xlu2 %v5327_v15, %s5271_s17 }
 0x2e9   : > { %v2697_v9 = vpop.f32.mrf.mxu3  ;;  %v6781_v44 = vadd.f32 %v2684_v1, %v6692_v50  ;;  %v2589_v16 = vpop.f32.mrf.mxu0  ;;  %4675 = vrot.lane.b32.xlu0 %v5313_v6, %s5272_s28 }
 0x2ea   : > { %v6784_v19 = vadd.f32 %v2697_v9, %v6707_v35  ;;  %v2673_v3 = vpop.f32.mrf.mxu1  ;;  %v3547_v30 = vpop.permute.xlu0 %3546 }
 0x2eb   : > { %v3564_v25 = vsel %vm3562_vm5, %v3545_v38, %v3547_v30  ;;  %v3549_v58 = vpop.permute.xlu2 %3548  ;;  %v3553_v0 = vpop.permute.xlu1 %3552 }
 0x2ec   : > { %v3579_v10 = vsel %vm240_vm1, %v3564_v25, 0  ;;  %v3565_v56 = vsel %vm3562_vm5, %v3547_v30, %v3549_v58 }
 0x2ed   : > { %v3582_v17 = vsel %vm240_vm1, %v3565_v56, 0 }
 0x2f0   : > { %v2686_v26 = vpop.f32.mrf.mxu2  ;;  %4305 = vrot.lane.b32.xlu1 %v5327_v15, %s5270_s21  ;;  %4499 = vrot.lane.b32.xlu2 %v5337_v22, %s5271_s17 }
 0x2f1   : > { %v2699_v4 = vpop.f32.mrf.mxu3  ;;  %v2710_v50 = vpop.f32.mrf.mxu0  ;;  %4681 = vrot.lane.b32.xlu0 %v5327_v15, %s5272_s28 }
 0x2f2   : > { %v2723_v35 = vpop.f32.mrf.mxu1  ;;  %v6804_v61 = vadd.f32 %v2710_v50, %v6710_v33  ;;  %v3551_v48 = vpop.permute.xlu0 %3550 }
 0x2f3   : > { %v6807_v49 = vadd.f32 %v2723_v35, %v6722_v7  ;;  %v3555_v36 = vpop.permute.xlu2 %3554  ;;  %v3566_v32 = vsel %vm3562_vm5, %v3549_v58, %v3551_v48  ;;  %v3567_v46 = vsel %vm3562_vm5, %v3551_v48, %v3553_v0  ;;  %v6892_v35 = vld [vmem:[%s7371_s1 + $0x48] sm:$0xf] }
 0x2f4   : > { %5122 = vmatmul.msk.bf16.vlgmr.msra.gmra.mxu0 %vm236_vm2, %v6717_v45  ;;  %5124 = vmatmul.msk.bf16.vlgmr.msra.gmra.mxu1 %vm236_vm2, %v6797_v11  ;;  %v3568_v55 = vsel %vm3562_vm5, %v3553_v0, %v3555_v36  ;;  %v3585_v31 = vsel %vm240_vm1, %v3566_v32, 0  ;;  %v3588_v6 = vsel %vm240_vm1, %v3567_v46, 0 }
 0x2f5   : > { %5125 = vmatmul.msk.bf16.vlgmr.msra.gmra.mxu2 %vm236_vm2, %v6797_v11  ;;  %3512 = vmatpush.bf16.msra.mxu0 %v3409_v60  ;;  %v3591_v40 = vsel %vm240_vm1, %v3568_v55, 0 }
 0x2f6   : > { %5126 = vmatmul.msk.bf16.vlgmr.msra.gmra.mxu3 %vm236_vm2, %v6797_v11  ;;  %3525 = vmatpush.bf16.msra.mxu1 %v3412_v42 }
 0x2f7   : > { %3609 = vmatpush.bf16.msra.mxu2 %v3576_v5  ;;  %3622 = vmatpush.bf16.msra.mxu3 %v3579_v10 }
 0x2f8   : > { %v2736_v33 = vpop.f32.mrf.mxu2  ;;  %4311 = vrot.lane.b32.xlu1 %v5337_v22, %s5270_s21  ;;  %4673 = vrot.lane.b32.xlu2 %v5322_v12, %s5272_s28  ;;  %s5206_s21 = smul.u32 72, %s7375_s13 }
 0x2f9   : > { %v2749_v45 = vpop.f32.mrf.mxu3  ;;  %v6826_v7 = vadd.f32 %v2736_v33, %v6725_v53  ;;  %v2712_v47 = vpop.f32.mrf.mxu0  ;;  %4687 = vrot.lane.b32.xlu0 %v5337_v22, %s5272_s28 }
 0x2fa   : > { %v6829_v59 = vadd.f32 %v2749_v45, %v6740_v2  ;;  %v2725_v41 = vpop.f32.mrf.mxu1  ;;  %v3557_v27 = vpop.permute.xlu0 %3556  ;;  %s7346_s24 = scalar_lea.vmem %s7373_s3, %s5206_s21 }
 0x2fb   : > { %v3561_v16 = vpop.permute.xlu2 %3560  ;;  %v3569_v26 = vsel %vm3562_vm5, %v3555_v36, %v3557_v27 }
 0x2fc   : > { %v3594_v22 = vsel %vm240_vm1, %v3569_v26, 0 }
 0x300   : > { %v2738_v34 = vpop.f32.mrf.mxu2  ;;  %4485 = vrot.lane.b32.xlu1 %v5322_v12, %s5271_s17  ;;  %4679 = vrot.lane.b32.xlu2 %v5317_v8, %s5272_s28 }
 0x301   : > { %v2751_v39 = vpop.f32.mrf.mxu3  ;;  %v2762_v53 = vpop.f32.mrf.mxu0 }
 0x302   : > { %v2775_v2 = vpop.f32.mrf.mxu1  ;;  %v6844_v62 = vadd.f32 %v2762_v53, %v6743_v18  ;;  %v3559_v18 = vpop.permute.xlu1 %3558 }
 0x303   : > { %v6847_v51 = vadd.f32 %v2775_v2, %v6759_v57  ;;  %v3731_v3 = vpop.permute.xlu0 %3730  ;;  %v3570_v15 = vsel %vm3562_vm5, %v3557_v27, %v3559_v18  ;;  %v3571_v4 = vsel %vm3562_vm5, %v3559_v18, %v3561_v16  ;;  %v3735_v25 = vpop.permute.xlu2 %3734 }
 0x304   : > { %5127 = vmatmul.msk.bf16.vlgmr.msrb.gmra.mxu0 %vm236_vm2, %v6797_v11  ;;  %5128 = vmatmul.msk.bf16.vlgmr.msrb.gmra.mxu1 %vm236_vm2, %v6797_v11  ;;  %v3597_v54 = vsel %vm240_vm1, %v3570_v15, 0 }
 0x305   : > { %5129 = vmatmul.msk.bf16.vlgmr.msrb.gmra.mxu2 %vm236_vm2, %v6797_v11  ;;  %3635 = vmatpush.bf16.msrb.mxu0 %v3582_v17 }
 0x306   : > { %5130 = vmatmul.msk.bf16.vlgmr.msrb.gmra.mxu3 %vm236_vm2, %v6797_v11  ;;  %3648 = vmatpush.bf16.msrb.mxu1 %v3585_v31 }
 0x307   : > { %3661 = vmatpush.bf16.msrb.mxu2 %v3588_v6  ;;  %3674 = vmatpush.bf16.msrb.mxu3 %v3591_v40 }
 0x308   : > { %v2859_v57 = vpop.f32.mrf.mxu2  ;;  %4491 = vrot.lane.b32.xlu1 %v5317_v8, %s5271_s17  ;;  %4685 = vrot.lane.b32.xlu2 %v5335_v21, %s5272_s28 }
 0x309   : > { %v2872_v23 = vpop.f32.mrf.mxu3  ;;  %v6866_v43 = vadd.f32 %v2859_v57, %v6762_v52  ;;  %v2764_v1 = vpop.f32.mrf.mxu0 }
 0x30a   : > { %v6869_v28 = vadd.f32 %v2872_v23, %v6781_v44  ;;  %v2777_v9 = vpop.f32.mrf.mxu1  ;;  %v3733_v38 = vpop.permute.xlu1 %3732 }
 0x30b   : > { %v3751_v37 = vsel %vm3750_vm6, %v3731_v3, %v3733_v38  ;;  %v3737_v33 = vpop.permute.xlu0 %3736  ;;  %v3741_v47 = vpop.permute.xlu2 %3740  ;;  %v3752_v0 = vsel %vm3750_vm6, %v3733_v38, %v3735_v25 }
 0x30c   : > { %v3753_v12 = vsel %vm3750_vm6, %v3735_v25, %v3737_v33  ;;  %v3767_v32 = vsel %vm240_vm1, %v3752_v0, 0 }
 0x30d   : > { %v3770_v53 = vsel %vm240_vm1, %v3753_v12, 0 }
 0x310   : > { %v2861_v29 = vpop.f32.mrf.mxu2  ;;  %4497 = vrot.lane.b32.xlu1 %v5335_v21, %s5271_s17  ;;  %4691 = vrot.lane.b32.xlu2 %v6746_v63, %s5272_s28 }
 0x311   : > { %v2874_v30 = vpop.f32.mrf.mxu3  ;;  %v2885_v52 = vpop.f32.mrf.mxu0  ;;  %v6967_v29 = vld [vmem:[%s7371_s1 + $0x4c] sm:$0xf] }
 0x312   : > { %v2898_v44 = vpop.f32.mrf.mxu1  ;;  %v6884_v14 = vadd.f32 %v2885_v52, %v6784_v19  ;;  %v3600_v19 = vsel %vm240_vm1, %v3571_v4, 0  ;;  %v3739_v45 = vpop.permute.xlu1 %3738 }
 0x313   : > { %v6887_v50 = vadd.f32 %v2898_v44, %v6804_v61  ;;  %v3764_v61 = vsel %vm240_vm1, %v3751_v37, 0  ;;  %v3754_v36 = vsel %vm3750_vm6, %v3737_v33, %v3739_v45  ;;  %v3755_v34 = vsel %vm3750_vm6, %v3739_v45, %v3741_v47  ;;  %v3743_v46 = vpop.permute.xlu0 %3742  ;;  %v3747_v27 = vpop.permute.xlu2 %3746 }
 0x314   : > { %5131 = vmatmul.msk.bf16.vlgmr.msra.gmra.mxu0 %vm236_vm2, %v6797_v11  ;;  %5132 = vmatmul.msk.bf16.vlgmr.msra.gmra.mxu1 %vm236_vm2, %v6797_v11  ;;  %v3773_v8 = vsel %vm240_vm1, %v3754_v36, 0  ;;  %v3776_v2 = vsel %vm240_vm1, %v3755_v34, 0  ;;  %v3756_v1 = vsel %vm3750_vm6, %v3741_v47, %v3743_v46 }
 0x315   : > { %5134 = vmatmul.msk.bf16.vlgmr.msra.gmra.mxu2 %vm236_vm2, %v6892_v35  ;;  %3687 = vmatpush.bf16.msra.mxu0 %v3594_v22  ;;  %v3779_v30 = vsel %vm240_vm1, %v3756_v1, 0 }
 0x316   : > { %5135 = vmatmul.msk.bf16.vlgmr.msra.gmra.mxu3 %vm236_vm2, %v6892_v35  ;;  %3700 = vmatpush.bf16.msra.mxu1 %v3597_v54 }
 0x317   : > { %3713 = vmatpush.bf16.msra.mxu2 %v3600_v19  ;;  %3797 = vmatpush.bf16.msra.mxu3 %v3764_v61 }
 0x318   : > { %v2911_v60 = vpop.f32.mrf.mxu2  ;;  %4503 = vrot.lane.b32.xlu1 %v6746_v63, %s5271_s17 }
 0x319   : > { %v2924_v42 = vpop.f32.mrf.mxu3  ;;  %v6909_v11 = vadd.f32 %v2911_v60, %v6807_v49  ;;  %v2887_v10 = vpop.f32.mrf.mxu0 }
 0x31a   : > { %v6912_v5 = vadd.f32 %v2924_v42, %v6826_v7  ;;  %v2900_v58 = vpop.f32.mrf.mxu1  ;;  %v3745_v40 = vpop.permute.xlu1 %3744 }
 0x31b   : > { %v3749_v18 = vpop.permute.xlu0 %3748  ;;  %v3757_v21 = vsel %vm3750_vm6, %v3743_v46, %v3745_v40  ;;  %v3758_v9 = vsel %vm3750_vm6, %v3745_v40, %v3747_v27  ;;  %v3924_v15 = vpop.permute.xlu2 %3923 }
 0x31c   : > { %v3759_v16 = vsel %vm3750_vm6, %v3747_v27, %v3749_v18  ;;  %v3782_v63 = vsel %vm240_vm1, %v3757_v21, 0 }
 0x31d   : > { %v3788_v26 = vsel %vm240_vm1, %v3759_v16, 0 }
 0x320   : > { %v2913_v41 = vpop.f32.mrf.mxu2  ;;  %4677 = vrot.lane.b32.xlu1 %v5324_v13, %s5272_s28 }
 0x321   : > { %v2926_v48 = vpop.f32.mrf.mxu3  ;;  %v2937_v49 = vpop.f32.mrf.mxu0 }
 0x322   : > { %v2950_v7 = vpop.f32.mrf.mxu1  ;;  %v6925_v39 = vadd.f32 %v2937_v49, %v6829_v59  ;;  %v3922_v52 = vpop.permute.xlu1 %3921 }
 0x323   : > { %v6928_v56 = vadd.f32 %v2950_v7, %v6844_v62  ;;  %v3926_v54 = vpop.permute.xlu0 %3925  ;;  %v3930_v25 = vpop.permute.xlu2 %3929  ;;  %v3942_v42 = vsel %vm3941_vm7, %v3922_v52, %v3924_v15 }
 0x324   : > { %5136 = vmatmul.msk.bf16.vlgmr.msrb.gmra.mxu0 %vm236_vm2, %v6892_v35  ;;  %5137 = vmatmul.msk.bf16.vlgmr.msrb.gmra.mxu1 %vm236_vm2, %v6892_v35  ;;  %v3943_v10 = vsel %vm3941_vm7, %v3924_v15, %v3926_v54  ;;  %v3955_v47 = vsel %vm240_vm1, %v3942_v42, 0 }
 0x325   : > { %5138 = vmatmul.msk.bf16.vlgmr.msrb.gmra.mxu2 %vm236_vm2, %v6892_v35  ;;  %3810 = vmatpush.bf16.msrb.mxu0 %v3767_v32  ;;  %v3958_v41 = vsel %vm240_vm1, %v3943_v10, 0 }
 0x326   : > { %5139 = vmatmul.msk.bf16.vlgmr.msrb.gmra.mxu3 %vm236_vm2, %v6892_v35  ;;  %3823 = vmatpush.bf16.msrb.mxu1 %v3770_v53 }
 0x327   : > { %3836 = vmatpush.bf16.msrb.mxu2 %v3773_v8  ;;  %3849 = vmatpush.bf16.msrb.mxu3 %v3776_v2 }
 0x328   : > { %v2963_v59 = vpop.f32.mrf.mxu2  ;;  %4683 = vrot.lane.b32.xlu1 %v5333_v20, %s5272_s28 }
 0x329   : > { %v3047_v55 = vpop.f32.mrf.mxu3  ;;  %v6945_v62 = vadd.f32 %v2963_v59, %v6847_v51  ;;  %v2939_v31 = vpop.f32.mrf.mxu0 }
 0x32a   : > { %v6948_v17 = vadd.f32 %v3047_v55, %v6866_v43  ;;  %v2952_v6 = vpop.f32.mrf.mxu1  ;;  %v3928_v19 = vpop.permute.xlu1 %3927 }
 0x32b   : > { %v3945_v58 = vsel %vm3941_vm7, %v3928_v19, %v3930_v25  ;;  %v3932_v0 = vpop.permute.xlu0 %3931  ;;  %v3936_v32 = vpop.permute.xlu2 %3935 }
 0x32c   : > { %v3964_v48 = vsel %vm240_vm1, %v3945_v58, 0  ;;  %v3946_v46 = vsel %vm3941_vm7, %v3930_v25, %v3932_v0 }
 0x32d   : > { %v3967_v40 = vsel %vm240_vm1, %v3946_v46, 0 }
 0x330   : > { %v2965_v57 = vpop.f32.mrf.mxu2  ;;  %4689 = vrot.lane.b32.xlu1 %v5342_v24, %s5272_s28 }
 0x331   : > { %v3049_v23 = vpop.f32.mrf.mxu3  ;;  %v3060_v51 = vpop.f32.mrf.mxu0 }
 0x332   : > { %v3073_v43 = vpop.f32.mrf.mxu1  ;;  %v6959_v3 = vadd.f32 %v3060_v51, %v6869_v28  ;;  %v3785_v28 = vsel %vm240_vm1, %v3758_v9, 0 }
 0x333   : > { %v6962_v38 = vadd.f32 %v3073_v43, %v6884_v14  ;;  %v3938_v53 = vpop.permute.xlu0 %3937  ;;  %v4112_v18 = vpop.permute.xlu2 %4111 }
 0x334   : > { %5140 = vmatmul.msk.bf16.vlgmr.msra.gmra.mxu0 %vm236_vm2, %v6892_v35  ;;  %5141 = vmatmul.msk.bf16.vlgmr.msra.gmra.mxu1 %vm236_vm2, %v6892_v35 }
 0x335   : > { %5142 = vmatmul.msk.bf16.vlgmr.msra.gmra.mxu2 %vm236_vm2, %v6892_v35  ;;  %3862 = vmatpush.bf16.msra.mxu0 %v3779_v30 }
 0x336   : > { %5144 = vmatmul.msk.bf16.vlgmr.msra.gmra.mxu3 %vm236_vm2, %v6967_v29  ;;  %3875 = vmatpush.bf16.msra.mxu1 %v3782_v63 }
 0x337   : > { %3888 = vmatpush.bf16.msra.mxu2 %v3785_v28  ;;  %3901 = vmatpush.bf16.msra.mxu3 %v3788_v26 }
 0x338   : > { %v3086_v44 = vpop.f32.mrf.mxu2 }
 0x339   : > { %v3099_v4 = vpop.f32.mrf.mxu3  ;;  %v6984_v37 = vadd.f32 %v3086_v44, %v6887_v50  ;;  %v3062_v22 = vpop.f32.mrf.mxu0 }
 0x33a   : > { %v6987_v14 = vadd.f32 %v3099_v4, %v6909_v11  ;;  %v3075_v35 = vpop.f32.mrf.mxu1  ;;  %v3944_v11 = vsel %vm3941_vm7, %v3926_v54, %v3928_v19 }
 0x33b   : > { %v3961_v20 = vsel %vm240_vm1, %v3944_v11, 0  ;;  %v4110_v30 = vpop.permute.xlu2 %4109 }
 0x33c   : > { %v4130_v15 = vsel %vm4129_vm8, %v4110_v30, %v4112_v18 }
 0x33d   : > { %v4143_v19 = vsel %vm240_vm1, %v4130_v15, 0 }
 0x340   : > { %v3088_v61 = vpop.f32.mrf.mxu2 }
 0x341   : > { %v3101_v60 = vpop.f32.mrf.mxu3  ;;  %v3112_v13 = vpop.f32.mrf.mxu0 }
 0x342   : > { %v3125_v50 = vpop.f32.mrf.mxu1  ;;  %v6996_v33 = vadd.f32 %v3112_v13, %v6912_v5 }
 0x343   : > { %v6999_v45 = vadd.f32 %v3125_v50, %v6925_v39  ;;  %v3934_v39 = vpop.permute.xlu1 %3933 }
 0x344   : > { %5145 = vmatmul.msk.bf16.vlgmr.msrb.gmra.mxu0 %vm236_vm2, %v6967_v29  ;;  %5146 = vmatmul.msk.bf16.vlgmr.msrb.gmra.mxu1 %vm236_vm2, %v6967_v29  ;;  %v3947_v59 = vsel %vm3941_vm7, %v3932_v0, %v3934_v39  ;;  %v3948_v24 = vsel %vm3941_vm7, %v3934_v39, %v3936_v32 }
 0x345   : > { %5147 = vmatmul.msk.bf16.vlgmr.msrb.gmra.mxu2 %vm236_vm2, %v6967_v29  ;;  %3988 = vmatpush.bf16.msrb.mxu0 %v3955_v47  ;;  %v3970_v27 = vsel %vm240_vm1, %v3947_v59, 0  ;;  %v3973_v57 = vsel %vm240_vm1, %v3948_v24, 0 }
 0x346   : > { %5148 = vmatmul.msk.bf16.vlgmr.msrb.gmra.mxu3 %vm236_vm2, %v6967_v29  ;;  %4001 = vmatpush.bf16.msrb.mxu1 %v3958_v41 }
 0x347   : > { %4014 = vmatpush.bf16.msrb.mxu2 %v3961_v20  ;;  %4027 = vmatpush.bf16.msrb.mxu3 %v3964_v48 }
 0x348   : > { %v3138_v5 = vpop.f32.mrf.mxu2 }
 0x349   : > { %v3151_v12 = vpop.f32.mrf.mxu3  ;;  %v7016_v49 = vadd.f32 %v3138_v5, %v6928_v56  ;;  %v3114_v36 = vpop.f32.mrf.mxu0  ;;  %v3949_v56 = vsel %vm3941_vm7, %v3936_v32, %v3938_v53 }
 0x34a   : > { %v7019_v7 = vadd.f32 %v3151_v12, %v6945_v62  ;;  %v3127_v34 = vpop.f32.mrf.mxu1 }
 0x34b   : > { %v3940_v23 = vpop.permute.xlu1 %3939 }
 0x34c   : > { %v3950_v26 = vsel %vm3941_vm7, %v3938_v53, %v3940_v23 }
 0x34d   : > { %v3979_v54 = vsel %vm240_vm1, %v3950_v26, 0 }
 0x350   : > { %v3140_v8 = vpop.f32.mrf.mxu2 }
 0x351   : > { %v3153_v2 = vpop.f32.mrf.mxu3  ;;  %v3235_v55 = vpop.f32.mrf.mxu0 }
 0x352   : > { %v3248_v31 = vpop.f32.mrf.mxu1  ;;  %v7026_v62 = vadd.f32 %v3235_v55, %v6948_v17  ;;  %v3976_v17 = vsel %vm240_vm1, %v3949_v56, 0 }
 0x353   : > { %v7029_v6 = vadd.f32 %v3248_v31, %v6959_v3  ;;  %v4114_v3 = vpop.permute.xlu0 %4113  ;;  %v4116_v63 = vpop.permute.xlu1 %4115 }
 0x354   : > { %5149 = vmatmul.msk.bf16.vlgmr.msra.gmra.mxu0 %vm236_vm2, %v6967_v29  ;;  %5150 = vmatmul.msk.bf16.vlgmr.msra.gmra.mxu1 %vm236_vm2, %v6967_v29  ;;  %v4131_v4 = vsel %vm4129_vm8, %v4112_v18, %v4114_v3 }
 0x355   : > { %5151 = vmatmul.msk.bf16.vlgmr.msra.gmra.mxu2 %vm236_vm2, %v6967_v29  ;;  %4040 = vmatpush.bf16.msra.mxu0 %v3967_v40  ;;  %v4146_v25 = vsel %vm240_vm1, %v4131_v4, 0 }
 0x356   : > { %5152 = vmatmul.msk.bf16.vlgmr.msra.gmra.mxu3 %vm236_vm2, %v6967_v29  ;;  %4053 = vmatpush.bf16.msra.mxu1 %v3970_v27 }
 0x357   : > { %4066 = vmatpush.bf16.msra.mxu2 %v3973_v57  ;;  %4079 = vmatpush.bf16.msra.mxu3 %v3976_v17 }
 0x358   : > { %v3261_v1 = vpop.f32.mrf.mxu2 }
 0x359   : > { %v3274_v21 = vpop.f32.mrf.mxu3  ;;  %v7044_v51 = vadd.f32 %v3261_v1, %v6962_v38  ;;  %v3237_v9 = vpop.f32.mrf.mxu0  ;;  %v7054_v38 = vld [vmem:[%s7371_s1 + $0x50] sm:$0xf] }
 0x35a   : > { %v7047_v43 = vadd.f32 %v3274_v21, %v6984_v37  ;;  %v3250_v16 = vpop.f32.mrf.mxu1  ;;  %v4132_v37 = vsel %vm4129_vm8, %v4114_v3, %v4116_v63 }
 0x35b   : > { %v4149_v61 = vsel %vm240_vm1, %v4132_v37, 0  ;;  %v4118_v60 = vpop.permute.xlu0 %4117 }
 0x35c   : > { %v4133_v48 = vsel %vm4129_vm8, %v4116_v63, %v4118_v60 }
 0x35d   : > { %v4152_v39 = vsel %vm240_vm1, %v4133_v48, 0 }
 0x360   : > { %v3263_v28 = vpop.f32.mrf.mxu2 }
 0x361   : > { %v3276_v29 = vpop.f32.mrf.mxu3  ;;  %v3287_v52 = vpop.f32.mrf.mxu0 }
 0x362   : > { %v3300_v44 = vpop.f32.mrf.mxu1  ;;  %v7059_v22 = vadd.f32 %v3287_v52, %v6987_v14  ;;  %v4122_v14 = vpop.permute.xlu2 %4121 }
 0x363   : > { %v7062_v35 = vadd.f32 %v3300_v44, %v6996_v33  ;;  %v4120_v33 = vpop.permute.xlu1 %4119  ;;  %v4124_v47 = vpop.permute.xlu0 %4123 }
 0x364   : > { %5154 = vmatmul.msk.bf16.vlgmr.msrb.gmra.mxu0 %vm236_vm2, %v7054_v38  ;;  %5155 = vmatmul.msk.bf16.vlgmr.msrb.gmra.mxu1 %vm236_vm2, %v7054_v38  ;;  %v4134_v0 = vsel %vm4129_vm8, %v4118_v60, %v4120_v33  ;;  %v4135_v36 = vsel %vm4129_vm8, %v4120_v33, %v4122_v14 }
 0x365   : > { %5156 = vmatmul.msk.bf16.vlgmr.msrb.gmra.mxu2 %vm236_vm2, %v7054_v38  ;;  %4092 = vmatpush.bf16.msrb.mxu0 %v3979_v54  ;;  %v4155_v32 = vsel %vm240_vm1, %v4134_v0, 0  ;;  %v4158_v8 = vsel %vm240_vm1, %v4135_v36, 0 }
 0x366   : > { %5157 = vmatmul.msk.bf16.vlgmr.msrb.gmra.mxu3 %vm236_vm2, %v7054_v38  ;;  %4176 = vmatpush.bf16.msrb.mxu1 %v4143_v19 }
 0x367   : > { %4189 = vmatpush.bf16.msrb.mxu2 %v4146_v25  ;;  %4202 = vmatpush.bf16.msrb.mxu3 %v4149_v61 }
 0x368   : > { %v3313_v42 = vpop.f32.mrf.mxu2 }
 0x369   : > { %v3326_v10 = vpop.f32.mrf.mxu3  ;;  %v7077_v13 = vadd.f32 %v3313_v42, %v6999_v45  ;;  %v3289_v11 = vpop.f32.mrf.mxu0  ;;  %v4136_v45 = vsel %vm4129_vm8, %v4122_v14, %v4124_v47 }
 0x36a   : > { %v7080_v50 = vadd.f32 %v3326_v10, %v7016_v49  ;;  %v3302_v58 = vpop.f32.mrf.mxu1  ;;  %v4298_v53 = vpop.permute.xlu2 %4297 }
 0x36b   : > { %v4126_v2 = vpop.permute.xlu1 %4125 }
 0x36c   : > { %v4137_v23 = vsel %vm4129_vm8, %v4124_v47, %v4126_v2 }
 0x36d   : > { %v4164_v30 = vsel %vm240_vm1, %v4137_v23, 0 }
 0x370   : > { %v3315_v41 = vpop.f32.mrf.mxu2 }
 0x371   : > { %v3328_v20 = vpop.f32.mrf.mxu3  ;;  %v3339_v5 = vpop.f32.mrf.mxu0 }
 0x372   : > { %v3423_v12 = vpop.f32.mrf.mxu1  ;;  %v7087_v34 = vadd.f32 %v3339_v5, %v7019_v7  ;;  %v4161_v7 = vsel %vm240_vm1, %v4136_v45, 0  ;;  %v4128_v40 = vpop.permute.xlu2 %4127 }
 0x373   : > { %v7090_v49 = vadd.f32 %v3423_v12, %v7026_v62  ;;  %v4300_v62 = vpop.permute.xlu0 %4299  ;;  %v4302_v27 = vpop.permute.xlu1 %4301  ;;  %v4138_v17 = vsel %vm4129_vm8, %v4126_v2, %v4128_v40 }
 0x374   : > { %5158 = vmatmul.msk.bf16.vlgmr.msra.gmra.mxu0 %vm236_vm2, %v7054_v38  ;;  %5159 = vmatmul.msk.bf16.vlgmr.msra.gmra.mxu1 %vm236_vm2, %v7054_v38  ;;  %v4319_v9 = vsel %vm4317_vm9, %v4300_v62, %v4302_v27  ;;  %v4167_v63 = vsel %vm240_vm1, %v4138_v17, 0 }
 0x375   : > { %5160 = vmatmul.msk.bf16.vlgmr.msra.gmra.mxu2 %vm236_vm2, %v7054_v38  ;;  %4215 = vmatpush.bf16.msra.mxu0 %v4152_v39  ;;  %v4334_v29 = vsel %vm240_vm1, %v4319_v9, 0 }
 0x376   : > { %5161 = vmatmul.msk.bf16.vlgmr.msra.gmra.mxu3 %vm236_vm2, %v7054_v38  ;;  %4228 = vmatpush.bf16.msra.mxu1 %v4155_v32 }
 0x377   : > { %4241 = vmatpush.bf16.msra.mxu2 %v4158_v8  ;;  %4254 = vmatpush.bf16.msra.mxu3 %v4161_v7 }
 0x378   : > { %v3436_v46 = vpop.f32.mrf.mxu2 }
 0x379   : > { %v3449_v59 = vpop.f32.mrf.mxu3  ;;  %v7105_v55 = vadd.f32 %v3436_v46, %v7029_v6  ;;  %v3341_v24 = vpop.f32.mrf.mxu0  ;;  %v7115_v6 = vld [vmem:[%s7371_s1 + $0x54] sm:$0xf] }
 0x37a   : > { %v7108_v31 = vadd.f32 %v3449_v59, %v7044_v51  ;;  %v3425_v56 = vpop.f32.mrf.mxu1  ;;  %v4318_v51 = vsel %vm4317_vm9, %v4298_v53, %v4300_v62  ;;  %v7184_v62 = vld [vmem:[%s7371_s1 + $0x58] sm:$0xf] }
 0x37b   : > { %v4331_v28 = vsel %vm240_vm1, %v4318_v51, 0  ;;  %v4304_v26 = vpop.permute.xlu0 %4303  ;;  %v4306_v37 = vpop.permute.xlu1 %4305 }
 0x37c   : > { %v4320_v61 = vsel %vm4317_vm9, %v4302_v27, %v4304_v26  ;;  %v4321_v60 = vsel %vm4317_vm9, %v4304_v26, %v4306_v37 }
 0x37d   : > { %v4337_v58 = vsel %vm240_vm1, %v4320_v61, 0  ;;  %v4340_v33 = vsel %vm240_vm1, %v4321_v60, 0 }
 0x380   : > { %v3438_v18 = vpop.f32.mrf.mxu2 }
 0x381   : > { %v3451_v57 = vpop.f32.mrf.mxu3  ;;  %v3462_v1 = vpop.f32.mrf.mxu0 }
 0x382   : > { %v3475_v21 = vpop.f32.mrf.mxu1  ;;  %v7120_v16 = vadd.f32 %v3462_v1, %v7047_v43 }
 0x383   : > { %v7123_v3 = vadd.f32 %v3475_v21, %v7059_v22  ;;  %v4308_v22 = vpop.permute.xlu2 %4307  ;;  %v4310_v54 = vpop.permute.xlu0 %4309 }
 0x384   : > { %5162 = vmatmul.msk.bf16.vlgmr.msrb.gmra.mxu0 %vm236_vm2, %v7054_v38  ;;  %5164 = vmatmul.msk.bf16.vlgmr.msrb.gmra.mxu1 %vm236_vm2, %v7115_v6  ;;  %v4322_v10 = vsel %vm4317_vm9, %v4306_v37, %v4308_v22  ;;  %v4312_v41 = vpop.permute.xlu1 %4311 }
 0x385   : > { %5165 = vmatmul.msk.bf16.vlgmr.msrb.gmra.mxu2 %vm236_vm2, %v7115_v6  ;;  %4267 = vmatpush.bf16.msrb.mxu0 %v4164_v30  ;;  %v4343_v47 = vsel %vm240_vm1, %v4322_v10, 0  ;;  %v4324_v2 = vsel %vm4317_vm9, %v4310_v54, %v4312_v41 }
 0x386   : > { %5166 = vmatmul.msk.bf16.vlgmr.msrb.gmra.mxu3 %vm236_vm2, %v7115_v6  ;;  %4280 = vmatpush.bf16.msrb.mxu1 %v4167_v63  ;;  %v4349_v40 = vsel %vm240_vm1, %v4324_v2, 0 }
 0x387   : > { %4364 = vmatpush.bf16.msrb.mxu2 %v4331_v28  ;;  %4377 = vmatpush.bf16.msrb.mxu3 %v4334_v29 }
 0x388   : > { %v3488_v43 = vpop.f32.mrf.mxu2 }
 0x389   : > { %v3501_v15 = vpop.f32.mrf.mxu3  ;;  %v7138_v52 = vadd.f32 %v3488_v43, %v7062_v35  ;;  %v3464_v38 = vpop.f32.mrf.mxu0  ;;  %v4323_v35 = vsel %vm4317_vm9, %v4308_v22, %v4310_v54 }
 0x38a   : > { %v7141_v44 = vadd.f32 %v3501_v15, %v7077_v13  ;;  %v3477_v4 = vpop.f32.mrf.mxu1  ;;  %v4346_v20 = vsel %vm240_vm1, %v4323_v35, 0 }
 0x38c   : > { %v4486_v39 = vpop.permute.xlu1 %4485 }
 0x390   : > { %v3490_v19 = vpop.f32.mrf.mxu2 }
 0x391   : > { %v3503_v25 = vpop.f32.mrf.mxu3  ;;  %v3514_v14 = vpop.f32.mrf.mxu0 }
 0x392   : > { %v3527_v42 = vpop.f32.mrf.mxu1  ;;  %v7148_v13 = vadd.f32 %v3514_v14, %v7080_v50  ;;  %v4314_v50 = vpop.permute.xlu2 %4313 }
 0x393   : > { %v7151_v11 = vadd.f32 %v3527_v42, %v7087_v34  ;;  %v4316_v34 = vpop.permute.xlu0 %4315  ;;  %v4325_v7 = vsel %vm4317_vm9, %v4312_v41, %v4314_v50 }
 0x394   : > { %5167 = vmatmul.msk.bf16.vlgmr.msra.gmra.mxu0 %vm236_vm2, %v7115_v6  ;;  %5168 = vmatmul.msk.bf16.vlgmr.msra.gmra.mxu1 %vm236_vm2, %v7115_v6  ;;  %v4352_v27 = vsel %vm240_vm1, %v4325_v7, 0  ;;  %v4492_v9 = vpop.permute.xlu1 %4491 }
 0x395   : > { %5169 = vmatmul.msk.bf16.vlgmr.msra.gmra.mxu2 %vm236_vm2, %v7115_v6  ;;  %4390 = vmatpush.bf16.msra.mxu0 %v4337_v58 }
 0x396   : > { %5170 = vmatmul.msk.bf16.vlgmr.msra.gmra.mxu3 %vm236_vm2, %v7115_v6  ;;  %4403 = vmatpush.bf16.msra.mxu1 %v4340_v33 }
 0x397   : > { %4416 = vmatpush.bf16.msra.mxu2 %v4343_v47  ;;  %4429 = vmatpush.bf16.msra.mxu3 %v4346_v20 }
 0x398   : > { %v3611_v48 = vpop.f32.mrf.mxu2 }
 0x399   : > { %v3624_v0 = vpop.f32.mrf.mxu3  ;;  %v7166_v5 = vadd.f32 %v3611_v48, %v7090_v49  ;;  %v3516_v36 = vpop.f32.mrf.mxu0  ;;  %v4326_v49 = vsel %vm4317_vm9, %v4314_v50, %v4316_v34 }
 0x39a   : > { %v7169_v12 = vadd.f32 %v3624_v0, %v7105_v55  ;;  %v3529_v45 = vpop.f32.mrf.mxu1  ;;  %v4488_v32 = vpop.permute.xlu2 %4487 }
 0x39b   : > { %v4506_v24 = vsel %vm4505_vm10, %v4486_v39, %v4488_v32  ;;  %v4490_v57 = vpop.permute.xlu0 %4489  ;;  %v7245_v45 = vld [vmem:[%s7371_s1 + $0x5c] sm:$0xf] }
 0x39c   : > { %v4519_v18 = vsel %vm240_vm1, %v4506_v24, 0  ;;  %v4507_v29 = vsel %vm4505_vm10, %v4488_v32, %v4490_v57  ;;  %v4508_v26 = vsel %vm4505_vm10, %v4490_v57, %v4492_v9  ;;  %v4498_v19 = vpop.permute.xlu1 %4497 }
 0x39d   : > { %v4522_v37 = vsel %vm240_vm1, %v4507_v29, 0  ;;  %v4525_v22 = vsel %vm240_vm1, %v4508_v26, 0 }
 0x3a0   : > { %v3613_v53 = vpop.f32.mrf.mxu2 }
 0x3a1   : > { %v3626_v8 = vpop.f32.mrf.mxu3  ;;  %v3637_v46 = vpop.f32.mrf.mxu0 }
 0x3a2   : > { %v3650_v59 = vpop.f32.mrf.mxu1  ;;  %v7176_v55 = vadd.f32 %v3637_v46, %v7108_v31  ;;  %v4355_v31 = vsel %vm240_vm1, %v4326_v49, 0 }
 0x3a3   : > { %v7179_v56 = vadd.f32 %v3650_v59, %v7120_v16  ;;  %v4494_v16 = vpop.permute.xlu2 %4493  ;;  %v4496_v30 = vpop.permute.xlu0 %4495 }
 0x3a4   : > { %5171 = vmatmul.msk.bf16.vlgmr.msrb.gmra.mxu0 %vm236_vm2, %v7115_v6  ;;  %5172 = vmatmul.msk.bf16.vlgmr.msrb.gmra.mxu1 %vm236_vm2, %v7115_v6  ;;  %v4509_v38 = vsel %vm4505_vm10, %v4492_v9, %v4494_v16  ;;  %v4504_v58 = vpop.permute.xlu1 %4503  ;;  %v4511_v41 = vsel %vm4505_vm10, %v4496_v30, %v4498_v19 }
 0x3a5   : > { %5174 = vmatmul.msk.bf16.vlgmr.msrb.gmra.mxu2 %vm236_vm2, %v7184_v62  ;;  %4442 = vmatpush.bf16.msrb.mxu0 %v4349_v40  ;;  %v4528_v54 = vsel %vm240_vm1, %v4509_v38, 0  ;;  %v4534_v34 = vsel %vm240_vm1, %v4511_v41, 0 }
 0x3a6   : > { %5175 = vmatmul.msk.bf16.vlgmr.msrb.gmra.mxu3 %vm236_vm2, %v7184_v62  ;;  %4455 = vmatpush.bf16.msrb.mxu1 %v4352_v27 }
 0x3a7   : > { %4468 = vmatpush.bf16.msrb.mxu2 %v4355_v31  ;;  %4552 = vmatpush.bf16.msrb.mxu3 %v4519_v18 }
 0x3a8   : > { %v3663_v23 = vpop.f32.mrf.mxu2 }
 0x3a9   : > { %v3676_v17 = vpop.f32.mrf.mxu3  ;;  %v7199_v1 = vadd.f32 %v3663_v23, %v7123_v3  ;;  %v3639_v6 = vpop.f32.mrf.mxu0  ;;  %v4510_v3 = vsel %vm4505_vm10, %v4494_v16, %v4496_v30 }
 0x3aa   : > { %v7202_v21 = vadd.f32 %v3676_v17, %v7138_v52  ;;  %v3652_v51 = vpop.f32.mrf.mxu1  ;;  %v4531_v25 = vsel %vm240_vm1, %v4510_v3, 0 }
 0x3ab   : > { %v4500_v35 = vpop.permute.xlu2 %4499 }
 0x3ac   : > { %v4512_v20 = vsel %vm4505_vm10, %v4498_v19, %v4500_v35 }
 0x3ad   : > { %v4537_v39 = vsel %vm240_vm1, %v4512_v20, 0 }
 0x3b0   : > { %v3665_v63 = vpop.f32.mrf.mxu2 }
 0x3b1   : > { %v3678_v28 = vpop.f32.mrf.mxu3  ;;  %v3689_v43 = vpop.f32.mrf.mxu0 }
 0x3b2   : > { %v3702_v15 = vpop.f32.mrf.mxu1  ;;  %v7209_v52 = vadd.f32 %v3689_v43, %v7141_v44 }
 0x3b3   : > { %v7212_v4 = vadd.f32 %v3702_v15, %v7148_v13  ;;  %v4502_v13 = vpop.permute.xlu0 %4501  ;;  %v4674_v53 = vpop.permute.xlu2 %4673 }
 0x3b4   : > { %5176 = vmatmul.msk.bf16.vlgmr.msra.gmra.mxu0 %vm236_vm2, %v7184_v62  ;;  %5177 = vmatmul.msk.bf16.vlgmr.msra.gmra.mxu1 %vm236_vm2, %v7184_v62  ;;  %v4513_v0 = vsel %vm4505_vm10, %v4500_v35, %v4502_v13 }
 0x3b5   : > { %5178 = vmatmul.msk.bf16.vlgmr.msra.gmra.mxu2 %vm236_vm2, %v7184_v62  ;;  %4565 = vmatpush.bf16.msra.mxu0 %v4522_v37 }
 0x3b6   : > { %5179 = vmatmul.msk.bf16.vlgmr.msra.gmra.mxu3 %vm236_vm2, %v7184_v62  ;;  %4578 = vmatpush.bf16.msra.mxu1 %v4525_v22 }
 0x3b7   : > { %4591 = vmatpush.bf16.msra.mxu2 %v4528_v54  ;;  %4604 = vmatpush.bf16.msra.mxu3 %v4531_v25 }
 0x3b8   : > { %v3715_v44 = vpop.f32.mrf.mxu2 }
 0x3b9   : > { %v3799_v61 = vpop.f32.mrf.mxu3  ;;  %v7227_v60 = vadd.f32 %v3715_v44, %v7151_v11  ;;  %v3691_v42 = vpop.f32.mrf.mxu0  ;;  %v4514_v11 = vsel %vm4505_vm10, %v4502_v13, %v4504_v58  ;;  %v4859_v44 = vld [vmem:[%s7372_s2] sm:$0xff] }
 0x3ba   : > { %v7230_v14 = vadd.f32 %v3799_v61, %v7166_v5  ;;  %v3704_v10 = vpop.f32.mrf.mxu1  ;;  %v4543_v32 = vsel %vm240_vm1, %v4514_v11, 0 }
 0x3bb   : > { %v4676_v8 = vpop.permute.xlu0 %4675  ;;  %v5273_v10 = vmov 0  }
 0x3bc   : > { %v4694_v18 = vsel %vm4693_vm11, %v4674_v53, %v4676_v8  ;;  %5240 = vset.pattern.permute.xlu0 %v5273_v10 }
 0x3bd   : > { %v4707_v9 = vsel %vm240_vm1, %v4694_v18, 0  ;;  %4862 = vperm.xlu0 %5240, %v4859_v44  }
 0x3c0   : > { %v3717_v33 = vpop.f32.mrf.mxu2 }
 0x3c1   : > { %v3801_v47 = vpop.f32.mrf.mxu3  ;;  %v3812_v50 = vpop.f32.mrf.mxu0 }
 0x3c2   : > { %v3825_v48 = vpop.f32.mrf.mxu1  ;;  %v7237_v5 = vadd.f32 %v3812_v50, %v7169_v12  ;;  %v4540_v12 = vsel %vm240_vm1, %v4513_v0, 0 }
 0x3c3   : > { %v7240_v36 = vadd.f32 %v3825_v48, %v7176_v55  ;;  %v4678_v55 = vpop.permute.xlu1 %4677  ;;  %v4682_v40 = vpop.permute.xlu0 %4681 }
 0x3c4   : > { %5180 = vmatmul.msk.bf16.vlgmr.msrb.gmra.mxu0 %vm236_vm2, %v7184_v62  ;;  %5181 = vmatmul.msk.bf16.vlgmr.msrb.gmra.mxu1 %vm236_vm2, %v7184_v62  ;;  %v4695_v57 = vsel %vm4693_vm11, %v4676_v8, %v4678_v55 }
 0x3c5   : > { %5182 = vmatmul.msk.bf16.vlgmr.msrb.gmra.mxu2 %vm236_vm2, %v7184_v62  ;;  %4617 = vmatpush.bf16.msrb.mxu0 %v4534_v34  ;;  %v4680_v62 = vpop.permute.xlu2 %4679  ;;  %v4710_v16 = vsel %vm240_vm1, %v4695_v57, 0 }
 0x3c6   : > { %5184 = vmatmul.msk.bf16.vlgmr.msrb.gmra.mxu3 %vm236_vm2, %v7245_v45  ;;  %4630 = vmatpush.bf16.msrb.mxu1 %v4537_v39  ;;  %v4697_v6 = vsel %vm4693_vm11, %v4680_v62, %v4682_v40 }
 0x3c7   : > { %4643 = vmatpush.bf16.msrb.mxu2 %v4540_v12  ;;  %4656 = vmatpush.bf16.msrb.mxu3 %v4543_v32  ;;  %v4716_v28 = vsel %vm240_vm1, %v4697_v6, 0 }
 0x3c8   : > { %v3838_v2 = vpop.f32.mrf.mxu2 }
 0x3c9   : > { %v3851_v7 = vpop.f32.mrf.mxu3  ;;  %v7260_v46 = vadd.f32 %v3838_v2, %v7179_v56  ;;  %v3814_v49 = vpop.f32.mrf.mxu0  ;;  %v4696_v56 = vsel %vm4693_vm11, %v4678_v55, %v4680_v62 }
 0x3ca   : > { %v7263_v59 = vadd.f32 %v3851_v7, %v7199_v1  ;;  %v3827_v24 = vpop.f32.mrf.mxu1  ;;  %v4713_v30 = vsel %vm240_vm1, %v4696_v56, 0 }
 0x3cb   : > { %v4684_v63 = vpop.permute.xlu1 %4683 }
 0x3cc   : > { %v4698_v19 = vsel %vm4693_vm11, %v4682_v40, %v4684_v63 }
 0x3cd   : > { %v4686_v3 = vpop.permute.xlu2 %4685  ;;  %v4719_v58 = vsel %vm240_vm1, %v4698_v19, 0 }
 0x3ce   : > { %v4699_v25 = vsel %vm4693_vm11, %v4684_v63, %v4686_v3 }
 0x3cf   : > { %v4722_v33 = vsel %vm240_vm1, %v4699_v25, 0 }
 0x3d0   : > { %v3840_v27 = vpop.f32.mrf.mxu2 }
 0x3d1   : > { %v3853_v31 = vpop.f32.mrf.mxu3  ;;  %v3864_v23 = vpop.f32.mrf.mxu0 }
 0x3d2   : > { %v3877_v17 = vpop.f32.mrf.mxu1  ;;  %v7270_v1 = vadd.f32 %v3864_v23, %v7202_v21 }
 0x3d3   : > { %v7273_v51 = vadd.f32 %v3877_v17, %v7209_v52  ;;  %v4688_v52 = vpop.permute.xlu0 %4687  ;;  %v4690_v37 = vpop.permute.xlu1 %4689 }
 0x3d4   : > { %5185 = vmatmul.msk.bf16.vlgmr.msra.gmra.mxu0 %vm236_vm2, %v7245_v45  ;;  %5186 = vmatmul.msk.bf16.vlgmr.msra.gmra.mxu1 %vm236_vm2, %v7245_v45  ;;  %v4701_v42 = vsel %vm4693_vm11, %v4688_v52, %v4690_v37 }
 0x3d5   : > { %5187 = vmatmul.msk.bf16.vlgmr.msra.gmra.mxu2 %vm236_vm2, %v7245_v45  ;;  %4740 = vmatpush.bf16.msra.mxu0 %v4707_v9  ;;  %v4728_v41 = vsel %vm240_vm1, %v4701_v42, 0 }
 0x3d6   : > { %5188 = vmatmul.msk.bf16.vlgmr.msra.gmra.mxu3 %vm236_vm2, %v7245_v45  ;;  %4753 = vmatpush.bf16.msra.mxu1 %v4710_v16 }
 0x3d7   : > { %4766 = vmatpush.bf16.msra.mxu2 %v4713_v30  ;;  %4779 = vmatpush.bf16.msra.mxu3 %v4716_v28 }
 0x3d8   : > { %v3890_v21 = vpop.f32.mrf.mxu2 }
 0x3d9   : > { %v3903_v29 = vpop.f32.mrf.mxu3  ;;  %v3914_v26 = vadd.f32 %v3890_v21, %v7212_v4  ;;  %v3866_v15 = vpop.f32.mrf.mxu0 }
 0x3da   : > { %v7289_v43 = vadd.f32 %v3903_v29, %v7227_v60  ;;  %v3879_v38 = vpop.f32.mrf.mxu1  ;;  %v4700_v60 = vsel %vm4693_vm11, %v4686_v3, %v4688_v52 }
 0x3db   : > { %v4725_v47 = vsel %vm240_vm1, %v4700_v60, 0 }
 0x3e0   : > { %v3892_v22 = vpop.f32.mrf.mxu2 }
 0x3e1   : > { %v3905_v54 = vpop.f32.mrf.mxu3  ;;  %v3990_v61 = vpop.f32.mrf.mxu0 }
 0x3e2   : > { %v4003_v4 = vpop.f32.mrf.mxu1  ;;  %v4098_v35 = vadd.f32 %v3990_v61, %v7230_v14 }
 0x3e3   : > { %v4099_v13 = vadd.f32 %v4003_v4, %v7237_v5  ;;  %v4692_v5 = vpop.permute.xlu2 %4691 }
 0x3e4   : > { %5189 = vmatmul.msk.bf16.vlgmr.msrb.gmra.mxu0 %vm236_vm2, %v7245_v45  ;;  %5190 = vmatmul.msk.bf16.vlgmr.msrb.gmra.mxu1 %vm236_vm2, %v7245_v45  ;;  %v4702_v12 = vsel %vm4693_vm11, %v4690_v37, %v4692_v5 }
 0x3e5   : > { %5191 = vmatmul.msk.bf16.vlgmr.msrb.gmra.mxu2 %vm236_vm2, %v7245_v45  ;;  %4792 = vmatpush.bf16.msrb.mxu0 %v4719_v58 }
 0x3e6   : > { %5192 = vmatmul.msk.bf16.vlgmr.msrb.gmra.mxu3 %vm236_vm2, %v7245_v45  ;;  %4805 = vmatpush.bf16.msrb.mxu1 %v4722_v33  ;;  %v5193_v45 = vld [vmem:[%s7371_s1 + $0x60] sm:$0xf] }
 0x3e7   : > { %4818 = vmatpush.bf16.msrb.mxu2 %v4725_v47  ;;  %4831 = vmatpush.bf16.msrb.mxu3 %v4728_v41 }
 0x3e8   : > { %v4016_v14 = vpop.f32.mrf.mxu2 }
 0x3e9   : > { %v4029_v20 = vpop.f32.mrf.mxu3  ;;  %v4100_v50 = vadd.f32 %v4016_v14, %v7240_v36  ;;  %v3992_v0 = vpop.f32.mrf.mxu0  ;;  %v4731_v36 = vsel %vm240_vm1, %v4702_v12, 0 }
 0x3ea   : > { %v4101_v48 = vadd.f32 %v4029_v20, %v7260_v46  ;;  %v4005_v11 = vpop.f32.mrf.mxu1 }
 0x3f0   : > { %v4018_v34 = vpop.f32.mrf.mxu2 }
 0x3f1   : > { %v4031_v39 = vpop.f32.mrf.mxu3  ;;  %v4042_v32 = vpop.f32.mrf.mxu0 }
 0x3f2   : > { %v4055_v53 = vpop.f32.mrf.mxu1  ;;  %v4102_v8 = vadd.f32 %v4042_v32, %v7263_v59 }
 0x3f3   : > { %v4103_v2 = vadd.f32 %v4055_v53, %v7270_v1 }
 0x3f4   : > { %5194 = vmatmul.msk.bf16.vlgmr.msra.gmra.mxu0 %vm236_vm2, %v5193_v45  ;;  %5195 = vmatmul.msk.bf16.vlgmr.msra.gmra.mxu1 %vm236_vm2, %v5193_v45 }
 0x3f5   : > { %5196 = vmatmul.msk.bf16.vlgmr.msra.gmra.mxu2 %vm236_vm2, %v5193_v45  ;;  %4844 = vmatpush.bf16.msra.mxu0 %v4731_v36 }
 0x3f6   : > { %5197 = vmatmul.msk.bf16.vlgmr.msra.gmra.mxu3 %vm236_vm2, %v5193_v45 }
 0x3f8   : > { %v4068_v7 = vpop.f32.mrf.mxu2 }
 0x3f9   : > { %v4081_v46 = vpop.f32.mrf.mxu3  ;;  %v4104_v49 = vadd.f32 %v4068_v7, %v7273_v51  ;;  %v4044_v55 = vpop.f32.mrf.mxu0 }
 0x3fa   : > { %v4105_v24 = vadd.f32 %v4081_v46, %v3914_v26  ;;  %v4057_v59 = vpop.f32.mrf.mxu1 }
 0x400   : > { %v4070_v62 = vpop.f32.mrf.mxu2 }
 0x401   : > { %v4083_v40 = vpop.f32.mrf.mxu3  ;;  %v4094_v27 = vpop.f32.mrf.mxu0 }
 0x402   : > { %v4178_v31 = vpop.f32.mrf.mxu1  ;;  %v4106_v18 = vadd.f32 %v4094_v27, %v7289_v43 }
 0x403   : > { %v4286_v57 = vadd.f32 %v4178_v31, %v4098_v35 }
 0x404   : > { %5198 = vmatmul.msk.bf16.vlgmr.msrb.gmra.mxu0 %vm236_vm2, %v5193_v45  ;;  %5199 = vmatmul.msk.bf16.vlgmr.msrb.gmra.mxu1 %vm236_vm2, %v5193_v45 }
 0x405   : > { %5200 = vmatmul.msk.bf16.vlgmr.msrb.gmra.mxu2 %vm236_vm2, %v5193_v45 }
 0x406   : > { %5201 = vmatmul.msk.bf16.vlgmr.msrb.gmra.mxu3 %vm236_vm2, %v5193_v45 }
 0x408   : > { %v4191_v23 = vpop.f32.mrf.mxu2 }
 0x409   : > { %v4204_v17 = vpop.f32.mrf.mxu3  ;;  %v4287_v56 = vadd.f32 %v4191_v23, %v4099_v13  ;;  %v4096_v1 = vpop.f32.mrf.mxu0 }
 0x40a   : > { %v4288_v6 = vadd.f32 %v4204_v17, %v4100_v50  ;;  %v4180_v51 = vpop.f32.mrf.mxu1 }
 0x410   : > { %v4193_v9 = vpop.f32.mrf.mxu2 }
 0x411   : > { %v4206_v16 = vpop.f32.mrf.mxu3  ;;  %v4217_v30 = vpop.f32.mrf.mxu0 }
 0x412   : > { %v4230_v63 = vpop.f32.mrf.mxu1  ;;  %v4289_v28 = vadd.f32 %v4217_v30, %v4101_v48 }
 0x413   : > { %v4290_v21 = vadd.f32 %v4230_v63, %v4102_v8 }
 0x414   : > { %5202 = vmatmul.msk.bf16.vlgmr.msra.gmra.mxu0 %vm236_vm2, %v5193_v45 }
 0x418   : > { %v4243_v29 = vpop.f32.mrf.mxu2 }
 0x419   : > { %v4256_v26 = vpop.f32.mrf.mxu3  ;;  %v4291_v43 = vadd.f32 %v4243_v29, %v4103_v2  ;;  %v4219_v38 = vpop.f32.mrf.mxu0 }
 0x41a   : > { %v4292_v15 = vadd.f32 %v4256_v26, %v4104_v49  ;;  %v4232_v3 = vpop.f32.mrf.mxu1 }
 0x420   : > { %v4245_v52 = vpop.f32.mrf.mxu2 }
 0x421   : > { %v4258_v37 = vpop.f32.mrf.mxu3  ;;  %v4269_v22 = vpop.f32.mrf.mxu0 }
 0x422   : > { %v4282_v54 = vpop.f32.mrf.mxu1  ;;  %v4293_v19 = vadd.f32 %v4269_v22, %v4105_v24 }
 0x423   : > { %v4294_v25 = vadd.f32 %v4282_v54, %v4106_v18 }
 0x428   : > { %v4366_v44 = vpop.f32.mrf.mxu2 }
 0x429   : > { %v4379_v61 = vpop.f32.mrf.mxu3  ;;  %v4474_v4 = vadd.f32 %v4366_v44, %v4286_v57  ;;  %v4271_v42 = vpop.f32.mrf.mxu0 }
 0x42a   : > { %v4475_v60 = vadd.f32 %v4379_v61, %v4287_v56  ;;  %v4284_v10 = vpop.f32.mrf.mxu1 }
 0x42f   : > { %v7338_v51 = vpop.permute.xlu0 %4862 }
 0x430   : > { %v4368_v35 = vpop.f32.mrf.mxu2 }
 0x431   : > { %v4381_v13 = vpop.f32.mrf.mxu3  ;;  %v4392_v58 = vpop.f32.mrf.mxu0 }
 0x432   : > { %v4405_v33 = vpop.f32.mrf.mxu1  ;;  %v4476_v47 = vadd.f32 %v4392_v58, %v4288_v6 }
 0x433   : > { %v4477_v41 = vadd.f32 %v4405_v33, %v4289_v28 }
 0x438   : > { %v4418_v14 = vpop.f32.mrf.mxu2 }
 0x439   : > { %v4431_v20 = vpop.f32.mrf.mxu3  ;;  %v4478_v50 = vadd.f32 %v4418_v14, %v4290_v21  ;;  %v4394_v0 = vpop.f32.mrf.mxu0 }
 0x43a   : > { %v4479_v48 = vadd.f32 %v4431_v20, %v4291_v43  ;;  %v4407_v11 = vpop.f32.mrf.mxu1 }
 0x440   : > { %v4420_v5 = vpop.f32.mrf.mxu2 }
 0x441   : > { %v4433_v34 = vpop.f32.mrf.mxu3  ;;  %v4444_v39 = vpop.f32.mrf.mxu0 }
 0x442   : > { %v4457_v12 = vpop.f32.mrf.mxu1  ;;  %v7332_v32 = vadd.f32 %v4444_v39, %v4292_v15 }
 0x443   : > { %v7334_v53 = vadd.f32 %v4457_v12, %v4293_v19 }
 0x448   : > { %v4470_v45 = vpop.f32.mrf.mxu2 }
 0x449   : > { %v4554_v8 = vpop.f32.mrf.mxu3  ;;  %v7336_v2 = vadd.f32 %v4470_v45, %v4294_v25  ;;  %v4446_v36 = vpop.f32.mrf.mxu0 }
 0x44a   : > { %v4459_v7 = vpop.f32.mrf.mxu1  ;;  %v4662_v9 = vadd.f32 %v4554_v8, %v4474_v4 }
 0x450   : > { %v4472_v46 = vpop.f32.mrf.mxu2 }
 0x451   : > { %v4556_v49 = vpop.f32.mrf.mxu3  ;;  %v4567_v24 = vpop.f32.mrf.mxu0 }
 0x452   : > { %v4580_v55 = vpop.f32.mrf.mxu1  ;;  %v4663_v16 = vadd.f32 %v4567_v24, %v4475_v60 }
 0x453   : > { %v4664_v52 = vadd.f32 %v4580_v55, %v4476_v47 }
 0x458   : > { %v4593_v59 = vpop.f32.mrf.mxu2 }
 0x459   : > { %v4606_v62 = vpop.f32.mrf.mxu3  ;;  %v4569_v40 = vpop.f32.mrf.mxu0  ;;  %v4665_v37 = vadd.f32 %v4593_v59, %v4477_v41 }
 0x45a   : > { %v4582_v27 = vpop.f32.mrf.mxu1  ;;  %v4666_v35 = vadd.f32 %v4606_v62, %v4478_v50 }
 0x460   : > { %v4595_v31 = vpop.f32.mrf.mxu2 }
 0x461   : > { %v4608_v18 = vpop.f32.mrf.mxu3  ;;  %v4619_v57 = vpop.f32.mrf.mxu0 }
 0x462   : > { %v4632_v23 = vpop.f32.mrf.mxu1  ;;  %v4667_v13 = vadd.f32 %v4619_v57, %v4479_v48 }
 0x463   : > { %v4668_v39 = vadd.f32 %v4632_v23, %v7332_v32 }
 0x468   : > { %v4645_v17 = vpop.f32.mrf.mxu2 }
 0x469   : > { %v4658_v56 = vpop.f32.mrf.mxu3  ;;  %v4621_v6 = vpop.f32.mrf.mxu0  ;;  %v4669_v50 = vadd.f32 %v4645_v17, %v7334_v53 }
 0x46a   : > { %v4634_v1 = vpop.f32.mrf.mxu1  ;;  %v4670_v32 = vadd.f32 %v4658_v56, %v7336_v2 }
 0x470   : > { %v4647_v30 = vpop.f32.mrf.mxu2 }
 0x471   : > { %v4660_v63 = vpop.f32.mrf.mxu3  ;;  %v4742_v28 = vpop.f32.mrf.mxu0 }
 0x472   : > { %v4755_v21 = vpop.f32.mrf.mxu1  ;;  %v4850_v29 = vadd.f32 %v4742_v28, %v4662_v9 }
 0x473   : > { %v4851_v26 = vadd.f32 %v4755_v21, %v4663_v16 }
 0x474   : > { %v4865_v43 = vadd.f32 %v7338_v51, %v4850_v29 }
 0x475   : > { %v4866_v15 = vadd.f32 %v7338_v51, %v4851_v26 }
 0x476   : > { %v4874_v38 = vmax.f32 %v4865_v43, 0.0 }
 0x477   : > { %v4875_v3 = vmax.f32 %v4866_v15, 0.0 }
 0x478   : > { %4883 = vst [vmem:[%s7346_s24] sm:$0xff] %v4874_v38  ;;  %v4768_v22 = vpop.f32.mrf.mxu2 }
 0x479   : > { %v4781_v54 = vpop.f32.mrf.mxu3  ;;  %4884 = vst [vmem:[%s7346_s24 + $0x8] sm:$0xff] %v4875_v3  ;;  %v4852_v19 = vadd.f32 %v4768_v22, %v4664_v52  ;;  %v4744_v44 = vpop.f32.mrf.mxu0 }
 0x47a   : > { %v4853_v25 = vadd.f32 %v4781_v54, %v4665_v37  ;;  %v4757_v61 = vpop.f32.mrf.mxu1 }
 0x47b   : > { %v4867_v4 = vadd.f32 %v7338_v51, %v4852_v19 }
 0x47c   : > { %v4868_v60 = vadd.f32 %v7338_v51, %v4853_v25 }
 0x47d   : > { %v4876_v42 = vmax.f32 %v4867_v4, 0.0 }
 0x47e   : > { %v4877_v10 = vmax.f32 %v4868_v60, 0.0 }
 0x47f   : > { %4885 = vst [vmem:[%s7346_s24 + $0x10] sm:$0xff] %v4876_v42 }
 0x480   : > { %4886 = vst [vmem:[%s7346_s24 + $0x18] sm:$0xff] %v4877_v10  ;;  %v4770_v58 = vpop.f32.mrf.mxu2 }
 0x481   : > { %v4783_v33 = vpop.f32.mrf.mxu3  ;;  %v4794_v47 = vpop.f32.mrf.mxu0 }
 0x482   : > { %v4807_v41 = vpop.f32.mrf.mxu1  ;;  %v4854_v14 = vadd.f32 %v4794_v47, %v4666_v35 }
 0x483   : > { %v4855_v20 = vadd.f32 %v4807_v41, %v4667_v13 }
 0x484   : > { %v4869_v0 = vadd.f32 %v7338_v51, %v4854_v14 }
 0x485   : > { %v4870_v11 = vadd.f32 %v7338_v51, %v4855_v20 }
 0x486   : > { %v4878_v5 = vmax.f32 %v4869_v0, 0.0 }
 0x487   : > { %v4879_v34 = vmax.f32 %v4870_v11, 0.0 }
 0x488   : > { %4887 = vst [vmem:[%s7346_s24 + $0x20] sm:$0xff] %v4878_v5  ;;  %v4820_v48 = vpop.f32.mrf.mxu2 }
 0x489   : > { %v4833_v12 = vpop.f32.mrf.mxu3  ;;  %4888 = vst [vmem:[%s7346_s24 + $0x28] sm:$0xff] %v4879_v34  ;;  %v4856_v45 = vadd.f32 %v4820_v48, %v4668_v39  ;;  %v4796_v36 = vpop.f32.mrf.mxu0 }
 0x48a   : > { %v4857_v8 = vadd.f32 %v4833_v12, %v4669_v50  ;;  %v4809_v7 = vpop.f32.mrf.mxu1 }
 0x48b   : > { %v4871_v46 = vadd.f32 %v7338_v51, %v4856_v45 }
 0x48c   : > { %v4872_v49 = vadd.f32 %v7338_v51, %v4857_v8 }
 0x48d   : > { %v4880_v24 = vmax.f32 %v4871_v46, 0.0 }
 0x48e   : > { %v4881_v55 = vmax.f32 %v4872_v49, 0.0 }
 0x48f   : > { %4889 = vst [vmem:[%s7346_s24 + $0x30] sm:$0xff] %v4880_v24 }
 0x490   : > { %4890 = vst [vmem:[%s7346_s24 + $0x38] sm:$0xff] %v4881_v55  ;;  %v4822_v53 = vpop.f32.mrf.mxu2 }
 0x491   : > { %v4835_v59 = vpop.f32.mrf.mxu3  ;;  %v4846_v62 = vpop.f32.mrf.mxu0 }
 0x492   : > { %v4858_v40 = vadd.f32 %v4846_v62, %v4670_v32 }
 0x494   : > { %v4873_v27 = vadd.f32 %v7338_v51, %v4858_v40 }
 0x496   : > { %v4882_v31 = vmax.f32 %v4873_v27, 0.0 }
 0x498   : > { %4891 = vst [vmem:[%s7346_s24 + $0x40] sm:$0xff] %v4882_v31 }
 0x499   : > { %v4848_v18 = vpop.f32.mrf.mxu0 }
 0x49a PF: > { %s13_s12 = sadd.s32 1, %s5247_s12  }
 0x49b   : > { %p10_p4 = scmp.ge.s32.totalorder %s13_s12, 4  }
 0x49d   :  { %12 = sbr.rel (!%p10_p4) target bundleno = 1 (0x1), region = 86 }

</bundles_post_ra>
